<compile_context>
chip_gen: v6e
topology: v6e:2x2x1
jax: 0.10.0
libtpu: 0.0.40
codegen_flags: <defaults>
</compile_context>

<pallas_src>
import functools
import math

import jax
import jax.numpy as jnp
import numpy as np
from jax.experimental import pallas as pl
from jax.experimental.pallas import tpu as pltpu

# Cast MXU operands to this dtype (accumulation stays f32 via preferred_element_type).
# Set to jnp.bfloat16 on v6e/v7x for production-scale layers.
MXU_DTYPE = jnp.float32
_LN_EPS = 1e-5


# ------------------------------------------------------------------
# In-kernel helpers
# ------------------------------------------------------------------

def _mm(a, b):
    """MXU matmul with f32 accumulation."""
    return jnp.dot(a.astype(MXU_DTYPE), b.astype(MXU_DTYPE),
                   preferred_element_type=jnp.float32)


def _layernorm(h, gamma, beta, eps):
    mean = jnp.mean(h, axis=-1, keepdims=True)
    c = h - mean
    var = jnp.mean(c * c, axis=-1, keepdims=True)
    return gamma * (c * jax.lax.rsqrt(var + eps)) + beta


def _sdpa_head(q, k, v, scale):
    """softmax(q k^T * scale) v for one (batch, head); q,k,v are small 2-D tiles."""
    s = jax.lax.dot_general(q.astype(MXU_DTYPE), k.astype(MXU_DTYPE),
                            (((1,), (1,)), ((), ())),
                            preferred_element_type=jnp.float32) * scale
    m = jnp.max(s, axis=-1, keepdims=True)
    p = jnp.exp(s - m)                                   # single EUP exp per element
    l = jnp.sum(p, axis=-1, keepdims=True)
    a = p * pl.reciprocal(l, approx=True)                # EUP reciprocal, no per-elem divide
    return jnp.dot(a.astype(MXU_DTYPE), v.astype(MXU_DTYPE),
                   preferred_element_type=jnp.float32)


# ------------------------------------------------------------------
# Fused kernels
# ------------------------------------------------------------------

def _self_attn_front_kernel(x_ref, w_emb_ref, b_emb_ref, w_qkv_ref, b_qkv_ref,
                            h_ref, vals_ref, *, B, S, H, dh, scale):
    """[input embedding -> packed QKV projection -> all-(batch,head) SDPA]."""
    h = _mm(x_ref[...], w_emb_ref[...]) + b_emb_ref[...]          # (M, D)
    h_ref[...] = h.astype(h_ref.dtype)                            # residual for the tail
    qkv = _mm(h, w_qkv_ref[...]) + b_qkv_ref[...]                 # (M, 3*D), consumed packed
    # All (batch, head) attention tiles in ONE invocation (unrolled static loop).
    for bi in range(B):
        rows = slice(bi * S, (bi + 1) * S)
        for hd in range(H):
            base = hd * 3 * dh
            q = qkv[rows, base:base + dh]
            k = qkv[rows, base + dh:base + 2 * dh]
            v = qkv[rows, base + 2 * dh:base + 3 * dh]
            o = _sdpa_head(q, k, v, scale)
            r0 = (bi * H + hd) * S
            # Row order (b, h, s) => reshaping (B*H*S, dh)->(B*S, H*dh) outside the kernel
            # is exactly PyTorch's no-permute (B,H,S,dh)->(B,S,D) reshape (free bitcast).
            vals_ref[r0:r0 + S, :] = o.astype(vals_ref.dtype)


def _cross_attn_front_kernel(vals_ref, y_res_ref, x_ref,
                             w_out_ref, b_out_ref, g1_ref, be1_ref,
                             w_q_ref, b_q_ref, w_kv_ref, b_kv_ref,
                             y1_ref, cvals_ref, *, B, S_y, S_x, H, dh, scale, eps):
    """[self-attn out proj -> add&LN -> Q/KV projections -> all-(batch,head) cross SDPA]."""
    att = _mm(vals_ref[...], w_out_ref[...]) + b_out_ref[...]
    y1 = _layernorm(att + y_res_ref[...], g1_ref[...], be1_ref[...], eps)
    y1_ref[...] = y1.astype(y1_ref.dtype)                          # residual for the tail
    q_all = _mm(y1, w_q_ref[...]) + b_q_ref[...]                   # (M_y, D)
    kv_all = _mm(x_ref[...], w_kv_ref[...]) + b_kv_ref[...]        # (M_x, 2*D)
    for bi in range(B):
        ry = slice(bi * S_y, (bi + 1) * S_y)
        rx = slice(bi * S_x, (bi + 1) * S_x)
        for hd in range(H):
            base = hd * 2 * dh
            q = q_all[ry, hd * dh:(hd + 1) * dh]
            k = kv_all[rx, base:base + dh]
            v = kv_all[rx, base + dh:base + 2 * dh]
            o = _sdpa_head(q, k, v, scale)
            r0 = (bi * H + hd) * S_y
            cvals_ref[r0:r0 + S_y, :] = o.astype(cvals_ref.dtype)


def _attn_tail_kernel(vals_ref, res_ref, w_out_ref, b_out_ref, g1_ref, be1_ref,
                      w_f1_ref, b_f1_ref, w_f2_ref, b_f2_ref, g2_ref, be2_ref,
                      o_ref, *, eps):
    """[attention out proj -> add&LN -> FFN(ReLU) -> add&LN], all VMEM resident."""
    att = _mm(vals_ref[...], w_out_ref[...]) + b_out_ref[...]
    h1 = _layernorm(att + res_ref[...], g1_ref[...], be1_ref[...], eps)
    f = jnp.maximum(_mm(h1, w_f1_ref[...]) + b_f1_ref[...], 0.0)
    # TODO(synk): dropout treated as identity (inference semantics).
    f = _mm(f, w_f2_ref[...]) + b_f2_ref[...]
    o_ref[...] = _layernorm(f + h1, g2_ref[...], be2_ref[...], eps).astype(o_ref.dtype)


def _linear_kernel(x_ref, w_ref, b_ref, o_ref):
    o_ref[...] = (_mm(x_ref[...], w_ref[...]) + b_ref[...]).astype(o_ref.dtype)


# ------------------------------------------------------------------
# pallas_call wrappers
# ------------------------------------------------------------------

def _gspec(*tail):
    """BlockSpec selecting one parameter-group slice (leading axis squeezed)."""
    nt = len(tail)
    return pl.BlockSpec((None,) + tuple(tail), lambda s: (s,) + (0,) * nt)


def self_attn_front_pallas(xs, emb_p, qkv_p, *, batch, seq, num_heads):
    """Fused encoder/decoder-self front.

    xs: (G, M, d_in) with M = batch*seq; G independent parameter groups run on a
    "parallel" grid axis (G=2 drives both encoder streams in one call).
    Returns (h_emb (G,M,D), vals (G, B*H*S, dh)).
    """
    G, M, d_in = xs.shape
    D = emb_p["w"].shape[-1]
    H = num_heads
    dh = D // H
    kernel = functools.partial(_self_attn_front_kernel,
                               B=batch, S=seq, H=H, dh=dh, scale=1.0 / math.sqrt(dh))
    return pl.pallas_call(
        kernel,
        out_shape=(jax.ShapeDtypeStruct((G, M, D), xs.dtype),
                   jax.ShapeDtypeStruct((G, batch * H * seq, dh), xs.dtype)),
        grid=(G,),
        in_specs=[
            _gspec(M, d_in),
            _gspec(d_in, D),
            _gspec(1, D),
            _gspec(D, 3 * D),
            _gspec(1, 3 * D),
        ],
        out_specs=(_gspec(M, D), _gspec(batch * H * seq, dh)),
        compiler_params=pltpu.CompilerParams(dimension_semantics=("parallel",)),
    )(xs, emb_p["w"], emb_p["b"].reshape(G, 1, D),
      qkv_p["w"], qkv_p["b"].reshape(G, 1, 3 * D))


def cross_attn_front_pallas(svals2d, y_res, x2d, out_p, norm1_p, q_p, kv_p,
                            *, batch, seq, num_heads):
    """Fused decoder middle: self-attn out proj + add&LN (norm1) + cross SDPA."""
    G, M, D = y_res.shape
    Mx = x2d.shape[1]
    H = num_heads
    dh = D // H
    kernel = functools.partial(_cross_attn_front_kernel, B=batch, S_y=seq,
                               S_x=Mx // batch, H=H, dh=dh,
                               scale=1.0 / math.sqrt(dh), eps=_LN_EPS)
    return pl.pallas_call(
        kernel,
        out_shape=(jax.ShapeDtypeStruct((G, M, D), y_res.dtype),
                   jax.ShapeDtypeStruct((G, batch * H * seq, dh), y_res.dtype)),
        grid=(G,),
        in_specs=[
            _gspec(M, D), _gspec(M, D), _gspec(Mx, D),
            _gspec(D, D), _gspec(1, D),
            _gspec(1, D), _gspec(1, D),
            _gspec(D, D), _gspec(1, D),
            _gspec(D, 2 * D), _gspec(1, 2 * D),
        ],
        out_specs=(_gspec(M, D), _gspec(batch * H * seq, dh)),
        compiler_params=pltpu.CompilerParams(dimension_semantics=("parallel",)),
    )(svals2d, y_res, x2d,
      out_p["w"], out_p["b"].reshape(G, 1, D),
      norm1_p["gamma"].reshape(G, 1, D), norm1_p["beta"].reshape(G, 1, D),
      q_p["w"], q_p["b"].reshape(G, 1, D),
      kv_p["w"], kv_p["b"].reshape(G, 1, 2 * D))


def attn_tail_pallas(vals2d, resid, out_p, norm1_p, ff1_p, ff2_p, norm2_p):
    """Fused [attention out proj -> add&LN -> FFN(ReLU) -> add&LN]."""
    G, M, D = resid.shape
    F = ff1_p["w"].shape[-1]
    kernel = functools.partial(_attn_tail_kernel, eps=_LN_EPS)
    return pl.pallas_call(
        kernel,
        out_shape=jax.ShapeDtypeStruct((G, M, D), resid.dtype),
        grid=(G,),
        in_specs=[
            _gspec(M, D), _gspec(M, D),
            _gspec(D, D), _gspec(1, D),
            _gspec(1, D), _gspec(1, D),
            _gspec(D, F), _gspec(1, F),
            _gspec(F, D), _gspec(1, D),
            _gspec(1, D), _gspec(1, D),
        ],
        out_specs=_gspec(M, D),
        compiler_params=pltpu.CompilerParams(dimension_semantics=("parallel",)),
    )(vals2d, resid,
      out_p["w"], out_p["b"].reshape(G, 1, D),
      norm1_p["gamma"].reshape(G, 1, D), norm1_p["beta"].reshape(G, 1, D),
      ff1_p["w"], ff1_p["b"].reshape(G, 1, F),
      ff2_p["w"], ff2_p["b"].reshape(G, 1, D),
      norm2_p["gamma"].reshape(G, 1, D), norm2_p["beta"].reshape(G, 1, D))


def linear_pallas(x, w, b):
    """Final projection: y = x @ w + b, single grid step (everything resident)."""
    M, K = x.shape
    N = w.shape[-1]
    return pl.pallas_call(
        _linear_kernel,
        out_shape=jax.ShapeDtypeStruct((M, N), x.dtype),
        grid=(1,),
        in_specs=[
            pl.BlockSpec((M, K), lambda i: (0, 0)),
            pl.BlockSpec((K, N), lambda i: (0, 0)),
            pl.BlockSpec((1, N), lambda i: (0, 0)),
        ],
        out_specs=pl.BlockSpec((M, N), lambda i: (0, 0)),
    )(x, w, b.reshape(1, N))


# ------------------------------------------------------------------
# Model composition (mirrors the PyTorch module exactly)
# ------------------------------------------------------------------

def transformer_forward_pallas(params, x, y, *, num_heads):
    # The PyTorch forward builds a fixed 5x5 causal mask but never applies it
    # (MultiHeadAttention ignores its mask arg; cross_attention is called without one),
    # so it is dead code and intentionally omitted.
    B, _, S, _ = x.shape
    M = B * S

    # --- encoders: temp & ghg streams stacked on a leading "parallel" grid axis of 2 ---
    xs = jnp.transpose(x, (1, 0, 2, 3)).reshape(2, M, x.shape[-1])
    for lt, lg in zip(params["temp_encoder"], params["ghg_encoder"]):
        lp = jax.tree_util.tree_map(lambda a, b: jnp.stack([a, b]), lt, lg)
        h_emb, vals = self_attn_front_pallas(xs, lp["emb"], lp["attn"]["qkv"],
                                             batch=B, seq=S, num_heads=num_heads)
        D = h_emb.shape[-1]
        # Free row-major bitcast == PyTorch's (B,H,S,dh)->(B,S,D) no-permute reshape.
        vals2d = vals.reshape(2, M, D)
        xs = attn_tail_pallas(vals2d, h_emb, lp["attn"]["out"], lp["norm1"],
                              lp["ffn"]["lin1"], lp["ffn"]["lin2"], lp["norm2"])

    combined_x = jnp.concatenate([xs[0], xs[1]], axis=-1)[None]            # (1, M, 2*d_enc)
    out = jnp.concatenate([y[:, 0], y[:, 1]], axis=-1).reshape(1, M, -1)   # (1, M, d_data)

    # --- decoder ---
    for lp0 in params["decoder"]:
        lp = jax.tree_util.tree_map(lambda a: a[None], lp0)
        y_emb, svals = self_attn_front_pallas(out, lp["emb"], lp["self_attn"]["qkv"],
                                              batch=B, seq=S, num_heads=num_heads)
        D = y_emb.shape[-1]
        svals2d = svals.reshape(1, M, D)
        y1, cvals = cross_attn_front_pallas(svals2d, y_emb, combined_x,
                                            lp["self_attn"]["out"], lp["norm1"],
                                            lp["cross_attn"]["q"], lp["cross_attn"]["kv"],
                                            batch=B, seq=S, num_heads=num_heads)
        cvals2d = cvals.reshape(1, M, D)
        out = attn_tail_pallas(cvals2d, y1, lp["cross_attn"]["out"], lp["norm2"],
                               lp["ffn"]["lin1"], lp["ffn"]["lin2"], lp["norm3"])

    final = linear_pallas(out[0], params["final"]["w"], params["final"]["b"])
    return final.reshape(B, S, -1)


# ------------------------------------------------------------------
# Pure-JAX reference (for correctness checking)
# ------------------------------------------------------------------

_HI = jax.lax.Precision.HIGHEST


def _ref_linear(t, p):
    return jnp.dot(t, p["w"], precision=_HI) + p["b"]


def _ref_ln(h, p, eps=_LN_EPS):
    mean = jnp.mean(h, axis=-1, keepdims=True)
    var = jnp.mean((h - mean) ** 2, axis=-1, keepdims=True)
    return p["gamma"] * ((h - mean) / jnp.sqrt(var + eps)) + p["beta"]


def _ref_sdpa(q, k, v):
    s = jnp.einsum("bhqd,bhkd->bhqk", q, k, precision=_HI) / math.sqrt(q.shape[-1])
    a = jax.nn.softmax(s, axis=-1)
    return jnp.einsum("bhqk,bhkd->bhqd", a, v, precision=_HI)


def _ref_mha(t, p, H):
    Bq, Sq, D = t.shape
    dh = D // H
    qkv = jnp.transpose(_ref_linear(t, p["qkv"]).reshape(Bq, Sq, H, 3 * dh), (0, 2, 1, 3))
    q, k, v = jnp.split(qkv, 3, axis=-1)
    vals = _ref_sdpa(q, k, v).reshape(Bq, Sq, H * dh)   # PyTorch no-permute reshape
    return _ref_linear(vals, p["out"])


def _ref_mhca(tx, ty, p, H):
    Bq, Sx, D = tx.shape
    Sy = ty.shape[1]
    dh = D // H
    kv = jnp.transpose(_ref_linear(tx, p["kv"]).reshape(Bq, Sx, H, 2 * dh), (0, 2, 1, 3))
    q = jnp.transpose(_ref_linear(ty, p["q"]).reshape(Bq, Sy, H, dh), (0, 2, 1, 3))
    k, v = jnp.split(kv, 2, axis=-1)
    vals = _ref_sdpa(q, k, v).reshape(Bq, Sy, H * dh)
    return _ref_linear(vals, p["out"])


def _ref_encoder_layer(t, p, H):
    t = _ref_linear(t, p["emb"])
    r = t
    t = _ref_mha(t, p["attn"], H)
    t = _ref_ln(t + r, p["norm1"])
    r = t
    t = _ref_linear(jnp.maximum(_ref_linear(t, p["ffn"]["lin1"]), 0.0), p["ffn"]["lin2"])
    return _ref_ln(t + r, p["norm2"])


def _ref_decoder_layer(tx, ty, p, H):
    ty = _ref_linear(ty, p["emb"])
    r = ty
    ty = _ref_mha(ty, p["self_attn"], H)
    ty = _ref_ln(ty + r, p["norm1"])
    r = ty
    ty = _ref_mhca(tx, ty, p["cross_attn"], H)
    ty = _ref_ln(ty + r, p["norm2"])
    r = ty
    ty = _ref_linear(jnp.maximum(_ref_linear(ty, p["ffn"]["lin1"]), 0.0), p["ffn"]["lin2"])
    return _ref_ln(ty + r, p["norm3"])


def transformer_forward_ref(params, x, y, *, num_heads):
    temp, ghg = x[:, 0], x[:, 1]
    for lp in params["temp_encoder"]:
        temp = _ref_encoder_layer(temp, lp, num_heads)
    for lp in params["ghg_encoder"]:
        ghg = _ref_encoder_layer(ghg, lp, num_heads)
    cx = jnp.concatenate([temp, ghg], axis=-1)
    out = jnp.concatenate([y[:, 0], y[:, 1]], axis=-1)
    for lp in params["decoder"]:
        out = _ref_decoder_layer(cx, out, lp, num_heads)
    return _ref_linear(out, params["final"])


# ------------------------------------------------------------------
# Parameter initialization (deterministic, PyTorch-Linear-style ranges)
# ------------------------------------------------------------------

def _init_linear(key, fan_in, fan_out):
    kw, kb = jax.random.split(key)
    bound = 1.0 / math.sqrt(fan_in)
    return {
        "w": jax.random.uniform(kw, (fan_in, fan_out), jnp.float32, -bound, bound),
        "b": jax.random.uniform(kb, (fan_out,), jnp.float32, -bound, bound),
    }


def _init_norm(d):
    return {"gamma": jnp.ones((d,), jnp.float32), "beta": jnp.zeros((d,), jnp.float32)}


def _init_encoder_layer(key, d_model, d_data, ffn_hidden):
    ks = jax.random.split(key, 5)
    return {
        "emb": _init_linear(ks[0], d_data, d_model),
        "attn": {"qkv": _init_linear(ks[1], d_model, 3 * d_model),
                 "out": _init_linear(ks[2], d_model, d_model)},
        "norm1": _init_norm(d_model),
        "ffn": {"lin1": _init_linear(ks[3], d_model, ffn_hidden),
                "lin2": _init_linear(ks[4], ffn_hidden, d_model)},
        "norm2": _init_norm(d_model),
    }


def _init_decoder_layer(key, d_model, d_data, ffn_hidden):
    ks = jax.random.split(key, 8)
    return {
        "emb": _init_linear(ks[0], d_data, d_model),
        "self_attn": {"qkv": _init_linear(ks[1], d_model, 3 * d_model),
                      "out": _init_linear(ks[2], d_model, d_model)},
        "norm1": _init_norm(d_model),
        "cross_attn": {"kv": _init_linear(ks[3], d_model, 2 * d_model),
                       "q": _init_linear(ks[4], d_model, d_model),
                       "out": _init_linear(ks[5], d_model, d_model)},
        "norm2": _init_norm(d_model),
        "ffn": {"lin1": _init_linear(ks[6], d_model, ffn_hidden),
                "lin2": _init_linear(ks[7], ffn_hidden, d_model)},
        "norm3": _init_norm(d_model),
    }


def init_transformer_params(key, *, d_enc, d_dec, d_data, d_temp, d_ghg,
                            ffn_hidden, num_layers):
    k_t, k_g, k_d, k_f = jax.random.split(key, 4)
    return {
        "temp_encoder": [_init_encoder_layer(k, d_enc, d_temp, ffn_hidden)
                         for k in jax.random.split(k_t, num_layers)],
        "ghg_encoder": [_init_encoder_layer(k, d_enc, d_ghg, ffn_hidden)
                        for k in jax.random.split(k_g, num_layers)],
        "decoder": [_init_decoder_layer(k, d_dec, d_data, ffn_hidden)
                    for k in jax.random.split(k_d, num_layers)],
        "final": _init_linear(k_f, d_dec, d_data),
    }


# ------------------------------------------------------------------
if __name__ == "__main__":
    # Shapes consistent with the module's forward:
    #   x: [batch, 2 streams, seq, d_temp]          (d_temp == d_ghg, slices of one tensor)
    #   y: [batch, 2 streams, seq, d_data/2]        (concat of streams -> d_data)
    # Cross-attention requires d_dec == 2 * d_enc; num_layers=1 keeps the per-layer
    # input_embedding shape flow consistent (as the PyTorch code implicitly requires).
    batch, seq = 2, 8
    d_temp = d_ghg = 8
    d_enc = 16
    d_dec = 2 * d_enc      # = 32 (decoder hidden)
    d_data = 8
    ffn_hidden = 32
    num_heads = 4
    num_layers = 1

    root = jax.random.PRNGKey(0)
    k_params, k_x, k_y = jax.random.split(root, 3)
    params = init_transformer_params(
        k_params, d_enc=d_enc, d_dec=d_dec, d_data=d_data, d_temp=d_temp,
        d_ghg=d_ghg, ffn_hidden=ffn_hidden, num_layers=num_layers)

    x = jax.random.normal(k_x, (batch, 2, seq, d_temp), jnp.float32)
    y = jax.random.normal(k_y, (batch, 2, seq, d_data // 2), jnp.float32)

    fwd = jax.jit(functools.partial(transformer_forward_pallas, num_heads=num_heads))
    out = jax.block_until_ready(fwd(params, x, y))
    assert out.shape == (batch, seq, d_data), out.shape

    # Pure-JAX reference with high-precision dots / exact divides.  Tolerance is looser
    # than before because the Pallas path now (per the perf review) uses EUP approximate
    # reciprocal for the softmax normalisation and rsqrt for LayerNorm.
    ref = transformer_forward_ref(params, x, y, num_heads=num_heads)
    np.testing.assert_allclose(np.asarray(out), np.asarray(ref), rtol=2e-2, atol=2e-2)

    print("KERNEL_OK")
</pallas_src>

<mosaic_0001>
module attributes {stable_mosaic.version = 11 : i64} {
  func.func @_self_attn_front_kernel(%arg0: i32, %arg1: memref<1x16x8xf32, #tpu.memory_space<vmem>>, %arg2: memref<1x8x16xf32, #tpu.memory_space<vmem>>, %arg3: memref<1x1x16xf32, #tpu.memory_space<vmem>>, %arg4: memref<1x16x48xf32, #tpu.memory_space<vmem>>, %arg5: memref<1x1x48xf32, #tpu.memory_space<vmem>>, %arg6: memref<1x16x16xf32, #tpu.memory_space<vmem>>, %arg7: memref<1x64x4xf32, #tpu.memory_space<vmem>>) attributes {dimension_semantics = [#tpu.dimension_semantics<parallel>], iteration_bounds = array<i64: 2>, scalar_prefetch = 0 : i64, scratch_operands = 0 : i64, tpu.core_type = #tpu.core_type<tc>, window_params = [{transform_indices = @transform_0, window_bounds = array<i64: 1, 16, 8>}, {transform_indices = @transform_1, window_bounds = array<i64: 1, 8, 16>}, {transform_indices = @transform_2, window_bounds = array<i64: 1, 1, 16>}, {transform_indices = @transform_3, window_bounds = array<i64: 1, 16, 48>}, {transform_indices = @transform_4, window_bounds = array<i64: 1, 1, 48>}, {transform_indices = @transform_5, window_bounds = array<i64: 1, 16, 16>}, {transform_indices = @transform_6, window_bounds = array<i64: 1, 64, 4>}]} {
    %c0 = arith.constant 0 : index
    %c0_0 = arith.constant 0 : index
    %c0_1 = arith.constant 0 : index
    %0 = vector.load %arg1[%c0, %c0_0, %c0_1] : memref<1x16x8xf32, #tpu.memory_space<vmem>>, vector<1x16x8xf32>
    %1 = vector.shape_cast %0 : vector<1x16x8xf32> to vector<16x8xf32>
    %c0_2 = arith.constant 0 : index
    %c0_3 = arith.constant 0 : index
    %c0_4 = arith.constant 0 : index
    %2 = vector.load %arg2[%c0_2, %c0_3, %c0_4] : memref<1x8x16xf32, #tpu.memory_space<vmem>>, vector<1x8x16xf32>
    %3 = vector.shape_cast %2 : vector<1x8x16xf32> to vector<8x16xf32>
    %cst = arith.constant dense<0.000000e+00> : vector<16x16xf32>
    %4 = tpu.matmul %1, %3, %cst {dimension_numbers = #tpu.dot_dimension_numbers<[1], [0], [0], [1], [0, 0, 1, 1], [], []>} : vector<16x8xf32>, vector<8x16xf32>, vector<16x16xf32> -> vector<16x16xf32>
    %c0_5 = arith.constant 0 : index
    %c0_6 = arith.constant 0 : index
    %c0_7 = arith.constant 0 : index
    %5 = vector.load %arg3[%c0_5, %c0_6, %c0_7] : memref<1x1x16xf32, #tpu.memory_space<vmem>>, vector<1x1x16xf32>
    %6 = vector.shape_cast %5 : vector<1x1x16xf32> to vector<1x16xf32>
    %7 = vector.broadcast %6 : vector<1x16xf32> to vector<16x16xf32>
    %8 = arith.addf %4, %7 : vector<16x16xf32>
    %c0_8 = arith.constant 0 : index
    %c0_9 = arith.constant 0 : index
    %c0_10 = arith.constant 0 : index
    %9 = vector.load %arg6[%c0_8, %c0_9, %c0_10] : memref<1x16x16xf32, #tpu.memory_space<vmem>>, vector<1x16x16xf32>
    %10 = vector.shape_cast %9 : vector<1x16x16xf32> to vector<16x16xf32>
    %11 = vector.shape_cast %8 : vector<16x16xf32> to vector<1x16x16xf32>
    tpu.vector_store %arg6[%c0_8, %c0_9, %c0_10], %11 {strides = array<i32>} : memref<1x16x16xf32, #tpu.memory_space<vmem>>, vector<1x16x16xf32>,
    %c0_11 = arith.constant 0 : index
    %c0_12 = arith.constant 0 : index
    %c0_13 = arith.constant 0 : index
    %12 = vector.load %arg4[%c0_11, %c0_12, %c0_13] : memref<1x16x48xf32, #tpu.memory_space<vmem>>, vector<1x16x48xf32>
    %13 = vector.shape_cast %12 : vector<1x16x48xf32> to vector<16x48xf32>
    %cst_14 = arith.constant dense<0.000000e+00> : vector<16x48xf32>
    %14 = tpu.matmul %8, %13, %cst_14 {dimension_numbers = #tpu.dot_dimension_numbers<[1], [0], [0], [1], [0, 0, 1, 1], [], []>} : vector<16x16xf32>, vector<16x48xf32>, vector<16x48xf32> -> vector<16x48xf32>
    %c0_15 = arith.constant 0 : index
    %c0_16 = arith.constant 0 : index
    %c0_17 = arith.constant 0 : index
    %15 = vector.load %arg5[%c0_15, %c0_16, %c0_17] : memref<1x1x48xf32, #tpu.memory_space<vmem>>, vector<1x1x48xf32>
    %16 = vector.shape_cast %15 : vector<1x1x48xf32> to vector<1x48xf32>
    %17 = vector.broadcast %16 : vector<1x48xf32> to vector<16x48xf32>
    %18 = arith.addf %14, %17 : vector<16x48xf32>
    %19 = vector.extract_strided_slice %18 {offsets = [0, 0], sizes = [8, 4], strides = [1, 1]} : vector<16x48xf32> to vector<8x4xf32>
    %20 = vector.extract_strided_slice %18 {offsets = [0, 4], sizes = [8, 4], strides = [1, 1]} : vector<16x48xf32> to vector<8x4xf32>
    %21 = vector.extract_strided_slice %18 {offsets = [0, 8], sizes = [8, 4], strides = [1, 1]} : vector<16x48xf32> to vector<8x4xf32>
    %cst_18 = arith.constant dense<0.000000e+00> : vector<8x8xf32>
    %22 = tpu.matmul %19, %20, %cst_18 {dimension_numbers = #tpu.dot_dimension_numbers<[1], [1], [0], [0], [0, 0, 1, 0], [], []>} : vector<8x4xf32>, vector<8x4xf32>, vector<8x8xf32> -> vector<8x8xf32>
    %cst_19 = arith.constant 5.000000e-01 : f32
    %23 = vector.broadcast %cst_19 : f32 to vector<8x8xf32>
    %24 = arith.mulf %22, %23 : vector<8x8xf32>
    %cst_20 = arith.constant dense<0xFF800000> : vector<8xf32>
    %25 = vector.multi_reduction <maximumf>, %24, %cst_20 [1] : vector<8x8xf32> to vector<8xf32>
    %26 = vector.shape_cast %25 : vector<8xf32> to vector<8x1xf32>
    %27 = vector.broadcast %26 : vector<8x1xf32> to vector<8x8xf32>
    %28 = arith.subf %24, %27 : vector<8x8xf32>
    %29 = math.exp %28 : vector<8x8xf32>
    %cst_21 = arith.constant dense<0.000000e+00> : vector<8xf32>
    %30 = vector.multi_reduction <add>, %29, %cst_21 [1] : vector<8x8xf32> to vector<8xf32>
    %31 = vector.shape_cast %30 : vector<8xf32> to vector<8x1xf32>
    %32 = tpu.reciprocal %31 {approx = true} : vector<8x1xf32> -> vector<8x1xf32>
    %33 = vector.broadcast %32 : vector<8x1xf32> to vector<8x8xf32>
    %34 = arith.mulf %29, %33 : vector<8x8xf32>
    %cst_22 = arith.constant dense<0.000000e+00> : vector<8x4xf32>
    %35 = tpu.matmul %34, %21, %cst_22 {dimension_numbers = #tpu.dot_dimension_numbers<[1], [0], [0], [1], [0, 0, 1, 1], [], []>} : vector<8x8xf32>, vector<8x4xf32>, vector<8x4xf32> -> vector<8x4xf32>
    %c0_23 = arith.constant 0 : index
    %c0_24 = arith.constant 0 : index
    %c0_25 = arith.constant 0 : index
    %36 = vector.load %arg7[%c0_23, %c0_24, %c0_25] : memref<1x64x4xf32, #tpu.memory_space<vmem>>, vector<1x8x4xf32>
    %37 = vector.shape_cast %36 : vector<1x8x4xf32> to vector<8x4xf32>
    %38 = vector.shape_cast %35 : vector<8x4xf32> to vector<1x8x4xf32>
    tpu.vector_store %arg7[%c0_23, %c0_24, %c0_25], %38 {strides = array<i32>} : memref<1x64x4xf32, #tpu.memory_space<vmem>>, vector<1x8x4xf32>,
    %39 = vector.extract_strided_slice %18 {offsets = [0, 12], sizes = [8, 4], strides = [1, 1]} : vector<16x48xf32> to vector<8x4xf32>
    %40 = vector.extract_strided_slice %18 {offsets = [0, 16], sizes = [8, 4], strides = [1, 1]} : vector<16x48xf32> to vector<8x4xf32>
    %41 = vector.extract_strided_slice %18 {offsets = [0, 20], sizes = [8, 4], strides = [1, 1]} : vector<16x48xf32> to vector<8x4xf32>
    %cst_26 = arith.constant dense<0.000000e+00> : vector<8x8xf32>
    %42 = tpu.matmul %39, %40, %cst_26 {dimension_numbers = #tpu.dot_dimension_numbers<[1], [1], [0], [0], [0, 0, 1, 0], [], []>} : vector<8x4xf32>, vector<8x4xf32>, vector<8x8xf32> -> vector<8x8xf32>
    %cst_27 = arith.constant 5.000000e-01 : f32
    %43 = vector.broadcast %cst_27 : f32 to vector<8x8xf32>
    %44 = arith.mulf %42, %43 : vector<8x8xf32>
    %cst_28 = arith.constant dense<0xFF800000> : vector<8xf32>
    %45 = vector.multi_reduction <maximumf>, %44, %cst_28 [1] : vector<8x8xf32> to vector<8xf32>
    %46 = vector.shape_cast %45 : vector<8xf32> to vector<8x1xf32>
    %47 = vector.broadcast %46 : vector<8x1xf32> to vector<8x8xf32>
    %48 = arith.subf %44, %47 : vector<8x8xf32>
    %49 = math.exp %48 : vector<8x8xf32>
    %cst_29 = arith.constant dense<0.000000e+00> : vector<8xf32>
    %50 = vector.multi_reduction <add>, %49, %cst_29 [1] : vector<8x8xf32> to vector<8xf32>
    %51 = vector.shape_cast %50 : vector<8xf32> to vector<8x1xf32>
    %52 = tpu.reciprocal %51 {approx = true} : vector<8x1xf32> -> vector<8x1xf32>
    %53 = vector.broadcast %52 : vector<8x1xf32> to vector<8x8xf32>
    %54 = arith.mulf %49, %53 : vector<8x8xf32>
    %cst_30 = arith.constant dense<0.000000e+00> : vector<8x4xf32>
    %55 = tpu.matmul %54, %41, %cst_30 {dimension_numbers = #tpu.dot_dimension_numbers<[1], [0], [0], [1], [0, 0, 1, 1], [], []>} : vector<8x8xf32>, vector<8x4xf32>, vector<8x4xf32> -> vector<8x4xf32>
    %c0_31 = arith.constant 0 : index
    %c8 = arith.constant 8 : index
    %c0_32 = arith.constant 0 : index
    %56 = vector.load %arg7[%c0_31, %c8, %c0_32] : memref<1x64x4xf32, #tpu.memory_space<vmem>>, vector<1x8x4xf32>
    %57 = vector.shape_cast %56 : vector<1x8x4xf32> to vector<8x4xf32>
    %58 = vector.shape_cast %55 : vector<8x4xf32> to vector<1x8x4xf32>
    tpu.vector_store %arg7[%c0_31, %c8, %c0_32], %58 {strides = array<i32>} : memref<1x64x4xf32, #tpu.memory_space<vmem>>, vector<1x8x4xf32>,
    %59 = vector.extract_strided_slice %18 {offsets = [0, 24], sizes = [8, 4], strides = [1, 1]} : vector<16x48xf32> to vector<8x4xf32>
    %60 = vector.extract_strided_slice %18 {offsets = [0, 28], sizes = [8, 4], strides = [1, 1]} : vector<16x48xf32> to vector<8x4xf32>
    %61 = vector.extract_strided_slice %18 {offsets = [0, 32], sizes = [8, 4], strides = [1, 1]} : vector<16x48xf32> to vector<8x4xf32>
    %cst_33 = arith.constant dense<0.000000e+00> : vector<8x8xf32>
    %62 = tpu.matmul %59, %60, %cst_33 {dimension_numbers = #tpu.dot_dimension_numbers<[1], [1], [0], [0], [0, 0, 1, 0], [], []>} : vector<8x4xf32>, vector<8x4xf32>, vector<8x8xf32> -> vector<8x8xf32>
    %cst_34 = arith.constant 5.000000e-01 : f32
    %63 = vector.broadcast %cst_34 : f32 to vector<8x8xf32>
    %64 = arith.mulf %62, %63 : vector<8x8xf32>
    %cst_35 = arith.constant dense<0xFF800000> : vector<8xf32>
    %65 = vector.multi_reduction <maximumf>, %64, %cst_35 [1] : vector<8x8xf32> to vector<8xf32>
    %66 = vector.shape_cast %65 : vector<8xf32> to vector<8x1xf32>
    %67 = vector.broadcast %66 : vector<8x1xf32> to vector<8x8xf32>
    %68 = arith.subf %64, %67 : vector<8x8xf32>
    %69 = math.exp %68 : vector<8x8xf32>
    %cst_36 = arith.constant dense<0.000000e+00> : vector<8xf32>
    %70 = vector.multi_reduction <add>, %69, %cst_36 [1] : vector<8x8xf32> to vector<8xf32>
    %71 = vector.shape_cast %70 : vector<8xf32> to vector<8x1xf32>
    %72 = tpu.reciprocal %71 {approx = true} : vector<8x1xf32> -> vector<8x1xf32>
    %73 = vector.broadcast %72 : vector<8x1xf32> to vector<8x8xf32>
    %74 = arith.mulf %69, %73 : vector<8x8xf32>
    %cst_37 = arith.constant dense<0.000000e+00> : vector<8x4xf32>
    %75 = tpu.matmul %74, %61, %cst_37 {dimension_numbers = #tpu.dot_dimension_numbers<[1], [0], [0], [1], [0, 0, 1, 1], [], []>} : vector<8x8xf32>, vector<8x4xf32>, vector<8x4xf32> -> vector<8x4xf32>
    %c0_38 = arith.constant 0 : index
    %c16 = arith.constant 16 : index
    %c0_39 = arith.constant 0 : index
    %76 = vector.load %arg7[%c0_38, %c16, %c0_39] : memref<1x64x4xf32, #tpu.memory_space<vmem>>, vector<1x8x4xf32>
    %77 = vector.shape_cast %76 : vector<1x8x4xf32> to vector<8x4xf32>
    %78 = vector.shape_cast %75 : vector<8x4xf32> to vector<1x8x4xf32>
    tpu.vector_store %arg7[%c0_38, %c16, %c0_39], %78 {strides = array<i32>} : memref<1x64x4xf32, #tpu.memory_space<vmem>>, vector<1x8x4xf32>,
    %79 = vector.extract_strided_slice %18 {offsets = [0, 36], sizes = [8, 4], strides = [1, 1]} : vector<16x48xf32> to vector<8x4xf32>
    %80 = vector.extract_strided_slice %18 {offsets = [0, 40], sizes = [8, 4], strides = [1, 1]} : vector<16x48xf32> to vector<8x4xf32>
    %81 = vector.extract_strided_slice %18 {offsets = [0, 44], sizes = [8, 4], strides = [1, 1]} : vector<16x48xf32> to vector<8x4xf32>
    %cst_40 = arith.constant dense<0.000000e+00> : vector<8x8xf32>
    %82 = tpu.matmul %79, %80, %cst_40 {dimension_numbers = #tpu.dot_dimension_numbers<[1], [1], [0], [0], [0, 0, 1, 0], [], []>} : vector<8x4xf32>, vector<8x4xf32>, vector<8x8xf32> -> vector<8x8xf32>
    %cst_41 = arith.constant 5.000000e-01 : f32
    %83 = vector.broadcast %cst_41 : f32 to vector<8x8xf32>
    %84 = arith.mulf %82, %83 : vector<8x8xf32>
    %cst_42 = arith.constant dense<0xFF800000> : vector<8xf32>
    %85 = vector.multi_reduction <maximumf>, %84, %cst_42 [1] : vector<8x8xf32> to vector<8xf32>
    %86 = vector.shape_cast %85 : vector<8xf32> to vector<8x1xf32>
    %87 = vector.broadcast %86 : vector<8x1xf32> to vector<8x8xf32>
    %88 = arith.subf %84, %87 : vector<8x8xf32>
    %89 = math.exp %88 : vector<8x8xf32>
    %cst_43 = arith.constant dense<0.000000e+00> : vector<8xf32>
    %90 = vector.multi_reduction <add>, %89, %cst_43 [1] : vector<8x8xf32> to vector<8xf32>
    %91 = vector.shape_cast %90 : vector<8xf32> to vector<8x1xf32>
    %92 = tpu.reciprocal %91 {approx = true} : vector<8x1xf32> -> vector<8x1xf32>
    %93 = vector.broadcast %92 : vector<8x1xf32> to vector<8x8xf32>
    %94 = arith.mulf %89, %93 : vector<8x8xf32>
    %cst_44 = arith.constant dense<0.000000e+00> : vector<8x4xf32>
    %95 = tpu.matmul %94, %81, %cst_44 {dimension_numbers = #tpu.dot_dimension_numbers<[1], [0], [0], [1], [0, 0, 1, 1], [], []>} : vector<8x8xf32>, vector<8x4xf32>, vector<8x4xf32> -> vector<8x4xf32>
    %c0_45 = arith.constant 0 : index
    %c24 = arith.constant 24 : index
    %c0_46 = arith.constant 0 : index
    %96 = vector.load %arg7[%c0_45, %c24, %c0_46] : memref<1x64x4xf32, #tpu.memory_space<vmem>>, vector<1x8x4xf32>
    %97 = vector.shape_cast %96 : vector<1x8x4xf32> to vector<8x4xf32>
    %98 = vector.shape_cast %95 : vector<8x4xf32> to vector<1x8x4xf32>
    tpu.vector_store %arg7[%c0_45, %c24, %c0_46], %98 {strides = array<i32>} : memref<1x64x4xf32, #tpu.memory_space<vmem>>, vector<1x8x4xf32>,
    %99 = vector.extract_strided_slice %18 {offsets = [8, 0], sizes = [8, 4], strides = [1, 1]} : vector<16x48xf32> to vector<8x4xf32>
    %100 = vector.extract_strided_slice %18 {offsets = [8, 4], sizes = [8, 4], strides = [1, 1]} : vector<16x48xf32> to vector<8x4xf32>
    %101 = vector.extract_strided_slice %18 {offsets = [8, 8], sizes = [8, 4], strides = [1, 1]} : vector<16x48xf32> to vector<8x4xf32>
    %cst_47 = arith.constant dense<0.000000e+00> : vector<8x8xf32>
    %102 = tpu.matmul %99, %100, %cst_47 {dimension_numbers = #tpu.dot_dimension_numbers<[1], [1], [0], [0], [0, 0, 1, 0], [], []>} : vector<8x4xf32>, vector<8x4xf32>, vector<8x8xf32> -> vector<8x8xf32>
    %cst_48 = arith.constant 5.000000e-01 : f32
    %103 = vector.broadcast %cst_48 : f32 to vector<8x8xf32>
    %104 = arith.mulf %102, %103 : vector<8x8xf32>
    %cst_49 = arith.constant dense<0xFF800000> : vector<8xf32>
    %105 = vector.multi_reduction <maximumf>, %104, %cst_49 [1] : vector<8x8xf32> to vector<8xf32>
    %106 = vector.shape_cast %105 : vector<8xf32> to vector<8x1xf32>
    %107 = vector.broadcast %106 : vector<8x1xf32> to vector<8x8xf32>
    %108 = arith.subf %104, %107 : vector<8x8xf32>
    %109 = math.exp %108 : vector<8x8xf32>
    %cst_50 = arith.constant dense<0.000000e+00> : vector<8xf32>
    %110 = vector.multi_reduction <add>, %109, %cst_50 [1] : vector<8x8xf32> to vector<8xf32>
    %111 = vector.shape_cast %110 : vector<8xf32> to vector<8x1xf32>
    %112 = tpu.reciprocal %111 {approx = true} : vector<8x1xf32> -> vector<8x1xf32>
    %113 = vector.broadcast %112 : vector<8x1xf32> to vector<8x8xf32>
    %114 = arith.mulf %109, %113 : vector<8x8xf32>
    %cst_51 = arith.constant dense<0.000000e+00> : vector<8x4xf32>
    %115 = tpu.matmul %114, %101, %cst_51 {dimension_numbers = #tpu.dot_dimension_numbers<[1], [0], [0], [1], [0, 0, 1, 1], [], []>} : vector<8x8xf32>, vector<8x4xf32>, vector<8x4xf32> -> vector<8x4xf32>
    %c0_52 = arith.constant 0 : index
    %c32 = arith.constant 32 : index
    %c0_53 = arith.constant 0 : index
    %116 = vector.load %arg7[%c0_52, %c32, %c0_53] : memref<1x64x4xf32, #tpu.memory_space<vmem>>, vector<1x8x4xf32>
    %117 = vector.shape_cast %116 : vector<1x8x4xf32> to vector<8x4xf32>
    %118 = vector.shape_cast %115 : vector<8x4xf32> to vector<1x8x4xf32>
    tpu.vector_store %arg7[%c0_52, %c32, %c0_53], %118 {strides = array<i32>} : memref<1x64x4xf32, #tpu.memory_space<vmem>>, vector<1x8x4xf32>,
    %119 = vector.extract_strided_slice %18 {offsets = [8, 12], sizes = [8, 4], strides = [1, 1]} : vector<16x48xf32> to vector<8x4xf32>
    %120 = vector.extract_strided_slice %18 {offsets = [8, 16], sizes = [8, 4], strides = [1, 1]} : vector<16x48xf32> to vector<8x4xf32>
    %121 = vector.extract_strided_slice %18 {offsets = [8, 20], sizes = [8, 4], strides = [1, 1]} : vector<16x48xf32> to vector<8x4xf32>
    %cst_54 = arith.constant dense<0.000000e+00> : vector<8x8xf32>
    %122 = tpu.matmul %119, %120, %cst_54 {dimension_numbers = #tpu.dot_dimension_numbers<[1], [1], [0], [0], [0, 0, 1, 0], [], []>} : vector<8x4xf32>, vector<8x4xf32>, vector<8x8xf32> -> vector<8x8xf32>
    %cst_55 = arith.constant 5.000000e-01 : f32
    %123 = vector.broadcast %cst_55 : f32 to vector<8x8xf32>
    %124 = arith.mulf %122, %123 : vector<8x8xf32>
    %cst_56 = arith.constant dense<0xFF800000> : vector<8xf32>
    %125 = vector.multi_reduction <maximumf>, %124, %cst_56 [1] : vector<8x8xf32> to vector<8xf32>
    %126 = vector.shape_cast %125 : vector<8xf32> to vector<8x1xf32>
    %127 = vector.broadcast %126 : vector<8x1xf32> to vector<8x8xf32>
    %128 = arith.subf %124, %127 : vector<8x8xf32>
    %129 = math.exp %128 : vector<8x8xf32>
    %cst_57 = arith.constant dense<0.000000e+00> : vector<8xf32>
    %130 = vector.multi_reduction <add>, %129, %cst_57 [1] : vector<8x8xf32> to vector<8xf32>
    %131 = vector.shape_cast %130 : vector<8xf32> to vector<8x1xf32>
    %132 = tpu.reciprocal %131 {approx = true} : vector<8x1xf32> -> vector<8x1xf32>
    %133 = vector.broadcast %132 : vector<8x1xf32> to vector<8x8xf32>
    %134 = arith.mulf %129, %133 : vector<8x8xf32>
    %cst_58 = arith.constant dense<0.000000e+00> : vector<8x4xf32>
    %135 = tpu.matmul %134, %121, %cst_58 {dimension_numbers = #tpu.dot_dimension_numbers<[1], [0], [0], [1], [0, 0, 1, 1], [], []>} : vector<8x8xf32>, vector<8x4xf32>, vector<8x4xf32> -> vector<8x4xf32>
    %c0_59 = arith.constant 0 : index
    %c40 = arith.constant 40 : index
    %c0_60 = arith.constant 0 : index
    %136 = vector.load %arg7[%c0_59, %c40, %c0_60] : memref<1x64x4xf32, #tpu.memory_space<vmem>>, vector<1x8x4xf32>
    %137 = vector.shape_cast %136 : vector<1x8x4xf32> to vector<8x4xf32>
    %138 = vector.shape_cast %135 : vector<8x4xf32> to vector<1x8x4xf32>
    tpu.vector_store %arg7[%c0_59, %c40, %c0_60], %138 {strides = array<i32>} : memref<1x64x4xf32, #tpu.memory_space<vmem>>, vector<1x8x4xf32>,
    %139 = vector.extract_strided_slice %18 {offsets = [8, 24], sizes = [8, 4], strides = [1, 1]} : vector<16x48xf32> to vector<8x4xf32>
    %140 = vector.extract_strided_slice %18 {offsets = [8, 28], sizes = [8, 4], strides = [1, 1]} : vector<16x48xf32> to vector<8x4xf32>
    %141 = vector.extract_strided_slice %18 {offsets = [8, 32], sizes = [8, 4], strides = [1, 1]} : vector<16x48xf32> to vector<8x4xf32>
    %cst_61 = arith.constant dense<0.000000e+00> : vector<8x8xf32>
    %142 = tpu.matmul %139, %140, %cst_61 {dimension_numbers = #tpu.dot_dimension_numbers<[1], [1], [0], [0], [0, 0, 1, 0], [], []>} : vector<8x4xf32>, vector<8x4xf32>, vector<8x8xf32> -> vector<8x8xf32>
    %cst_62 = arith.constant 5.000000e-01 : f32
    %143 = vector.broadcast %cst_62 : f32 to vector<8x8xf32>
    %144 = arith.mulf %142, %143 : vector<8x8xf32>
    %cst_63 = arith.constant dense<0xFF800000> : vector<8xf32>
    %145 = vector.multi_reduction <maximumf>, %144, %cst_63 [1] : vector<8x8xf32> to vector<8xf32>
    %146 = vector.shape_cast %145 : vector<8xf32> to vector<8x1xf32>
    %147 = vector.broadcast %146 : vector<8x1xf32> to vector<8x8xf32>
    %148 = arith.subf %144, %147 : vector<8x8xf32>
    %149 = math.exp %148 : vector<8x8xf32>
    %cst_64 = arith.constant dense<0.000000e+00> : vector<8xf32>
    %150 = vector.multi_reduction <add>, %149, %cst_64 [1] : vector<8x8xf32> to vector<8xf32>
    %151 = vector.shape_cast %150 : vector<8xf32> to vector<8x1xf32>
    %152 = tpu.reciprocal %151 {approx = true} : vector<8x1xf32> -> vector<8x1xf32>
    %153 = vector.broadcast %152 : vector<8x1xf32> to vector<8x8xf32>
    %154 = arith.mulf %149, %153 : vector<8x8xf32>
    %cst_65 = arith.constant dense<0.000000e+00> : vector<8x4xf32>
    %155 = tpu.matmul %154, %141, %cst_65 {dimension_numbers = #tpu.dot_dimension_numbers<[1], [0], [0], [1], [0, 0, 1, 1], [], []>} : vector<8x8xf32>, vector<8x4xf32>, vector<8x4xf32> -> vector<8x4xf32>
    %c0_66 = arith.constant 0 : index
    %c48 = arith.constant 48 : index
    %c0_67 = arith.constant 0 : index
    %156 = vector.load %arg7[%c0_66, %c48, %c0_67] : memref<1x64x4xf32, #tpu.memory_space<vmem>>, vector<1x8x4xf32>
    %157 = vector.shape_cast %156 : vector<1x8x4xf32> to vector<8x4xf32>
    %158 = vector.shape_cast %155 : vector<8x4xf32> to vector<1x8x4xf32>
    tpu.vector_store %arg7[%c0_66, %c48, %c0_67], %158 {strides = array<i32>} : memref<1x64x4xf32, #tpu.memory_space<vmem>>, vector<1x8x4xf32>,
    %159 = vector.extract_strided_slice %18 {offsets = [8, 36], sizes = [8, 4], strides = [1, 1]} : vector<16x48xf32> to vector<8x4xf32>
    %160 = vector.extract_strided_slice %18 {offsets = [8, 40], sizes = [8, 4], strides = [1, 1]} : vector<16x48xf32> to vector<8x4xf32>
    %161 = vector.extract_strided_slice %18 {offsets = [8, 44], sizes = [8, 4], strides = [1, 1]} : vector<16x48xf32> to vector<8x4xf32>
    %cst_68 = arith.constant dense<0.000000e+00> : vector<8x8xf32>
    %162 = tpu.matmul %159, %160, %cst_68 {dimension_numbers = #tpu.dot_dimension_numbers<[1], [1], [0], [0], [0, 0, 1, 0], [], []>} : vector<8x4xf32>, vector<8x4xf32>, vector<8x8xf32> -> vector<8x8xf32>
    %cst_69 = arith.constant 5.000000e-01 : f32
    %163 = vector.broadcast %cst_69 : f32 to vector<8x8xf32>
    %164 = arith.mulf %162, %163 : vector<8x8xf32>
    %cst_70 = arith.constant dense<0xFF800000> : vector<8xf32>
    %165 = vector.multi_reduction <maximumf>, %164, %cst_70 [1] : vector<8x8xf32> to vector<8xf32>
    %166 = vector.shape_cast %165 : vector<8xf32> to vector<8x1xf32>
    %167 = vector.broadcast %166 : vector<8x1xf32> to vector<8x8xf32>
    %168 = arith.subf %164, %167 : vector<8x8xf32>
    %169 = math.exp %168 : vector<8x8xf32>
    %cst_71 = arith.constant dense<0.000000e+00> : vector<8xf32>
    %170 = vector.multi_reduction <add>, %169, %cst_71 [1] : vector<8x8xf32> to vector<8xf32>
    %171 = vector.shape_cast %170 : vector<8xf32> to vector<8x1xf32>
    %172 = tpu.reciprocal %171 {approx = true} : vector<8x1xf32> -> vector<8x1xf32>
    %173 = vector.broadcast %172 : vector<8x1xf32> to vector<8x8xf32>
    %174 = arith.mulf %169, %173 : vector<8x8xf32>
    %cst_72 = arith.constant dense<0.000000e+00> : vector<8x4xf32>
    %175 = tpu.matmul %174, %161, %cst_72 {dimension_numbers = #tpu.dot_dimension_numbers<[1], [0], [0], [1], [0, 0, 1, 1], [], []>} : vector<8x8xf32>, vector<8x4xf32>, vector<8x4xf32> -> vector<8x4xf32>
    %c0_73 = arith.constant 0 : index
    %c56 = arith.constant 56 : index
    %c0_74 = arith.constant 0 : index
    %176 = vector.load %arg7[%c0_73, %c56, %c0_74] : memref<1x64x4xf32, #tpu.memory_space<vmem>>, vector<1x8x4xf32>
    %177 = vector.shape_cast %176 : vector<1x8x4xf32> to vector<8x4xf32>
    %178 = vector.shape_cast %175 : vector<8x4xf32> to vector<1x8x4xf32>
    tpu.vector_store %arg7[%c0_73, %c56, %c0_74], %178 {strides = array<i32>} : memref<1x64x4xf32, #tpu.memory_space<vmem>>, vector<1x8x4xf32>,
    return
  }
  func.func @transform_0(%arg0: i32) -> (i32, i32, i32) {
    %c0_i32 = arith.constant 0 : i32
    %c0_i32_0 = arith.constant 0 : i32
    %c0_i32_1 = arith.constant 0 : i32
    return %arg0, %c0_i32, %c0_i32_0 : i32, i32, i32
  }
  func.func @transform_1(%arg0: i32) -> (i32, i32, i32) {
    %c0_i32 = arith.constant 0 : i32
    %c0_i32_0 = arith.constant 0 : i32
    %c0_i32_1 = arith.constant 0 : i32
    return %arg0, %c0_i32, %c0_i32_0 : i32, i32, i32
  }
  func.func @transform_2(%arg0: i32) -> (i32, i32, i32) {
    %c0_i32 = arith.constant 0 : i32
    %c0_i32_0 = arith.constant 0 : i32
    %c0_i32_1 = arith.constant 0 : i32
    return %arg0, %c0_i32, %c0_i32_0 : i32, i32, i32
  }
  func.func @transform_3(%arg0: i32) -> (i32, i32, i32) {
    %c0_i32 = arith.constant 0 : i32
    %c0_i32_0 = arith.constant 0 : i32
    %c0_i32_1 = arith.constant 0 : i32
    return %arg0, %c0_i32, %c0_i32_0 : i32, i32, i32
  }
  func.func @transform_4(%arg0: i32) -> (i32, i32, i32) {
    %c0_i32 = arith.constant 0 : i32
    %c0_i32_0 = arith.constant 0 : i32
    %c0_i32_1 = arith.constant 0 : i32
    return %arg0, %c0_i32, %c0_i32_0 : i32, i32, i32
  }
  func.func @transform_5(%arg0: i32) -> (i32, i32, i32) {
    %c0_i32 = arith.constant 0 : i32
    %c0_i32_0 = arith.constant 0 : i32
    %c0_i32_1 = arith.constant 0 : i32
    return %arg0, %c0_i32, %c0_i32_0 : i32, i32, i32
  }
  func.func @transform_6(%arg0: i32) -> (i32, i32, i32) {
    %c0_i32 = arith.constant 0 : i32
    %c0_i32_0 = arith.constant 0 : i32
    %c0_i32_1 = arith.constant 0 : i32
    return %arg0, %c0_i32, %c0_i32_0 : i32, i32, i32
  }
}

module attributes {stable_mosaic.version = 11 : i64} {
  func.func @_attn_tail_kernel(%arg0: i32, %arg1: memref<1x16x16xf32, #tpu.memory_space<vmem>>, %arg2: memref<1x16x16xf32, #tpu.memory_space<vmem>>, %arg3: memref<1x16x16xf32, #tpu.memory_space<vmem>>, %arg4: memref<1x1x16xf32, #tpu.memory_space<vmem>>, %arg5: memref<1x1x16xf32, #tpu.memory_space<vmem>>, %arg6: memref<1x1x16xf32, #tpu.memory_space<vmem>>, %arg7: memref<1x16x32xf32, #tpu.memory_space<vmem>>, %arg8: memref<1x1x32xf32, #tpu.memory_space<vmem>>, %arg9: memref<1x32x16xf32, #tpu.memory_space<vmem>>, %arg10: memref<1x1x16xf32, #tpu.memory_space<vmem>>, %arg11: memref<1x1x16xf32, #tpu.memory_space<vmem>>, %arg12: memref<1x1x16xf32, #tpu.memory_space<vmem>>, %arg13: memref<1x16x16xf32, #tpu.memory_space<vmem>>) attributes {dimension_semantics = [#tpu.dimension_semantics<parallel>], iteration_bounds = array<i64: 2>, scalar_prefetch = 0 : i64, scratch_operands = 0 : i64, tpu.core_type = #tpu.core_type<tc>, window_params = [{transform_indices = @transform_0, window_bounds = array<i64: 1, 16, 16>}, {transform_indices = @transform_1, window_bounds = array<i64: 1, 16, 16>}, {transform_indices = @transform_2, window_bounds = array<i64: 1, 16, 16>}, {transform_indices = @transform_3, window_bounds = array<i64: 1, 1, 16>}, {transform_indices = @transform_4, window_bounds = array<i64: 1, 1, 16>}, {transform_indices = @transform_5, window_bounds = array<i64: 1, 1, 16>}, {transform_indices = @transform_6, window_bounds = array<i64: 1, 16, 32>}, {transform_indices = @transform_7, window_bounds = array<i64: 1, 1, 32>}, {transform_indices = @transform_8, window_bounds = array<i64: 1, 32, 16>}, {transform_indices = @transform_9, window_bounds = array<i64: 1, 1, 16>}, {transform_indices = @transform_10, window_bounds = array<i64: 1, 1, 16>}, {transform_indices = @transform_11, window_bounds = array<i64: 1, 1, 16>}, {transform_indices = @transform_12, window_bounds = array<i64: 1, 16, 16>}]} {
    %c0 = arith.constant 0 : index
    %c0_0 = arith.constant 0 : index
    %c0_1 = arith.constant 0 : index
    %0 = vector.load %arg1[%c0, %c0_0, %c0_1] : memref<1x16x16xf32, #tpu.memory_space<vmem>>, vector<1x16x16xf32>
    %1 = vector.shape_cast %0 : vector<1x16x16xf32> to vector<16x16xf32>
    %c0_2 = arith.constant 0 : index
    %c0_3 = arith.constant 0 : index
    %c0_4 = arith.constant 0 : index
    %2 = vector.load %arg3[%c0_2, %c0_3, %c0_4] : memref<1x16x16xf32, #tpu.memory_space<vmem>>, vector<1x16x16xf32>
    %3 = vector.shape_cast %2 : vector<1x16x16xf32> to vector<16x16xf32>
    %cst = arith.constant dense<0.000000e+00> : vector<16x16xf32>
    %4 = tpu.matmul %1, %3, %cst {dimension_numbers = #tpu.dot_dimension_numbers<[1], [0], [0], [1], [0, 0, 1, 1], [], []>} : vector<16x16xf32>, vector<16x16xf32>, vector<16x16xf32> -> vector<16x16xf32>
    %c0_5 = arith.constant 0 : index
    %c0_6 = arith.constant 0 : index
    %c0_7 = arith.constant 0 : index
    %5 = vector.load %arg4[%c0_5, %c0_6, %c0_7] : memref<1x1x16xf32, #tpu.memory_space<vmem>>, vector<1x1x16xf32>
    %6 = vector.shape_cast %5 : vector<1x1x16xf32> to vector<1x16xf32>
    %7 = vector.broadcast %6 : vector<1x16xf32> to vector<16x16xf32>
    %8 = arith.addf %4, %7 : vector<16x16xf32>
    %c0_8 = arith.constant 0 : index
    %c0_9 = arith.constant 0 : index
    %c0_10 = arith.constant 0 : index
    %9 = vector.load %arg2[%c0_8, %c0_9, %c0_10] : memref<1x16x16xf32, #tpu.memory_space<vmem>>, vector<1x16x16xf32>
    %10 = vector.shape_cast %9 : vector<1x16x16xf32> to vector<16x16xf32>
    %11 = arith.addf %8, %10 : vector<16x16xf32>
    %c0_11 = arith.constant 0 : index
    %c0_12 = arith.constant 0 : index
    %c0_13 = arith.constant 0 : index
    %12 = vector.load %arg5[%c0_11, %c0_12, %c0_13] : memref<1x1x16xf32, #tpu.memory_space<vmem>>, vector<1x1x16xf32>
    %13 = vector.shape_cast %12 : vector<1x1x16xf32> to vector<1x16xf32>
    %c0_14 = arith.constant 0 : index
    %c0_15 = arith.constant 0 : index
    %c0_16 = arith.constant 0 : index
    %14 = vector.load %arg6[%c0_14, %c0_15, %c0_16] : memref<1x1x16xf32, #tpu.memory_space<vmem>>, vector<1x1x16xf32>
    %15 = vector.shape_cast %14 : vector<1x1x16xf32> to vector<1x16xf32>
    %cst_17 = arith.constant dense<0.000000e+00> : vector<16xf32>
    %16 = vector.multi_reduction <add>, %11, %cst_17 [1] : vector<16x16xf32> to vector<16xf32>
    %17 = vector.shape_cast %16 : vector<16xf32> to vector<16x1xf32>
    %cst_18 = arith.constant 1.600000e+01 : f32
    %18 = vector.broadcast %cst_18 : f32 to vector<16x1xf32>
    %19 = arith.divf %17, %18 : vector<16x1xf32>
    %20 = vector.broadcast %19 : vector<16x1xf32> to vector<16x16xf32>
    %21 = arith.subf %11, %20 : vector<16x16xf32>
    %22 = arith.mulf %21, %21 : vector<16x16xf32>
    %cst_19 = arith.constant dense<0.000000e+00> : vector<16xf32>
    %23 = vector.multi_reduction <add>, %22, %cst_19 [1] : vector<16x16xf32> to vector<16xf32>
    %24 = vector.shape_cast %23 : vector<16xf32> to vector<16x1xf32>
    %cst_20 = arith.constant 1.600000e+01 : f32
    %25 = vector.broadcast %cst_20 : f32 to vector<16x1xf32>
    %26 = arith.divf %24, %25 : vector<16x1xf32>
    %cst_21 = arith.constant 9.99999974E-6 : f32
    %27 = vector.broadcast %cst_21 : f32 to vector<16x1xf32>
    %28 = arith.addf %26, %27 : vector<16x1xf32>
    %29 = math.rsqrt %28 : vector<16x1xf32>
    %30 = vector.broadcast %29 : vector<16x1xf32> to vector<16x16xf32>
    %31 = arith.mulf %21, %30 : vector<16x16xf32>
    %32 = vector.broadcast %13 : vector<1x16xf32> to vector<16x16xf32>
    %33 = arith.mulf %32, %31 : vector<16x16xf32>
    %34 = vector.broadcast %15 : vector<1x16xf32> to vector<16x16xf32>
    %35 = arith.addf %33, %34 : vector<16x16xf32>
    %c0_22 = arith.constant 0 : index
    %c0_23 = arith.constant 0 : index
    %c0_24 = arith.constant 0 : index
    %36 = vector.load %arg7[%c0_22, %c0_23, %c0_24] : memref<1x16x32xf32, #tpu.memory_space<vmem>>, vector<1x16x32xf32>
    %37 = vector.shape_cast %36 : vector<1x16x32xf32> to vector<16x32xf32>
    %cst_25 = arith.constant dense<0.000000e+00> : vector<16x32xf32>
    %38 = tpu.matmul %35, %37, %cst_25 {dimension_numbers = #tpu.dot_dimension_numbers<[1], [0], [0], [1], [0, 0, 1, 1], [], []>} : vector<16x16xf32>, vector<16x32xf32>, vector<16x32xf32> -> vector<16x32xf32>
    %c0_26 = arith.constant 0 : index
    %c0_27 = arith.constant 0 : index
    %c0_28 = arith.constant 0 : index
    %39 = vector.load %arg8[%c0_26, %c0_27, %c0_28] : memref<1x1x32xf32, #tpu.memory_space<vmem>>, vector<1x1x32xf32>
    %40 = vector.shape_cast %39 : vector<1x1x32xf32> to vector<1x32xf32>
    %41 = vector.broadcast %40 : vector<1x32xf32> to vector<16x32xf32>
    %42 = arith.addf %38, %41 : vector<16x32xf32>
    %cst_29 = arith.constant 0.000000e+00 : f32
    %43 = vector.broadcast %cst_29 : f32 to vector<16x32xf32>
    %44 = arith.maximumf %42, %43 : vector<16x32xf32>
    %c0_30 = arith.constant 0 : index
    %c0_31 = arith.constant 0 : index
    %c0_32 = arith.constant 0 : index
    %45 = vector.load %arg9[%c0_30, %c0_31, %c0_32] : memref<1x32x16xf32, #tpu.memory_space<vmem>>, vector<1x32x16xf32>
    %46 = vector.shape_cast %45 : vector<1x32x16xf32> to vector<32x16xf32>
    %cst_33 = arith.constant dense<0.000000e+00> : vector<16x16xf32>
    %47 = tpu.matmul %44, %46, %cst_33 {dimension_numbers = #tpu.dot_dimension_numbers<[1], [0], [0], [1], [0, 0, 1, 1], [], []>} : vector<16x32xf32>, vector<32x16xf32>, vector<16x16xf32> -> vector<16x16xf32>
    %c0_34 = arith.constant 0 : index
    %c0_35 = arith.constant 0 : index
    %c0_36 = arith.constant 0 : index
    %48 = vector.load %arg10[%c0_34, %c0_35, %c0_36] : memref<1x1x16xf32, #tpu.memory_space<vmem>>, vector<1x1x16xf32>
    %49 = vector.shape_cast %48 : vector<1x1x16xf32> to vector<1x16xf32>
    %50 = vector.broadcast %49 : vector<1x16xf32> to vector<16x16xf32>
    %51 = arith.addf %47, %50 : vector<16x16xf32>
    %52 = arith.addf %51, %35 : vector<16x16xf32>
    %c0_37 = arith.constant 0 : index
    %c0_38 = arith.constant 0 : index
    %c0_39 = arith.constant 0 : index
    %53 = vector.load %arg11[%c0_37, %c0_38, %c0_39] : memref<1x1x16xf32, #tpu.memory_space<vmem>>, vector<1x1x16xf32>
    %54 = vector.shape_cast %53 : vector<1x1x16xf32> to vector<1x16xf32>
    %c0_40 = arith.constant 0 : index
    %c0_41 = arith.constant 0 : index
    %c0_42 = arith.constant 0 : index
    %55 = vector.load %arg12[%c0_40, %c0_41, %c0_42] : memref<1x1x16xf32, #tpu.memory_space<vmem>>, vector<1x1x16xf32>
    %56 = vector.shape_cast %55 : vector<1x1x16xf32> to vector<1x16xf32>
    %cst_43 = arith.constant dense<0.000000e+00> : vector<16xf32>
    %57 = vector.multi_reduction <add>, %52, %cst_43 [1] : vector<16x16xf32> to vector<16xf32>
    %58 = vector.shape_cast %57 : vector<16xf32> to vector<16x1xf32>
    %cst_44 = arith.constant 1.600000e+01 : f32
    %59 = vector.broadcast %cst_44 : f32 to vector<16x1xf32>
    %60 = arith.divf %58, %59 : vector<16x1xf32>
    %61 = vector.broadcast %60 : vector<16x1xf32> to vector<16x16xf32>
    %62 = arith.subf %52, %61 : vector<16x16xf32>
    %63 = arith.mulf %62, %62 : vector<16x16xf32>
    %cst_45 = arith.constant dense<0.000000e+00> : vector<16xf32>
    %64 = vector.multi_reduction <add>, %63, %cst_45 [1] : vector<16x16xf32> to vector<16xf32>
    %65 = vector.shape_cast %64 : vector<16xf32> to vector<16x1xf32>
    %cst_46 = arith.constant 1.600000e+01 : f32
    %66 = vector.broadcast %cst_46 : f32 to vector<16x1xf32>
    %67 = arith.divf %65, %66 : vector<16x1xf32>
    %cst_47 = arith.constant 9.99999974E-6 : f32
    %68 = vector.broadcast %cst_47 : f32 to vector<16x1xf32>
    %69 = arith.addf %67, %68 : vector<16x1xf32>
    %70 = math.rsqrt %69 : vector<16x1xf32>
    %71 = vector.broadcast %70 : vector<16x1xf32> to vector<16x16xf32>
    %72 = arith.mulf %62, %71 : vector<16x16xf32>
    %73 = vector.broadcast %54 : vector<1x16xf32> to vector<16x16xf32>
    %74 = arith.mulf %73, %72 : vector<16x16xf32>
    %75 = vector.broadcast %56 : vector<1x16xf32> to vector<16x16xf32>
    %76 = arith.addf %74, %75 : vector<16x16xf32>
    %c0_48 = arith.constant 0 : index
    %c0_49 = arith.constant 0 : index
    %c0_50 = arith.constant 0 : index
    %77 = vector.load %arg13[%c0_48, %c0_49, %c0_50] : memref<1x16x16xf32, #tpu.memory_space<vmem>>, vector<1x16x16xf32>
    %78 = vector.shape_cast %77 : vector<1x16x16xf32> to vector<16x16xf32>
    %79 = vector.shape_cast %76 : vector<16x16xf32> to vector<1x16x16xf32>
    tpu.vector_store %arg13[%c0_48, %c0_49, %c0_50], %79 {strides = array<i32>} : memref<1x16x16xf32, #tpu.memory_space<vmem>>, vector<1x16x16xf32>,
    return
  }
  func.func @transform_0(%arg0: i32) -> (i32, i32, i32) {
    %c0_i32 = arith.constant 0 : i32
    %c0_i32_0 = arith.constant 0 : i32
    %c0_i32_1 = arith.constant 0 : i32
    return %arg0, %c0_i32, %c0_i32_0 : i32, i32, i32
  }
  func.func @transform_1(%arg0: i32) -> (i32, i32, i32) {
    %c0_i32 = arith.constant 0 : i32
    %c0_i32_0 = arith.constant 0 : i32
    %c0_i32_1 = arith.constant 0 : i32
    return %arg0, %c0_i32, %c0_i32_0 : i32, i32, i32
  }
  func.func @transform_2(%arg0: i32) -> (i32, i32, i32) {
    %c0_i32 = arith.constant 0 : i32
    %c0_i32_0 = arith.constant 0 : i32
    %c0_i32_1 = arith.constant 0 : i32
    return %arg0, %c0_i32, %c0_i32_0 : i32, i32, i32
  }
  func.func @transform_3(%arg0: i32) -> (i32, i32, i32) {
    %c0_i32 = arith.constant 0 : i32
    %c0_i32_0 = arith.constant 0 : i32
    %c0_i32_1 = arith.constant 0 : i32
    return %arg0, %c0_i32, %c0_i32_0 : i32, i32, i32
  }
  func.func @transform_4(%arg0: i32) -> (i32, i32, i32) {
    %c0_i32 = arith.constant 0 : i32
    %c0_i32_0 = arith.constant 0 : i32
    %c0_i32_1 = arith.constant 0 : i32
    return %arg0, %c0_i32, %c0_i32_0 : i32, i32, i32
  }
  func.func @transform_5(%arg0: i32) -> (i32, i32, i32) {
    %c0_i32 = arith.constant 0 : i32
    %c0_i32_0 = arith.constant 0 : i32
    %c0_i32_1 = arith.constant 0 : i32
    return %arg0, %c0_i32, %c0_i32_0 : i32, i32, i32
  }
  func.func @transform_6(%arg0: i32) -> (i32, i32, i32) {
    %c0_i32 = arith.constant 0 : i32
    %c0_i32_0 = arith.constant 0 : i32
    %c0_i32_1 = arith.constant 0 : i32
    return %arg0, %c0_i32, %c0_i32_0 : i32, i32, i32
  }
  func.func @transform_7(%arg0: i32) -> (i32, i32, i32) {
    %c0_i32 = arith.constant 0 : i32
    %c0_i32_0 = arith.constant 0 : i32
    %c0_i32_1 = arith.constant 0 : i32
    return %arg0, %c0_i32, %c0_i32_0 : i32, i32, i32
  }
  func.func @transform_8(%arg0: i32) -> (i32, i32, i32) {
    %c0_i32 = arith.constant 0 : i32
    %c0_i32_0 = arith.constant 0 : i32
    %c0_i32_1 = arith.constant 0 : i32
    return %arg0, %c0_i32, %c0_i32_0 : i32, i32, i32
  }
  func.func @transform_9(%arg0: i32) -> (i32, i32, i32) {
    %c0_i32 = arith.constant 0 : i32
    %c0_i32_0 = arith.constant 0 : i32
    %c0_i32_1 = arith.constant 0 : i32
    return %arg0, %c0_i32, %c0_i32_0 : i32, i32, i32
  }
  func.func @transform_10(%arg0: i32) -> (i32, i32, i32) {
    %c0_i32 = arith.constant 0 : i32
    %c0_i32_0 = arith.constant 0 : i32
    %c0_i32_1 = arith.constant 0 : i32
    return %arg0, %c0_i32, %c0_i32_0 : i32, i32, i32
  }
  func.func @transform_11(%arg0: i32) -> (i32, i32, i32) {
    %c0_i32 = arith.constant 0 : i32
    %c0_i32_0 = arith.constant 0 : i32
    %c0_i32_1 = arith.constant 0 : i32
    return %arg0, %c0_i32, %c0_i32_0 : i32, i32, i32
  }
  func.func @transform_12(%arg0: i32) -> (i32, i32, i32) {
    %c0_i32 = arith.constant 0 : i32
    %c0_i32_0 = arith.constant 0 : i32
    %c0_i32_1 = arith.constant 0 : i32
    return %arg0, %c0_i32, %c0_i32_0 : i32, i32, i32
  }
}

module attributes {stable_mosaic.version = 11 : i64} {
  func.func @_self_attn_front_kernel(%arg0: i32, %arg1: memref<1x16x8xf32, #tpu.memory_space<vmem>>, %arg2: memref<1x8x32xf32, #tpu.memory_space<vmem>>, %arg3: memref<1x1x32xf32, #tpu.memory_space<vmem>>, %arg4: memref<1x32x96xf32, #tpu.memory_space<vmem>>, %arg5: memref<1x1x96xf32, #tpu.memory_space<vmem>>, %arg6: memref<1x16x32xf32, #tpu.memory_space<vmem>>, %arg7: memref<1x64x8xf32, #tpu.memory_space<vmem>>) attributes {dimension_semantics = [#tpu.dimension_semantics<parallel>], iteration_bounds = array<i64: 1>, scalar_prefetch = 0 : i64, scratch_operands = 0 : i64, tpu.core_type = #tpu.core_type<tc>, window_params = [{transform_indices = @transform_0, window_bounds = array<i64: 1, 16, 8>}, {transform_indices = @transform_1, window_bounds = array<i64: 1, 8, 32>}, {transform_indices = @transform_2, window_bounds = array<i64: 1, 1, 32>}, {transform_indices = @transform_3, window_bounds = array<i64: 1, 32, 96>}, {transform_indices = @transform_4, window_bounds = array<i64: 1, 1, 96>}, {transform_indices = @transform_5, window_bounds = array<i64: 1, 16, 32>}, {transform_indices = @transform_6, window_bounds = array<i64: 1, 64, 8>}]} {
    %c0 = arith.constant 0 : index
    %c0_0 = arith.constant 0 : index
    %c0_1 = arith.constant 0 : index
    %0 = vector.load %arg1[%c0, %c0_0, %c0_1] : memref<1x16x8xf32, #tpu.memory_space<vmem>>, vector<1x16x8xf32>
    %1 = vector.shape_cast %0 : vector<1x16x8xf32> to vector<16x8xf32>
    %c0_2 = arith.constant 0 : index
    %c0_3 = arith.constant 0 : index
    %c0_4 = arith.constant 0 : index
    %2 = vector.load %arg2[%c0_2, %c0_3, %c0_4] : memref<1x8x32xf32, #tpu.memory_space<vmem>>, vector<1x8x32xf32>
    %3 = vector.shape_cast %2 : vector<1x8x32xf32> to vector<8x32xf32>
    %cst = arith.constant dense<0.000000e+00> : vector<16x32xf32>
    %4 = tpu.matmul %1, %3, %cst {dimension_numbers = #tpu.dot_dimension_numbers<[1], [0], [0], [1], [0, 0, 1, 1], [], []>} : vector<16x8xf32>, vector<8x32xf32>, vector<16x32xf32> -> vector<16x32xf32>
    %c0_5 = arith.constant 0 : index
    %c0_6 = arith.constant 0 : index
    %c0_7 = arith.constant 0 : index
    %5 = vector.load %arg3[%c0_5, %c0_6, %c0_7] : memref<1x1x32xf32, #tpu.memory_space<vmem>>, vector<1x1x32xf32>
    %6 = vector.shape_cast %5 : vector<1x1x32xf32> to vector<1x32xf32>
    %7 = vector.broadcast %6 : vector<1x32xf32> to vector<16x32xf32>
    %8 = arith.addf %4, %7 : vector<16x32xf32>
    %c0_8 = arith.constant 0 : index
    %c0_9 = arith.constant 0 : index
    %c0_10 = arith.constant 0 : index
    %9 = vector.load %arg6[%c0_8, %c0_9, %c0_10] : memref<1x16x32xf32, #tpu.memory_space<vmem>>, vector<1x16x32xf32>
    %10 = vector.shape_cast %9 : vector<1x16x32xf32> to vector<16x32xf32>
    %11 = vector.shape_cast %8 : vector<16x32xf32> to vector<1x16x32xf32>
    tpu.vector_store %arg6[%c0_8, %c0_9, %c0_10], %11 {strides = array<i32>} : memref<1x16x32xf32, #tpu.memory_space<vmem>>, vector<1x16x32xf32>,
    %c0_11 = arith.constant 0 : index
    %c0_12 = arith.constant 0 : index
    %c0_13 = arith.constant 0 : index
    %12 = vector.load %arg4[%c0_11, %c0_12, %c0_13] : memref<1x32x96xf32, #tpu.memory_space<vmem>>, vector<1x32x96xf32>
    %13 = vector.shape_cast %12 : vector<1x32x96xf32> to vector<32x96xf32>
    %cst_14 = arith.constant dense<0.000000e+00> : vector<16x96xf32>
    %14 = tpu.matmul %8, %13, %cst_14 {dimension_numbers = #tpu.dot_dimension_numbers<[1], [0], [0], [1], [0, 0, 1, 1], [], []>} : vector<16x32xf32>, vector<32x96xf32>, vector<16x96xf32> -> vector<16x96xf32>
    %c0_15 = arith.constant 0 : index
    %c0_16 = arith.constant 0 : index
    %c0_17 = arith.constant 0 : index
    %15 = vector.load %arg5[%c0_15, %c0_16, %c0_17] : memref<1x1x96xf32, #tpu.memory_space<vmem>>, vector<1x1x96xf32>
    %16 = vector.shape_cast %15 : vector<1x1x96xf32> to vector<1x96xf32>
    %17 = vector.broadcast %16 : vector<1x96xf32> to vector<16x96xf32>
    %18 = arith.addf %14, %17 : vector<16x96xf32>
    %19 = vector.extract_strided_slice %18 {offsets = [0, 0], sizes = [8, 8], strides = [1, 1]} : vector<16x96xf32> to vector<8x8xf32>
    %20 = vector.extract_strided_slice %18 {offsets = [0, 8], sizes = [8, 8], strides = [1, 1]} : vector<16x96xf32> to vector<8x8xf32>
    %21 = vector.extract_strided_slice %18 {offsets = [0, 16], sizes = [8, 8], strides = [1, 1]} : vector<16x96xf32> to vector<8x8xf32>
    %cst_18 = arith.constant dense<0.000000e+00> : vector<8x8xf32>
    %22 = tpu.matmul %19, %20, %cst_18 {dimension_numbers = #tpu.dot_dimension_numbers<[1], [1], [0], [0], [0, 0, 1, 0], [], []>} : vector<8x8xf32>, vector<8x8xf32>, vector<8x8xf32> -> vector<8x8xf32>
    %cst_19 = arith.constant 0.353553385 : f32
    %23 = vector.broadcast %cst_19 : f32 to vector<8x8xf32>
    %24 = arith.mulf %22, %23 : vector<8x8xf32>
    %cst_20 = arith.constant dense<0xFF800000> : vector<8xf32>
    %25 = vector.multi_reduction <maximumf>, %24, %cst_20 [1] : vector<8x8xf32> to vector<8xf32>
    %26 = vector.shape_cast %25 : vector<8xf32> to vector<8x1xf32>
    %27 = vector.broadcast %26 : vector<8x1xf32> to vector<8x8xf32>
    %28 = arith.subf %24, %27 : vector<8x8xf32>
    %29 = math.exp %28 : vector<8x8xf32>
    %cst_21 = arith.constant dense<0.000000e+00> : vector<8xf32>
    %30 = vector.multi_reduction <add>, %29, %cst_21 [1] : vector<8x8xf32> to vector<8xf32>
    %31 = vector.shape_cast %30 : vector<8xf32> to vector<8x1xf32>
    %32 = tpu.reciprocal %31 {approx = true} : vector<8x1xf32> -> vector<8x1xf32>
    %33 = vector.broadcast %32 : vector<8x1xf32> to vector<8x8xf32>
    %34 = arith.mulf %29, %33 : vector<8x8xf32>
    %cst_22 = arith.constant dense<0.000000e+00> : vector<8x8xf32>
    %35 = tpu.matmul %34, %21, %cst_22 {dimension_numbers = #tpu.dot_dimension_numbers<[1], [0], [0], [1], [0, 0, 1, 1], [], []>} : vector<8x8xf32>, vector<8x8xf32>, vector<8x8xf32> -> vector<8x8xf32>
    %c0_23 = arith.constant 0 : index
    %c0_24 = arith.constant 0 : index
    %c0_25 = arith.constant 0 : index
    %36 = vector.load %arg7[%c0_23, %c0_24, %c0_25] : memref<1x64x8xf32, #tpu.memory_space<vmem>>, vector<1x8x8xf32>
    %37 = vector.shape_cast %36 : vector<1x8x8xf32> to vector<8x8xf32>
    %38 = vector.shape_cast %35 : vector<8x8xf32> to vector<1x8x8xf32>
    tpu.vector_store %arg7[%c0_23, %c0_24, %c0_25], %38 {strides = array<i32>} : memref<1x64x8xf32, #tpu.memory_space<vmem>>, vector<1x8x8xf32>,
    %39 = vector.extract_strided_slice %18 {offsets = [0, 24], sizes = [8, 8], strides = [1, 1]} : vector<16x96xf32> to vector<8x8xf32>
    %40 = vector.extract_strided_slice %18 {offsets = [0, 32], sizes = [8, 8], strides = [1, 1]} : vector<16x96xf32> to vector<8x8xf32>
    %41 = vector.extract_strided_slice %18 {offsets = [0, 40], sizes = [8, 8], strides = [1, 1]} : vector<16x96xf32> to vector<8x8xf32>
    %cst_26 = arith.constant dense<0.000000e+00> : vector<8x8xf32>
    %42 = tpu.matmul %39, %40, %cst_26 {dimension_numbers = #tpu.dot_dimension_numbers<[1], [1], [0], [0], [0, 0, 1, 0], [], []>} : vector<8x8xf32>, vector<8x8xf32>, vector<8x8xf32> -> vector<8x8xf32>
    %cst_27 = arith.constant 0.353553385 : f32
    %43 = vector.broadcast %cst_27 : f32 to vector<8x8xf32>
    %44 = arith.mulf %42, %43 : vector<8x8xf32>
    %cst_28 = arith.constant dense<0xFF800000> : vector<8xf32>
    %45 = vector.multi_reduction <maximumf>, %44, %cst_28 [1] : vector<8x8xf32> to vector<8xf32>
    %46 = vector.shape_cast %45 : vector<8xf32> to vector<8x1xf32>
    %47 = vector.broadcast %46 : vector<8x1xf32> to vector<8x8xf32>
    %48 = arith.subf %44, %47 : vector<8x8xf32>
    %49 = math.exp %48 : vector<8x8xf32>
    %cst_29 = arith.constant dense<0.000000e+00> : vector<8xf32>
    %50 = vector.multi_reduction <add>, %49, %cst_29 [1] : vector<8x8xf32> to vector<8xf32>
    %51 = vector.shape_cast %50 : vector<8xf32> to vector<8x1xf32>
    %52 = tpu.reciprocal %51 {approx = true} : vector<8x1xf32> -> vector<8x1xf32>
    %53 = vector.broadcast %52 : vector<8x1xf32> to vector<8x8xf32>
    %54 = arith.mulf %49, %53 : vector<8x8xf32>
    %cst_30 = arith.constant dense<0.000000e+00> : vector<8x8xf32>
    %55 = tpu.matmul %54, %41, %cst_30 {dimension_numbers = #tpu.dot_dimension_numbers<[1], [0], [0], [1], [0, 0, 1, 1], [], []>} : vector<8x8xf32>, vector<8x8xf32>, vector<8x8xf32> -> vector<8x8xf32>
    %c0_31 = arith.constant 0 : index
    %c8 = arith.constant 8 : index
    %c0_32 = arith.constant 0 : index
    %56 = vector.load %arg7[%c0_31, %c8, %c0_32] : memref<1x64x8xf32, #tpu.memory_space<vmem>>, vector<1x8x8xf32>
    %57 = vector.shape_cast %56 : vector<1x8x8xf32> to vector<8x8xf32>
    %58 = vector.shape_cast %55 : vector<8x8xf32> to vector<1x8x8xf32>
    tpu.vector_store %arg7[%c0_31, %c8, %c0_32], %58 {strides = array<i32>} : memref<1x64x8xf32, #tpu.memory_space<vmem>>, vector<1x8x8xf32>,
    %59 = vector.extract_strided_slice %18 {offsets = [0, 48], sizes = [8, 8], strides = [1, 1]} : vector<16x96xf32> to vector<8x8xf32>
    %60 = vector.extract_strided_slice %18 {offsets = [0, 56], sizes = [8, 8], strides = [1, 1]} : vector<16x96xf32> to vector<8x8xf32>
    %61 = vector.extract_strided_slice %18 {offsets = [0, 64], sizes = [8, 8], strides = [1, 1]} : vector<16x96xf32> to vector<8x8xf32>
    %cst_33 = arith.constant dense<0.000000e+00> : vector<8x8xf32>
    %62 = tpu.matmul %59, %60, %cst_33 {dimension_numbers = #tpu.dot_dimension_numbers<[1], [1], [0], [0], [0, 0, 1, 0], [], []>} : vector<8x8xf32>, vector<8x8xf32>, vector<8x8xf32> -> vector<8x8xf32>
    %cst_34 = arith.constant 0.353553385 : f32
    %63 = vector.broadcast %cst_34 : f32 to vector<8x8xf32>
    %64 = arith.mulf %62, %63 : vector<8x8xf32>
    %cst_35 = arith.constant dense<0xFF800000> : vector<8xf32>
    %65 = vector.multi_reduction <maximumf>, %64, %cst_35 [1] : vector<8x8xf32> to vector<8xf32>
    %66 = vector.shape_cast %65 : vector<8xf32> to vector<8x1xf32>
    %67 = vector.broadcast %66 : vector<8x1xf32> to vector<8x8xf32>
    %68 = arith.subf %64, %67 : vector<8x8xf32>
    %69 = math.exp %68 : vector<8x8xf32>
    %cst_36 = arith.constant dense<0.000000e+00> : vector<8xf32>
    %70 = vector.multi_reduction <add>, %69, %cst_36 [1] : vector<8x8xf32> to vector<8xf32>
    %71 = vector.shape_cast %70 : vector<8xf32> to vector<8x1xf32>
    %72 = tpu.reciprocal %71 {approx = true} : vector<8x1xf32> -> vector<8x1xf32>
    %73 = vector.broadcast %72 : vector<8x1xf32> to vector<8x8xf32>
    %74 = arith.mulf %69, %73 : vector<8x8xf32>
    %cst_37 = arith.constant dense<0.000000e+00> : vector<8x8xf32>
    %75 = tpu.matmul %74, %61, %cst_37 {dimension_numbers = #tpu.dot_dimension_numbers<[1], [0], [0], [1], [0, 0, 1, 1], [], []>} : vector<8x8xf32>, vector<8x8xf32>, vector<8x8xf32> -> vector<8x8xf32>
    %c0_38 = arith.constant 0 : index
    %c16 = arith.constant 16 : index
    %c0_39 = arith.constant 0 : index
    %76 = vector.load %arg7[%c0_38, %c16, %c0_39] : memref<1x64x8xf32, #tpu.memory_space<vmem>>, vector<1x8x8xf32>
    %77 = vector.shape_cast %76 : vector<1x8x8xf32> to vector<8x8xf32>
    %78 = vector.shape_cast %75 : vector<8x8xf32> to vector<1x8x8xf32>
    tpu.vector_store %arg7[%c0_38, %c16, %c0_39], %78 {strides = array<i32>} : memref<1x64x8xf32, #tpu.memory_space<vmem>>, vector<1x8x8xf32>,
    %79 = vector.extract_strided_slice %18 {offsets = [0, 72], sizes = [8, 8], strides = [1, 1]} : vector<16x96xf32> to vector<8x8xf32>
    %80 = vector.extract_strided_slice %18 {offsets = [0, 80], sizes = [8, 8], strides = [1, 1]} : vector<16x96xf32> to vector<8x8xf32>
    %81 = vector.extract_strided_slice %18 {offsets = [0, 88], sizes = [8, 8], strides = [1, 1]} : vector<16x96xf32> to vector<8x8xf32>
    %cst_40 = arith.constant dense<0.000000e+00> : vector<8x8xf32>
    %82 = tpu.matmul %79, %80, %cst_40 {dimension_numbers = #tpu.dot_dimension_numbers<[1], [1], [0], [0], [0, 0, 1, 0], [], []>} : vector<8x8xf32>, vector<8x8xf32>, vector<8x8xf32> -> vector<8x8xf32>
    %cst_41 = arith.constant 0.353553385 : f32
    %83 = vector.broadcast %cst_41 : f32 to vector<8x8xf32>
    %84 = arith.mulf %82, %83 : vector<8x8xf32>
    %cst_42 = arith.constant dense<0xFF800000> : vector<8xf32>
    %85 = vector.multi_reduction <maximumf>, %84, %cst_42 [1] : vector<8x8xf32> to vector<8xf32>
    %86 = vector.shape_cast %85 : vector<8xf32> to vector<8x1xf32>
    %87 = vector.broadcast %86 : vector<8x1xf32> to vector<8x8xf32>
    %88 = arith.subf %84, %87 : vector<8x8xf32>
    %89 = math.exp %88 : vector<8x8xf32>
    %cst_43 = arith.constant dense<0.000000e+00> : vector<8xf32>
    %90 = vector.multi_reduction <add>, %89, %cst_43 [1] : vector<8x8xf32> to vector<8xf32>
    %91 = vector.shape_cast %90 : vector<8xf32> to vector<8x1xf32>
    %92 = tpu.reciprocal %91 {approx = true} : vector<8x1xf32> -> vector<8x1xf32>
    %93 = vector.broadcast %92 : vector<8x1xf32> to vector<8x8xf32>
    %94 = arith.mulf %89, %93 : vector<8x8xf32>
    %cst_44 = arith.constant dense<0.000000e+00> : vector<8x8xf32>
    %95 = tpu.matmul %94, %81, %cst_44 {dimension_numbers = #tpu.dot_dimension_numbers<[1], [0], [0], [1], [0, 0, 1, 1], [], []>} : vector<8x8xf32>, vector<8x8xf32>, vector<8x8xf32> -> vector<8x8xf32>
    %c0_45 = arith.constant 0 : index
    %c24 = arith.constant 24 : index
    %c0_46 = arith.constant 0 : index
    %96 = vector.load %arg7[%c0_45, %c24, %c0_46] : memref<1x64x8xf32, #tpu.memory_space<vmem>>, vector<1x8x8xf32>
    %97 = vector.shape_cast %96 : vector<1x8x8xf32> to vector<8x8xf32>
    %98 = vector.shape_cast %95 : vector<8x8xf32> to vector<1x8x8xf32>
    tpu.vector_store %arg7[%c0_45, %c24, %c0_46], %98 {strides = array<i32>} : memref<1x64x8xf32, #tpu.memory_space<vmem>>, vector<1x8x8xf32>,
    %99 = vector.extract_strided_slice %18 {offsets = [8, 0], sizes = [8, 8], strides = [1, 1]} : vector<16x96xf32> to vector<8x8xf32>
    %100 = vector.extract_strided_slice %18 {offsets = [8, 8], sizes = [8, 8], strides = [1, 1]} : vector<16x96xf32> to vector<8x8xf32>
    %101 = vector.extract_strided_slice %18 {offsets = [8, 16], sizes = [8, 8], strides = [1, 1]} : vector<16x96xf32> to vector<8x8xf32>
    %cst_47 = arith.constant dense<0.000000e+00> : vector<8x8xf32>
    %102 = tpu.matmul %99, %100, %cst_47 {dimension_numbers = #tpu.dot_dimension_numbers<[1], [1], [0], [0], [0, 0, 1, 0], [], []>} : vector<8x8xf32>, vector<8x8xf32>, vector<8x8xf32> -> vector<8x8xf32>
    %cst_48 = arith.constant 0.353553385 : f32
    %103 = vector.broadcast %cst_48 : f32 to vector<8x8xf32>
    %104 = arith.mulf %102, %103 : vector<8x8xf32>
    %cst_49 = arith.constant dense<0xFF800000> : vector<8xf32>
    %105 = vector.multi_reduction <maximumf>, %104, %cst_49 [1] : vector<8x8xf32> to vector<8xf32>
    %106 = vector.shape_cast %105 : vector<8xf32> to vector<8x1xf32>
    %107 = vector.broadcast %106 : vector<8x1xf32> to vector<8x8xf32>
    %108 = arith.subf %104, %107 : vector<8x8xf32>
    %109 = math.exp %108 : vector<8x8xf32>
    %cst_50 = arith.constant dense<0.000000e+00> : vector<8xf32>
    %110 = vector.multi_reduction <add>, %109, %cst_50 [1] : vector<8x8xf32> to vector<8xf32>
    %111 = vector.shape_cast %110 : vector<8xf32> to vector<8x1xf32>
    %112 = tpu.reciprocal %111 {approx = true} : vector<8x1xf32> -> vector<8x1xf32>
    %113 = vector.broadcast %112 : vector<8x1xf32> to vector<8x8xf32>
    %114 = arith.mulf %109, %113 : vector<8x8xf32>
    %cst_51 = arith.constant dense<0.000000e+00> : vector<8x8xf32>
    %115 = tpu.matmul %114, %101, %cst_51 {dimension_numbers = #tpu.dot_dimension_numbers<[1], [0], [0], [1], [0, 0, 1, 1], [], []>} : vector<8x8xf32>, vector<8x8xf32>, vector<8x8xf32> -> vector<8x8xf32>
    %c0_52 = arith.constant 0 : index
    %c32 = arith.constant 32 : index
    %c0_53 = arith.constant 0 : index
    %116 = vector.load %arg7[%c0_52, %c32, %c0_53] : memref<1x64x8xf32, #tpu.memory_space<vmem>>, vector<1x8x8xf32>
    %117 = vector.shape_cast %116 : vector<1x8x8xf32> to vector<8x8xf32>
    %118 = vector.shape_cast %115 : vector<8x8xf32> to vector<1x8x8xf32>
    tpu.vector_store %arg7[%c0_52, %c32, %c0_53], %118 {strides = array<i32>} : memref<1x64x8xf32, #tpu.memory_space<vmem>>, vector<1x8x8xf32>,
    %119 = vector.extract_strided_slice %18 {offsets = [8, 24], sizes = [8, 8], strides = [1, 1]} : vector<16x96xf32> to vector<8x8xf32>
    %120 = vector.extract_strided_slice %18 {offsets = [8, 32], sizes = [8, 8], strides = [1, 1]} : vector<16x96xf32> to vector<8x8xf32>
    %121 = vector.extract_strided_slice %18 {offsets = [8, 40], sizes = [8, 8], strides = [1, 1]} : vector<16x96xf32> to vector<8x8xf32>
    %cst_54 = arith.constant dense<0.000000e+00> : vector<8x8xf32>
    %122 = tpu.matmul %119, %120, %cst_54 {dimension_numbers = #tpu.dot_dimension_numbers<[1], [1], [0], [0], [0, 0, 1, 0], [], []>} : vector<8x8xf32>, vector<8x8xf32>, vector<8x8xf32> -> vector<8x8xf32>
    %cst_55 = arith.constant 0.353553385 : f32
    %123 = vector.broadcast %cst_55 : f32 to vector<8x8xf32>
    %124 = arith.mulf %122, %123 : vector<8x8xf32>
    %cst_56 = arith.constant dense<0xFF800000> : vector<8xf32>
    %125 = vector.multi_reduction <maximumf>, %124, %cst_56 [1] : vector<8x8xf32> to vector<8xf32>
    %126 = vector.shape_cast %125 : vector<8xf32> to vector<8x1xf32>
    %127 = vector.broadcast %126 : vector<8x1xf32> to vector<8x8xf32>
    %128 = arith.subf %124, %127 : vector<8x8xf32>
    %129 = math.exp %128 : vector<8x8xf32>
    %cst_57 = arith.constant dense<0.000000e+00> : vector<8xf32>
    %130 = vector.multi_reduction <add>, %129, %cst_57 [1] : vector<8x8xf32> to vector<8xf32>
    %131 = vector.shape_cast %130 : vector<8xf32> to vector<8x1xf32>
    %132 = tpu.reciprocal %131 {approx = true} : vector<8x1xf32> -> vector<8x1xf32>
    %133 = vector.broadcast %132 : vector<8x1xf32> to vector<8x8xf32>
    %134 = arith.mulf %129, %133 : vector<8x8xf32>
    %cst_58 = arith.constant dense<0.000000e+00> : vector<8x8xf32>
    %135 = tpu.matmul %134, %121, %cst_58 {dimension_numbers = #tpu.dot_dimension_numbers<[1], [0], [0], [1], [0, 0, 1, 1], [], []>} : vector<8x8xf32>, vector<8x8xf32>, vector<8x8xf32> -> vector<8x8xf32>
    %c0_59 = arith.constant 0 : index
    %c40 = arith.constant 40 : index
    %c0_60 = arith.constant 0 : index
    %136 = vector.load %arg7[%c0_59, %c40, %c0_60] : memref<1x64x8xf32, #tpu.memory_space<vmem>>, vector<1x8x8xf32>
    %137 = vector.shape_cast %136 : vector<1x8x8xf32> to vector<8x8xf32>
    %138 = vector.shape_cast %135 : vector<8x8xf32> to vector<1x8x8xf32>
    tpu.vector_store %arg7[%c0_59, %c40, %c0_60], %138 {strides = array<i32>} : memref<1x64x8xf32, #tpu.memory_space<vmem>>, vector<1x8x8xf32>,
    %139 = vector.extract_strided_slice %18 {offsets = [8, 48], sizes = [8, 8], strides = [1, 1]} : vector<16x96xf32> to vector<8x8xf32>
    %140 = vector.extract_strided_slice %18 {offsets = [8, 56], sizes = [8, 8], strides = [1, 1]} : vector<16x96xf32> to vector<8x8xf32>
    %141 = vector.extract_strided_slice %18 {offsets = [8, 64], sizes = [8, 8], strides = [1, 1]} : vector<16x96xf32> to vector<8x8xf32>
    %cst_61 = arith.constant dense<0.000000e+00> : vector<8x8xf32>
    %142 = tpu.matmul %139, %140, %cst_61 {dimension_numbers = #tpu.dot_dimension_numbers<[1], [1], [0], [0], [0, 0, 1, 0], [], []>} : vector<8x8xf32>, vector<8x8xf32>, vector<8x8xf32> -> vector<8x8xf32>
    %cst_62 = arith.constant 0.353553385 : f32
    %143 = vector.broadcast %cst_62 : f32 to vector<8x8xf32>
    %144 = arith.mulf %142, %143 : vector<8x8xf32>
    %cst_63 = arith.constant dense<0xFF800000> : vector<8xf32>
    %145 = vector.multi_reduction <maximumf>, %144, %cst_63 [1] : vector<8x8xf32> to vector<8xf32>
    %146 = vector.shape_cast %145 : vector<8xf32> to vector<8x1xf32>
    %147 = vector.broadcast %146 : vector<8x1xf32> to vector<8x8xf32>
    %148 = arith.subf %144, %147 : vector<8x8xf32>
    %149 = math.exp %148 : vector<8x8xf32>
    %cst_64 = arith.constant dense<0.000000e+00> : vector<8xf32>
    %150 = vector.multi_reduction <add>, %149, %cst_64 [1] : vector<8x8xf32> to vector<8xf32>
    %151 = vector.shape_cast %150 : vector<8xf32> to vector<8x1xf32>
    %152 = tpu.reciprocal %151 {approx = true} : vector<8x1xf32> -> vector<8x1xf32>
    %153 = vector.broadcast %152 : vector<8x1xf32> to vector<8x8xf32>
    %154 = arith.mulf %149, %153 : vector<8x8xf32>
    %cst_65 = arith.constant dense<0.000000e+00> : vector<8x8xf32>
    %155 = tpu.matmul %154, %141, %cst_65 {dimension_numbers = #tpu.dot_dimension_numbers<[1], [0], [0], [1], [0, 0, 1, 1], [], []>} : vector<8x8xf32>, vector<8x8xf32>, vector<8x8xf32> -> vector<8x8xf32>
    %c0_66 = arith.constant 0 : index
    %c48 = arith.constant 48 : index
    %c0_67 = arith.constant 0 : index
    %156 = vector.load %arg7[%c0_66, %c48, %c0_67] : memref<1x64x8xf32, #tpu.memory_space<vmem>>, vector<1x8x8xf32>
    %157 = vector.shape_cast %156 : vector<1x8x8xf32> to vector<8x8xf32>
    %158 = vector.shape_cast %155 : vector<8x8xf32> to vector<1x8x8xf32>
    tpu.vector_store %arg7[%c0_66, %c48, %c0_67], %158 {strides = array<i32>} : memref<1x64x8xf32, #tpu.memory_space<vmem>>, vector<1x8x8xf32>,
    %159 = vector.extract_strided_slice %18 {offsets = [8, 72], sizes = [8, 8], strides = [1, 1]} : vector<16x96xf32> to vector<8x8xf32>
    %160 = vector.extract_strided_slice %18 {offsets = [8, 80], sizes = [8, 8], strides = [1, 1]} : vector<16x96xf32> to vector<8x8xf32>
    %161 = vector.extract_strided_slice %18 {offsets = [8, 88], sizes = [8, 8], strides = [1, 1]} : vector<16x96xf32> to vector<8x8xf32>
    %cst_68 = arith.constant dense<0.000000e+00> : vector<8x8xf32>
    %162 = tpu.matmul %159, %160, %cst_68 {dimension_numbers = #tpu.dot_dimension_numbers<[1], [1], [0], [0], [0, 0, 1, 0], [], []>} : vector<8x8xf32>, vector<8x8xf32>, vector<8x8xf32> -> vector<8x8xf32>
    %cst_69 = arith.constant 0.353553385 : f32
    %163 = vector.broadcast %cst_69 : f32 to vector<8x8xf32>
    %164 = arith.mulf %162, %163 : vector<8x8xf32>
    %cst_70 = arith.constant dense<0xFF800000> : vector<8xf32>
    %165 = vector.multi_reduction <maximumf>, %164, %cst_70 [1] : vector<8x8xf32> to vector<8xf32>
    %166 = vector.shape_cast %165 : vector<8xf32> to vector<8x1xf32>
    %167 = vector.broadcast %166 : vector<8x1xf32> to vector<8x8xf32>
    %168 = arith.subf %164, %167 : vector<8x8xf32>
    %169 = math.exp %168 : vector<8x8xf32>
    %cst_71 = arith.constant dense<0.000000e+00> : vector<8xf32>
    %170 = vector.multi_reduction <add>, %169, %cst_71 [1] : vector<8x8xf32> to vector<8xf32>
    %171 = vector.shape_cast %170 : vector<8xf32> to vector<8x1xf32>
    %172 = tpu.reciprocal %171 {approx = true} : vector<8x1xf32> -> vector<8x1xf32>
    %173 = vector.broadcast %172 : vector<8x1xf32> to vector<8x8xf32>
    %174 = arith.mulf %169, %173 : vector<8x8xf32>
    %cst_72 = arith.constant dense<0.000000e+00> : vector<8x8xf32>
    %175 = tpu.matmul %174, %161, %cst_72 {dimension_numbers = #tpu.dot_dimension_numbers<[1], [0], [0], [1], [0, 0, 1, 1], [], []>} : vector<8x8xf32>, vector<8x8xf32>, vector<8x8xf32> -> vector<8x8xf32>
    %c0_73 = arith.constant 0 : index
    %c56 = arith.constant 56 : index
    %c0_74 = arith.constant 0 : index
    %176 = vector.load %arg7[%c0_73, %c56, %c0_74] : memref<1x64x8xf32, #tpu.memory_space<vmem>>, vector<1x8x8xf32>
    %177 = vector.shape_cast %176 : vector<1x8x8xf32> to vector<8x8xf32>
    %178 = vector.shape_cast %175 : vector<8x8xf32> to vector<1x8x8xf32>
    tpu.vector_store %arg7[%c0_73, %c56, %c0_74], %178 {strides = array<i32>} : memref<1x64x8xf32, #tpu.memory_space<vmem>>, vector<1x8x8xf32>,
    return
  }
  func.func @transform_0(%arg0: i32) -> (i32, i32, i32) {
    %c0_i32 = arith.constant 0 : i32
    %c0_i32_0 = arith.constant 0 : i32
    %c0_i32_1 = arith.constant 0 : i32
    return %arg0, %c0_i32, %c0_i32_0 : i32, i32, i32
  }
  func.func @transform_1(%arg0: i32) -> (i32, i32, i32) {
    %c0_i32 = arith.constant 0 : i32
    %c0_i32_0 = arith.constant 0 : i32
    %c0_i32_1 = arith.constant 0 : i32
    return %arg0, %c0_i32, %c0_i32_0 : i32, i32, i32
  }
  func.func @transform_2(%arg0: i32) -> (i32, i32, i32) {
    %c0_i32 = arith.constant 0 : i32
    %c0_i32_0 = arith.constant 0 : i32
    %c0_i32_1 = arith.constant 0 : i32
    return %arg0, %c0_i32, %c0_i32_0 : i32, i32, i32
  }
  func.func @transform_3(%arg0: i32) -> (i32, i32, i32) {
    %c0_i32 = arith.constant 0 : i32
    %c0_i32_0 = arith.constant 0 : i32
    %c0_i32_1 = arith.constant 0 : i32
    return %arg0, %c0_i32, %c0_i32_0 : i32, i32, i32
  }
  func.func @transform_4(%arg0: i32) -> (i32, i32, i32) {
    %c0_i32 = arith.constant 0 : i32
    %c0_i32_0 = arith.constant 0 : i32
    %c0_i32_1 = arith.constant 0 : i32
    return %arg0, %c0_i32, %c0_i32_0 : i32, i32, i32
  }
  func.func @transform_5(%arg0: i32) -> (i32, i32, i32) {
    %c0_i32 = arith.constant 0 : i32
    %c0_i32_0 = arith.constant 0 : i32
    %c0_i32_1 = arith.constant 0 : i32
    return %arg0, %c0_i32, %c0_i32_0 : i32, i32, i32
  }
  func.func @transform_6(%arg0: i32) -> (i32, i32, i32) {
    %c0_i32 = arith.constant 0 : i32
    %c0_i32_0 = arith.constant 0 : i32
    %c0_i32_1 = arith.constant 0 : i32
    return %arg0, %c0_i32, %c0_i32_0 : i32, i32, i32
  }
}

module attributes {stable_mosaic.version = 11 : i64} {
  func.func @_cross_attn_front_kernel(%arg0: i32, %arg1: memref<1x16x32xf32, #tpu.memory_space<vmem>>, %arg2: memref<1x16x32xf32, #tpu.memory_space<vmem>>, %arg3: memref<1x16x32xf32, #tpu.memory_space<vmem>>, %arg4: memref<1x32x32xf32, #tpu.memory_space<vmem>>, %arg5: memref<1x1x32xf32, #tpu.memory_space<vmem>>, %arg6: memref<1x1x32xf32, #tpu.memory_space<vmem>>, %arg7: memref<1x1x32xf32, #tpu.memory_space<vmem>>, %arg8: memref<1x32x32xf32, #tpu.memory_space<vmem>>, %arg9: memref<1x1x32xf32, #tpu.memory_space<vmem>>, %arg10: memref<1x32x64xf32, #tpu.memory_space<vmem>>, %arg11: memref<1x1x64xf32, #tpu.memory_space<vmem>>, %arg12: memref<1x16x32xf32, #tpu.memory_space<vmem>>, %arg13: memref<1x64x8xf32, #tpu.memory_space<vmem>>) attributes {dimension_semantics = [#tpu.dimension_semantics<parallel>], iteration_bounds = array<i64: 1>, scalar_prefetch = 0 : i64, scratch_operands = 0 : i64, tpu.core_type = #tpu.core_type<tc>, window_params = [{transform_indices = @transform_0, window_bounds = array<i64: 1, 16, 32>}, {transform_indices = @transform_1, window_bounds = array<i64: 1, 16, 32>}, {transform_indices = @transform_2, window_bounds = array<i64: 1, 16, 32>}, {transform_indices = @transform_3, window_bounds = array<i64: 1, 32, 32>}, {transform_indices = @transform_4, window_bounds = array<i64: 1, 1, 32>}, {transform_indices = @transform_5, window_bounds = array<i64: 1, 1, 32>}, {transform_indices = @transform_6, window_bounds = array<i64: 1, 1, 32>}, {transform_indices = @transform_7, window_bounds = array<i64: 1, 32, 32>}, {transform_indices = @transform_8, window_bounds = array<i64: 1, 1, 32>}, {transform_indices = @transform_9, window_bounds = array<i64: 1, 32, 64>}, {transform_indices = @transform_10, window_bounds = array<i64: 1, 1, 64>}, {transform_indices = @transform_11, window_bounds = array<i64: 1, 16, 32>}, {transform_indices = @transform_12, window_bounds = array<i64: 1, 64, 8>}]} {
    %c0 = arith.constant 0 : index
    %c0_0 = arith.constant 0 : index
    %c0_1 = arith.constant 0 : index
    %0 = vector.load %arg1[%c0, %c0_0, %c0_1] : memref<1x16x32xf32, #tpu.memory_space<vmem>>, vector<1x16x32xf32>
    %1 = vector.shape_cast %0 : vector<1x16x32xf32> to vector<16x32xf32>
    %c0_2 = arith.constant 0 : index
    %c0_3 = arith.constant 0 : index
    %c0_4 = arith.constant 0 : index
    %2 = vector.load %arg4[%c0_2, %c0_3, %c0_4] : memref<1x32x32xf32, #tpu.memory_space<vmem>>, vector<1x32x32xf32>
    %3 = vector.shape_cast %2 : vector<1x32x32xf32> to vector<32x32xf32>
    %cst = arith.constant dense<0.000000e+00> : vector<16x32xf32>
    %4 = tpu.matmul %1, %3, %cst {dimension_numbers = #tpu.dot_dimension_numbers<[1], [0], [0], [1], [0, 0, 1, 1], [], []>} : vector<16x32xf32>, vector<32x32xf32>, vector<16x32xf32> -> vector<16x32xf32>
    %c0_5 = arith.constant 0 : index
    %c0_6 = arith.constant 0 : index
    %c0_7 = arith.constant 0 : index
    %5 = vector.load %arg5[%c0_5, %c0_6, %c0_7] : memref<1x1x32xf32, #tpu.memory_space<vmem>>, vector<1x1x32xf32>
    %6 = vector.shape_cast %5 : vector<1x1x32xf32> to vector<1x32xf32>
    %7 = vector.broadcast %6 : vector<1x32xf32> to vector<16x32xf32>
    %8 = arith.addf %4, %7 : vector<16x32xf32>
    %c0_8 = arith.constant 0 : index
    %c0_9 = arith.constant 0 : index
    %c0_10 = arith.constant 0 : index
    %9 = vector.load %arg2[%c0_8, %c0_9, %c0_10] : memref<1x16x32xf32, #tpu.memory_space<vmem>>, vector<1x16x32xf32>
    %10 = vector.shape_cast %9 : vector<1x16x32xf32> to vector<16x32xf32>
    %11 = arith.addf %8, %10 : vector<16x32xf32>
    %c0_11 = arith.constant 0 : index
    %c0_12 = arith.constant 0 : index
    %c0_13 = arith.constant 0 : index
    %12 = vector.load %arg6[%c0_11, %c0_12, %c0_13] : memref<1x1x32xf32, #tpu.memory_space<vmem>>, vector<1x1x32xf32>
    %13 = vector.shape_cast %12 : vector<1x1x32xf32> to vector<1x32xf32>
    %c0_14 = arith.constant 0 : index
    %c0_15 = arith.constant 0 : index
    %c0_16 = arith.constant 0 : index
    %14 = vector.load %arg7[%c0_14, %c0_15, %c0_16] : memref<1x1x32xf32, #tpu.memory_space<vmem>>, vector<1x1x32xf32>
    %15 = vector.shape_cast %14 : vector<1x1x32xf32> to vector<1x32xf32>
    %cst_17 = arith.constant dense<0.000000e+00> : vector<16xf32>
    %16 = vector.multi_reduction <add>, %11, %cst_17 [1] : vector<16x32xf32> to vector<16xf32>
    %17 = vector.shape_cast %16 : vector<16xf32> to vector<16x1xf32>
    %cst_18 = arith.constant 3.200000e+01 : f32
    %18 = vector.broadcast %cst_18 : f32 to vector<16x1xf32>
    %19 = arith.divf %17, %18 : vector<16x1xf32>
    %20 = vector.broadcast %19 : vector<16x1xf32> to vector<16x32xf32>
    %21 = arith.subf %11, %20 : vector<16x32xf32>
    %22 = arith.mulf %21, %21 : vector<16x32xf32>
    %cst_19 = arith.constant dense<0.000000e+00> : vector<16xf32>
    %23 = vector.multi_reduction <add>, %22, %cst_19 [1] : vector<16x32xf32> to vector<16xf32>
    %24 = vector.shape_cast %23 : vector<16xf32> to vector<16x1xf32>
    %cst_20 = arith.constant 3.200000e+01 : f32
    %25 = vector.broadcast %cst_20 : f32 to vector<16x1xf32>
    %26 = arith.divf %24, %25 : vector<16x1xf32>
    %cst_21 = arith.constant 9.99999974E-6 : f32
    %27 = vector.broadcast %cst_21 : f32 to vector<16x1xf32>
    %28 = arith.addf %26, %27 : vector<16x1xf32>
    %29 = math.rsqrt %28 : vector<16x1xf32>
    %30 = vector.broadcast %29 : vector<16x1xf32> to vector<16x32xf32>
    %31 = arith.mulf %21, %30 : vector<16x32xf32>
    %32 = vector.broadcast %13 : vector<1x32xf32> to vector<16x32xf32>
    %33 = arith.mulf %32, %31 : vector<16x32xf32>
    %34 = vector.broadcast %15 : vector<1x32xf32> to vector<16x32xf32>
    %35 = arith.addf %33, %34 : vector<16x32xf32>
    %c0_22 = arith.constant 0 : index
    %c0_23 = arith.constant 0 : index
    %c0_24 = arith.constant 0 : index
    %36 = vector.load %arg12[%c0_22, %c0_23, %c0_24] : memref<1x16x32xf32, #tpu.memory_space<vmem>>, vector<1x16x32xf32>
    %37 = vector.shape_cast %36 : vector<1x16x32xf32> to vector<16x32xf32>
    %38 = vector.shape_cast %35 : vector<16x32xf32> to vector<1x16x32xf32>
    tpu.vector_store %arg12[%c0_22, %c0_23, %c0_24], %38 {strides = array<i32>} : memref<1x16x32xf32, #tpu.memory_space<vmem>>, vector<1x16x32xf32>,
    %c0_25 = arith.constant 0 : index
    %c0_26 = arith.constant 0 : index
    %c0_27 = arith.constant 0 : index
    %39 = vector.load %arg8[%c0_25, %c0_26, %c0_27] : memref<1x32x32xf32, #tpu.memory_space<vmem>>, vector<1x32x32xf32>
    %40 = vector.shape_cast %39 : vector<1x32x32xf32> to vector<32x32xf32>
    %cst_28 = arith.constant dense<0.000000e+00> : vector<16x32xf32>
    %41 = tpu.matmul %35, %40, %cst_28 {dimension_numbers = #tpu.dot_dimension_numbers<[1], [0], [0], [1], [0, 0, 1, 1], [], []>} : vector<16x32xf32>, vector<32x32xf32>, vector<16x32xf32> -> vector<16x32xf32>
    %c0_29 = arith.constant 0 : index
    %c0_30 = arith.constant 0 : index
    %c0_31 = arith.constant 0 : index
    %42 = vector.load %arg9[%c0_29, %c0_30, %c0_31] : memref<1x1x32xf32, #tpu.memory_space<vmem>>, vector<1x1x32xf32>
    %43 = vector.shape_cast %42 : vector<1x1x32xf32> to vector<1x32xf32>
    %44 = vector.broadcast %43 : vector<1x32xf32> to vector<16x32xf32>
    %45 = arith.addf %41, %44 : vector<16x32xf32>
    %c0_32 = arith.constant 0 : index
    %c0_33 = arith.constant 0 : index
    %c0_34 = arith.constant 0 : index
    %46 = vector.load %arg3[%c0_32, %c0_33, %c0_34] : memref<1x16x32xf32, #tpu.memory_space<vmem>>, vector<1x16x32xf32>
    %47 = vector.shape_cast %46 : vector<1x16x32xf32> to vector<16x32xf32>
    %c0_35 = arith.constant 0 : index
    %c0_36 = arith.constant 0 : index
    %c0_37 = arith.constant 0 : index
    %48 = vector.load %arg10[%c0_35, %c0_36, %c0_37] : memref<1x32x64xf32, #tpu.memory_space<vmem>>, vector<1x32x64xf32>
    %49 = vector.shape_cast %48 : vector<1x32x64xf32> to vector<32x64xf32>
    %cst_38 = arith.constant dense<0.000000e+00> : vector<16x64xf32>
    %50 = tpu.matmul %47, %49, %cst_38 {dimension_numbers = #tpu.dot_dimension_numbers<[1], [0], [0], [1], [0, 0, 1, 1], [], []>} : vector<16x32xf32>, vector<32x64xf32>, vector<16x64xf32> -> vector<16x64xf32>
    %c0_39 = arith.constant 0 : index
    %c0_40 = arith.constant 0 : index
    %c0_41 = arith.constant 0 : index
    %51 = vector.load %arg11[%c0_39, %c0_40, %c0_41] : memref<1x1x64xf32, #tpu.memory_space<vmem>>, vector<1x1x64xf32>
    %52 = vector.shape_cast %51 : vector<1x1x64xf32> to vector<1x64xf32>
    %53 = vector.broadcast %52 : vector<1x64xf32> to vector<16x64xf32>
    %54 = arith.addf %50, %53 : vector<16x64xf32>
    %55 = vector.extract_strided_slice %45 {offsets = [0, 0], sizes = [8, 8], strides = [1, 1]} : vector<16x32xf32> to vector<8x8xf32>
    %56 = vector.extract_strided_slice %54 {offsets = [0, 0], sizes = [8, 8], strides = [1, 1]} : vector<16x64xf32> to vector<8x8xf32>
    %57 = vector.extract_strided_slice %54 {offsets = [0, 8], sizes = [8, 8], strides = [1, 1]} : vector<16x64xf32> to vector<8x8xf32>
    %cst_42 = arith.constant dense<0.000000e+00> : vector<8x8xf32>
    %58 = tpu.matmul %55, %56, %cst_42 {dimension_numbers = #tpu.dot_dimension_numbers<[1], [1], [0], [0], [0, 0, 1, 0], [], []>} : vector<8x8xf32>, vector<8x8xf32>, vector<8x8xf32> -> vector<8x8xf32>
    %cst_43 = arith.constant 0.353553385 : f32
    %59 = vector.broadcast %cst_43 : f32 to vector<8x8xf32>
    %60 = arith.mulf %58, %59 : vector<8x8xf32>
    %cst_44 = arith.constant dense<0xFF800000> : vector<8xf32>
    %61 = vector.multi_reduction <maximumf>, %60, %cst_44 [1] : vector<8x8xf32> to vector<8xf32>
    %62 = vector.shape_cast %61 : vector<8xf32> to vector<8x1xf32>
    %63 = vector.broadcast %62 : vector<8x1xf32> to vector<8x8xf32>
    %64 = arith.subf %60, %63 : vector<8x8xf32>
    %65 = math.exp %64 : vector<8x8xf32>
    %cst_45 = arith.constant dense<0.000000e+00> : vector<8xf32>
    %66 = vector.multi_reduction <add>, %65, %cst_45 [1] : vector<8x8xf32> to vector<8xf32>
    %67 = vector.shape_cast %66 : vector<8xf32> to vector<8x1xf32>
    %68 = tpu.reciprocal %67 {approx = true} : vector<8x1xf32> -> vector<8x1xf32>
    %69 = vector.broadcast %68 : vector<8x1xf32> to vector<8x8xf32>
    %70 = arith.mulf %65, %69 : vector<8x8xf32>
    %cst_46 = arith.constant dense<0.000000e+00> : vector<8x8xf32>
    %71 = tpu.matmul %70, %57, %cst_46 {dimension_numbers = #tpu.dot_dimension_numbers<[1], [0], [0], [1], [0, 0, 1, 1], [], []>} : vector<8x8xf32>, vector<8x8xf32>, vector<8x8xf32> -> vector<8x8xf32>
    %c0_47 = arith.constant 0 : index
    %c0_48 = arith.constant 0 : index
    %c0_49 = arith.constant 0 : index
    %72 = vector.load %arg13[%c0_47, %c0_48, %c0_49] : memref<1x64x8xf32, #tpu.memory_space<vmem>>, vector<1x8x8xf32>
    %73 = vector.shape_cast %72 : vector<1x8x8xf32> to vector<8x8xf32>
    %74 = vector.shape_cast %71 : vector<8x8xf32> to vector<1x8x8xf32>
    tpu.vector_store %arg13[%c0_47, %c0_48, %c0_49], %74 {strides = array<i32>} : memref<1x64x8xf32, #tpu.memory_space<vmem>>, vector<1x8x8xf32>,
    %75 = vector.extract_strided_slice %45 {offsets = [0, 8], sizes = [8, 8], strides = [1, 1]} : vector<16x32xf32> to vector<8x8xf32>
    %76 = vector.extract_strided_slice %54 {offsets = [0, 16], sizes = [8, 8], strides = [1, 1]} : vector<16x64xf32> to vector<8x8xf32>
    %77 = vector.extract_strided_slice %54 {offsets = [0, 24], sizes = [8, 8], strides = [1, 1]} : vector<16x64xf32> to vector<8x8xf32>
    %cst_50 = arith.constant dense<0.000000e+00> : vector<8x8xf32>
    %78 = tpu.matmul %75, %76, %cst_50 {dimension_numbers = #tpu.dot_dimension_numbers<[1], [1], [0], [0], [0, 0, 1, 0], [], []>} : vector<8x8xf32>, vector<8x8xf32>, vector<8x8xf32> -> vector<8x8xf32>
    %cst_51 = arith.constant 0.353553385 : f32
    %79 = vector.broadcast %cst_51 : f32 to vector<8x8xf32>
    %80 = arith.mulf %78, %79 : vector<8x8xf32>
    %cst_52 = arith.constant dense<0xFF800000> : vector<8xf32>
    %81 = vector.multi_reduction <maximumf>, %80, %cst_52 [1] : vector<8x8xf32> to vector<8xf32>
    %82 = vector.shape_cast %81 : vector<8xf32> to vector<8x1xf32>
    %83 = vector.broadcast %82 : vector<8x1xf32> to vector<8x8xf32>
    %84 = arith.subf %80, %83 : vector<8x8xf32>
    %85 = math.exp %84 : vector<8x8xf32>
    %cst_53 = arith.constant dense<0.000000e+00> : vector<8xf32>
    %86 = vector.multi_reduction <add>, %85, %cst_53 [1] : vector<8x8xf32> to vector<8xf32>
    %87 = vector.shape_cast %86 : vector<8xf32> to vector<8x1xf32>
    %88 = tpu.reciprocal %87 {approx = true} : vector<8x1xf32> -> vector<8x1xf32>
    %89 = vector.broadcast %88 : vector<8x1xf32> to vector<8x8xf32>
    %90 = arith.mulf %85, %89 : vector<8x8xf32>
    %cst_54 = arith.constant dense<0.000000e+00> : vector<8x8xf32>
    %91 = tpu.matmul %90, %77, %cst_54 {dimension_numbers = #tpu.dot_dimension_numbers<[1], [0], [0], [1], [0, 0, 1, 1], [], []>} : vector<8x8xf32>, vector<8x8xf32>, vector<8x8xf32> -> vector<8x8xf32>
    %c0_55 = arith.constant 0 : index
    %c8 = arith.constant 8 : index
    %c0_56 = arith.constant 0 : index
    %92 = vector.load %arg13[%c0_55, %c8, %c0_56] : memref<1x64x8xf32, #tpu.memory_space<vmem>>, vector<1x8x8xf32>
    %93 = vector.shape_cast %92 : vector<1x8x8xf32> to vector<8x8xf32>
    %94 = vector.shape_cast %91 : vector<8x8xf32> to vector<1x8x8xf32>
    tpu.vector_store %arg13[%c0_55, %c8, %c0_56], %94 {strides = array<i32>} : memref<1x64x8xf32, #tpu.memory_space<vmem>>, vector<1x8x8xf32>,
    %95 = vector.extract_strided_slice %45 {offsets = [0, 16], sizes = [8, 8], strides = [1, 1]} : vector<16x32xf32> to vector<8x8xf32>
    %96 = vector.extract_strided_slice %54 {offsets = [0, 32], sizes = [8, 8], strides = [1, 1]} : vector<16x64xf32> to vector<8x8xf32>
    %97 = vector.extract_strided_slice %54 {offsets = [0, 40], sizes = [8, 8], strides = [1, 1]} : vector<16x64xf32> to vector<8x8xf32>
    %cst_57 = arith.constant dense<0.000000e+00> : vector<8x8xf32>
    %98 = tpu.matmul %95, %96, %cst_57 {dimension_numbers = #tpu.dot_dimension_numbers<[1], [1], [0], [0], [0, 0, 1, 0], [], []>} : vector<8x8xf32>, vector<8x8xf32>, vector<8x8xf32> -> vector<8x8xf32>
    %cst_58 = arith.constant 0.353553385 : f32
    %99 = vector.broadcast %cst_58 : f32 to vector<8x8xf32>
    %100 = arith.mulf %98, %99 : vector<8x8xf32>
    %cst_59 = arith.constant dense<0xFF800000> : vector<8xf32>
    %101 = vector.multi_reduction <maximumf>, %100, %cst_59 [1] : vector<8x8xf32> to vector<8xf32>
    %102 = vector.shape_cast %101 : vector<8xf32> to vector<8x1xf32>
    %103 = vector.broadcast %102 : vector<8x1xf32> to vector<8x8xf32>
    %104 = arith.subf %100, %103 : vector<8x8xf32>
    %105 = math.exp %104 : vector<8x8xf32>
    %cst_60 = arith.constant dense<0.000000e+00> : vector<8xf32>
    %106 = vector.multi_reduction <add>, %105, %cst_60 [1] : vector<8x8xf32> to vector<8xf32>
    %107 = vector.shape_cast %106 : vector<8xf32> to vector<8x1xf32>
    %108 = tpu.reciprocal %107 {approx = true} : vector<8x1xf32> -> vector<8x1xf32>
    %109 = vector.broadcast %108 : vector<8x1xf32> to vector<8x8xf32>
    %110 = arith.mulf %105, %109 : vector<8x8xf32>
    %cst_61 = arith.constant dense<0.000000e+00> : vector<8x8xf32>
    %111 = tpu.matmul %110, %97, %cst_61 {dimension_numbers = #tpu.dot_dimension_numbers<[1], [0], [0], [1], [0, 0, 1, 1], [], []>} : vector<8x8xf32>, vector<8x8xf32>, vector<8x8xf32> -> vector<8x8xf32>
    %c0_62 = arith.constant 0 : index
    %c16 = arith.constant 16 : index
    %c0_63 = arith.constant 0 : index
    %112 = vector.load %arg13[%c0_62, %c16, %c0_63] : memref<1x64x8xf32, #tpu.memory_space<vmem>>, vector<1x8x8xf32>
    %113 = vector.shape_cast %112 : vector<1x8x8xf32> to vector<8x8xf32>
    %114 = vector.shape_cast %111 : vector<8x8xf32> to vector<1x8x8xf32>
    tpu.vector_store %arg13[%c0_62, %c16, %c0_63], %114 {strides = array<i32>} : memref<1x64x8xf32, #tpu.memory_space<vmem>>, vector<1x8x8xf32>,
    %115 = vector.extract_strided_slice %45 {offsets = [0, 24], sizes = [8, 8], strides = [1, 1]} : vector<16x32xf32> to vector<8x8xf32>
    %116 = vector.extract_strided_slice %54 {offsets = [0, 48], sizes = [8, 8], strides = [1, 1]} : vector<16x64xf32> to vector<8x8xf32>
    %117 = vector.extract_strided_slice %54 {offsets = [0, 56], sizes = [8, 8], strides = [1, 1]} : vector<16x64xf32> to vector<8x8xf32>
    %cst_64 = arith.constant dense<0.000000e+00> : vector<8x8xf32>
    %118 = tpu.matmul %115, %116, %cst_64 {dimension_numbers = #tpu.dot_dimension_numbers<[1], [1], [0], [0], [0, 0, 1, 0], [], []>} : vector<8x8xf32>, vector<8x8xf32>, vector<8x8xf32> -> vector<8x8xf32>
    %cst_65 = arith.constant 0.353553385 : f32
    %119 = vector.broadcast %cst_65 : f32 to vector<8x8xf32>
    %120 = arith.mulf %118, %119 : vector<8x8xf32>
    %cst_66 = arith.constant dense<0xFF800000> : vector<8xf32>
    %121 = vector.multi_reduction <maximumf>, %120, %cst_66 [1] : vector<8x8xf32> to vector<8xf32>
    %122 = vector.shape_cast %121 : vector<8xf32> to vector<8x1xf32>
    %123 = vector.broadcast %122 : vector<8x1xf32> to vector<8x8xf32>
    %124 = arith.subf %120, %123 : vector<8x8xf32>
    %125 = math.exp %124 : vector<8x8xf32>
    %cst_67 = arith.constant dense<0.000000e+00> : vector<8xf32>
    %126 = vector.multi_reduction <add>, %125, %cst_67 [1] : vector<8x8xf32> to vector<8xf32>
    %127 = vector.shape_cast %126 : vector<8xf32> to vector<8x1xf32>
    %128 = tpu.reciprocal %127 {approx = true} : vector<8x1xf32> -> vector<8x1xf32>
    %129 = vector.broadcast %128 : vector<8x1xf32> to vector<8x8xf32>
    %130 = arith.mulf %125, %129 : vector<8x8xf32>
    %cst_68 = arith.constant dense<0.000000e+00> : vector<8x8xf32>
    %131 = tpu.matmul %130, %117, %cst_68 {dimension_numbers = #tpu.dot_dimension_numbers<[1], [0], [0], [1], [0, 0, 1, 1], [], []>} : vector<8x8xf32>, vector<8x8xf32>, vector<8x8xf32> -> vector<8x8xf32>
    %c0_69 = arith.constant 0 : index
    %c24 = arith.constant 24 : index
    %c0_70 = arith.constant 0 : index
    %132 = vector.load %arg13[%c0_69, %c24, %c0_70] : memref<1x64x8xf32, #tpu.memory_space<vmem>>, vector<1x8x8xf32>
    %133 = vector.shape_cast %132 : vector<1x8x8xf32> to vector<8x8xf32>
    %134 = vector.shape_cast %131 : vector<8x8xf32> to vector<1x8x8xf32>
    tpu.vector_store %arg13[%c0_69, %c24, %c0_70], %134 {strides = array<i32>} : memref<1x64x8xf32, #tpu.memory_space<vmem>>, vector<1x8x8xf32>,
    %135 = vector.extract_strided_slice %45 {offsets = [8, 0], sizes = [8, 8], strides = [1, 1]} : vector<16x32xf32> to vector<8x8xf32>
    %136 = vector.extract_strided_slice %54 {offsets = [8, 0], sizes = [8, 8], strides = [1, 1]} : vector<16x64xf32> to vector<8x8xf32>
    %137 = vector.extract_strided_slice %54 {offsets = [8, 8], sizes = [8, 8], strides = [1, 1]} : vector<16x64xf32> to vector<8x8xf32>
    %cst_71 = arith.constant dense<0.000000e+00> : vector<8x8xf32>
    %138 = tpu.matmul %135, %136, %cst_71 {dimension_numbers = #tpu.dot_dimension_numbers<[1], [1], [0], [0], [0, 0, 1, 0], [], []>} : vector<8x8xf32>, vector<8x8xf32>, vector<8x8xf32> -> vector<8x8xf32>
    %cst_72 = arith.constant 0.353553385 : f32
    %139 = vector.broadcast %cst_72 : f32 to vector<8x8xf32>
    %140 = arith.mulf %138, %139 : vector<8x8xf32>
    %cst_73 = arith.constant dense<0xFF800000> : vector<8xf32>
    %141 = vector.multi_reduction <maximumf>, %140, %cst_73 [1] : vector<8x8xf32> to vector<8xf32>
    %142 = vector.shape_cast %141 : vector<8xf32> to vector<8x1xf32>
    %143 = vector.broadcast %142 : vector<8x1xf32> to vector<8x8xf32>
    %144 = arith.subf %140, %143 : vector<8x8xf32>
    %145 = math.exp %144 : vector<8x8xf32>
    %cst_74 = arith.constant dense<0.000000e+00> : vector<8xf32>
    %146 = vector.multi_reduction <add>, %145, %cst_74 [1] : vector<8x8xf32> to vector<8xf32>
    %147 = vector.shape_cast %146 : vector<8xf32> to vector<8x1xf32>
    %148 = tpu.reciprocal %147 {approx = true} : vector<8x1xf32> -> vector<8x1xf32>
    %149 = vector.broadcast %148 : vector<8x1xf32> to vector<8x8xf32>
    %150 = arith.mulf %145, %149 : vector<8x8xf32>
    %cst_75 = arith.constant dense<0.000000e+00> : vector<8x8xf32>
    %151 = tpu.matmul %150, %137, %cst_75 {dimension_numbers = #tpu.dot_dimension_numbers<[1], [0], [0], [1], [0, 0, 1, 1], [], []>} : vector<8x8xf32>, vector<8x8xf32>, vector<8x8xf32> -> vector<8x8xf32>
    %c0_76 = arith.constant 0 : index
    %c32 = arith.constant 32 : index
    %c0_77 = arith.constant 0 : index
    %152 = vector.load %arg13[%c0_76, %c32, %c0_77] : memref<1x64x8xf32, #tpu.memory_space<vmem>>, vector<1x8x8xf32>
    %153 = vector.shape_cast %152 : vector<1x8x8xf32> to vector<8x8xf32>
    %154 = vector.shape_cast %151 : vector<8x8xf32> to vector<1x8x8xf32>
    tpu.vector_store %arg13[%c0_76, %c32, %c0_77], %154 {strides = array<i32>} : memref<1x64x8xf32, #tpu.memory_space<vmem>>, vector<1x8x8xf32>,
    %155 = vector.extract_strided_slice %45 {offsets = [8, 8], sizes = [8, 8], strides = [1, 1]} : vector<16x32xf32> to vector<8x8xf32>
    %156 = vector.extract_strided_slice %54 {offsets = [8, 16], sizes = [8, 8], strides = [1, 1]} : vector<16x64xf32> to vector<8x8xf32>
    %157 = vector.extract_strided_slice %54 {offsets = [8, 24], sizes = [8, 8], strides = [1, 1]} : vector<16x64xf32> to vector<8x8xf32>
    %cst_78 = arith.constant dense<0.000000e+00> : vector<8x8xf32>
    %158 = tpu.matmul %155, %156, %cst_78 {dimension_numbers = #tpu.dot_dimension_numbers<[1], [1], [0], [0], [0, 0, 1, 0], [], []>} : vector<8x8xf32>, vector<8x8xf32>, vector<8x8xf32> -> vector<8x8xf32>
    %cst_79 = arith.constant 0.353553385 : f32
    %159 = vector.broadcast %cst_79 : f32 to vector<8x8xf32>
    %160 = arith.mulf %158, %159 : vector<8x8xf32>
    %cst_80 = arith.constant dense<0xFF800000> : vector<8xf32>
    %161 = vector.multi_reduction <maximumf>, %160, %cst_80 [1] : vector<8x8xf32> to vector<8xf32>
    %162 = vector.shape_cast %161 : vector<8xf32> to vector<8x1xf32>
    %163 = vector.broadcast %162 : vector<8x1xf32> to vector<8x8xf32>
    %164 = arith.subf %160, %163 : vector<8x8xf32>
    %165 = math.exp %164 : vector<8x8xf32>
    %cst_81 = arith.constant dense<0.000000e+00> : vector<8xf32>
    %166 = vector.multi_reduction <add>, %165, %cst_81 [1] : vector<8x8xf32> to vector<8xf32>
    %167 = vector.shape_cast %166 : vector<8xf32> to vector<8x1xf32>
    %168 = tpu.reciprocal %167 {approx = true} : vector<8x1xf32> -> vector<8x1xf32>
    %169 = vector.broadcast %168 : vector<8x1xf32> to vector<8x8xf32>
    %170 = arith.mulf %165, %169 : vector<8x8xf32>
    %cst_82 = arith.constant dense<0.000000e+00> : vector<8x8xf32>
    %171 = tpu.matmul %170, %157, %cst_82 {dimension_numbers = #tpu.dot_dimension_numbers<[1], [0], [0], [1], [0, 0, 1, 1], [], []>} : vector<8x8xf32>, vector<8x8xf32>, vector<8x8xf32> -> vector<8x8xf32>
    %c0_83 = arith.constant 0 : index
    %c40 = arith.constant 40 : index
    %c0_84 = arith.constant 0 : index
    %172 = vector.load %arg13[%c0_83, %c40, %c0_84] : memref<1x64x8xf32, #tpu.memory_space<vmem>>, vector<1x8x8xf32>
    %173 = vector.shape_cast %172 : vector<1x8x8xf32> to vector<8x8xf32>
    %174 = vector.shape_cast %171 : vector<8x8xf32> to vector<1x8x8xf32>
    tpu.vector_store %arg13[%c0_83, %c40, %c0_84], %174 {strides = array<i32>} : memref<1x64x8xf32, #tpu.memory_space<vmem>>, vector<1x8x8xf32>,
    %175 = vector.extract_strided_slice %45 {offsets = [8, 16], sizes = [8, 8], strides = [1, 1]} : vector<16x32xf32> to vector<8x8xf32>
    %176 = vector.extract_strided_slice %54 {offsets = [8, 32], sizes = [8, 8], strides = [1, 1]} : vector<16x64xf32> to vector<8x8xf32>
    %177 = vector.extract_strided_slice %54 {offsets = [8, 40], sizes = [8, 8], strides = [1, 1]} : vector<16x64xf32> to vector<8x8xf32>
    %cst_85 = arith.constant dense<0.000000e+00> : vector<8x8xf32>
    %178 = tpu.matmul %175, %176, %cst_85 {dimension_numbers = #tpu.dot_dimension_numbers<[1], [1], [0], [0], [0, 0, 1, 0], [], []>} : vector<8x8xf32>, vector<8x8xf32>, vector<8x8xf32> -> vector<8x8xf32>
    %cst_86 = arith.constant 0.353553385 : f32
    %179 = vector.broadcast %cst_86 : f32 to vector<8x8xf32>
    %180 = arith.mulf %178, %179 : vector<8x8xf32>
    %cst_87 = arith.constant dense<0xFF800000> : vector<8xf32>
    %181 = vector.multi_reduction <maximumf>, %180, %cst_87 [1] : vector<8x8xf32> to vector<8xf32>
    %182 = vector.shape_cast %181 : vector<8xf32> to vector<8x1xf32>
    %183 = vector.broadcast %182 : vector<8x1xf32> to vector<8x8xf32>
    %184 = arith.subf %180, %183 : vector<8x8xf32>
    %185 = math.exp %184 : vector<8x8xf32>
    %cst_88 = arith.constant dense<0.000000e+00> : vector<8xf32>
    %186 = vector.multi_reduction <add>, %185, %cst_88 [1] : vector<8x8xf32> to vector<8xf32>
    %187 = vector.shape_cast %186 : vector<8xf32> to vector<8x1xf32>
    %188 = tpu.reciprocal %187 {approx = true} : vector<8x1xf32> -> vector<8x1xf32>
    %189 = vector.broadcast %188 : vector<8x1xf32> to vector<8x8xf32>
    %190 = arith.mulf %185, %189 : vector<8x8xf32>
    %cst_89 = arith.constant dense<0.000000e+00> : vector<8x8xf32>
    %191 = tpu.matmul %190, %177, %cst_89 {dimension_numbers = #tpu.dot_dimension_numbers<[1], [0], [0], [1], [0, 0, 1, 1], [], []>} : vector<8x8xf32>, vector<8x8xf32>, vector<8x8xf32> -> vector<8x8xf32>
    %c0_90 = arith.constant 0 : index
    %c48 = arith.constant 48 : index
    %c0_91 = arith.constant 0 : index
    %192 = vector.load %arg13[%c0_90, %c48, %c0_91] : memref<1x64x8xf32, #tpu.memory_space<vmem>>, vector<1x8x8xf32>
    %193 = vector.shape_cast %192 : vector<1x8x8xf32> to vector<8x8xf32>
    %194 = vector.shape_cast %191 : vector<8x8xf32> to vector<1x8x8xf32>
    tpu.vector_store %arg13[%c0_90, %c48, %c0_91], %194 {strides = array<i32>} : memref<1x64x8xf32, #tpu.memory_space<vmem>>, vector<1x8x8xf32>,
    %195 = vector.extract_strided_slice %45 {offsets = [8, 24], sizes = [8, 8], strides = [1, 1]} : vector<16x32xf32> to vector<8x8xf32>
    %196 = vector.extract_strided_slice %54 {offsets = [8, 48], sizes = [8, 8], strides = [1, 1]} : vector<16x64xf32> to vector<8x8xf32>
    %197 = vector.extract_strided_slice %54 {offsets = [8, 56], sizes = [8, 8], strides = [1, 1]} : vector<16x64xf32> to vector<8x8xf32>
    %cst_92 = arith.constant dense<0.000000e+00> : vector<8x8xf32>
    %198 = tpu.matmul %195, %196, %cst_92 {dimension_numbers = #tpu.dot_dimension_numbers<[1], [1], [0], [0], [0, 0, 1, 0], [], []>} : vector<8x8xf32>, vector<8x8xf32>, vector<8x8xf32> -> vector<8x8xf32>
    %cst_93 = arith.constant 0.353553385 : f32
    %199 = vector.broadcast %cst_93 : f32 to vector<8x8xf32>
    %200 = arith.mulf %198, %199 : vector<8x8xf32>
    %cst_94 = arith.constant dense<0xFF800000> : vector<8xf32>
    %201 = vector.multi_reduction <maximumf>, %200, %cst_94 [1] : vector<8x8xf32> to vector<8xf32>
    %202 = vector.shape_cast %201 : vector<8xf32> to vector<8x1xf32>
    %203 = vector.broadcast %202 : vector<8x1xf32> to vector<8x8xf32>
    %204 = arith.subf %200, %203 : vector<8x8xf32>
    %205 = math.exp %204 : vector<8x8xf32>
    %cst_95 = arith.constant dense<0.000000e+00> : vector<8xf32>
    %206 = vector.multi_reduction <add>, %205, %cst_95 [1] : vector<8x8xf32> to vector<8xf32>
    %207 = vector.shape_cast %206 : vector<8xf32> to vector<8x1xf32>
    %208 = tpu.reciprocal %207 {approx = true} : vector<8x1xf32> -> vector<8x1xf32>
    %209 = vector.broadcast %208 : vector<8x1xf32> to vector<8x8xf32>
    %210 = arith.mulf %205, %209 : vector<8x8xf32>
    %cst_96 = arith.constant dense<0.000000e+00> : vector<8x8xf32>
    %211 = tpu.matmul %210, %197, %cst_96 {dimension_numbers = #tpu.dot_dimension_numbers<[1], [0], [0], [1], [0, 0, 1, 1], [], []>} : vector<8x8xf32>, vector<8x8xf32>, vector<8x8xf32> -> vector<8x8xf32>
    %c0_97 = arith.constant 0 : index
    %c56 = arith.constant 56 : index
    %c0_98 = arith.constant 0 : index
    %212 = vector.load %arg13[%c0_97, %c56, %c0_98] : memref<1x64x8xf32, #tpu.memory_space<vmem>>, vector<1x8x8xf32>
    %213 = vector.shape_cast %212 : vector<1x8x8xf32> to vector<8x8xf32>
    %214 = vector.shape_cast %211 : vector<8x8xf32> to vector<1x8x8xf32>
    tpu.vector_store %arg13[%c0_97, %c56, %c0_98], %214 {strides = array<i32>} : memref<1x64x8xf32, #tpu.memory_space<vmem>>, vector<1x8x8xf32>,
    return
  }
  func.func @transform_0(%arg0: i32) -> (i32, i32, i32) {
    %c0_i32 = arith.constant 0 : i32
    %c0_i32_0 = arith.constant 0 : i32
    %c0_i32_1 = arith.constant 0 : i32
    return %arg0, %c0_i32, %c0_i32_0 : i32, i32, i32
  }
  func.func @transform_1(%arg0: i32) -> (i32, i32, i32) {
    %c0_i32 = arith.constant 0 : i32
    %c0_i32_0 = arith.constant 0 : i32
    %c0_i32_1 = arith.constant 0 : i32
    return %arg0, %c0_i32, %c0_i32_0 : i32, i32, i32
  }
  func.func @transform_2(%arg0: i32) -> (i32, i32, i32) {
    %c0_i32 = arith.constant 0 : i32
    %c0_i32_0 = arith.constant 0 : i32
    %c0_i32_1 = arith.constant 0 : i32
    return %arg0, %c0_i32, %c0_i32_0 : i32, i32, i32
  }
  func.func @transform_3(%arg0: i32) -> (i32, i32, i32) {
    %c0_i32 = arith.constant 0 : i32
    %c0_i32_0 = arith.constant 0 : i32
    %c0_i32_1 = arith.constant 0 : i32
    return %arg0, %c0_i32, %c0_i32_0 : i32, i32, i32
  }
  func.func @transform_4(%arg0: i32) -> (i32, i32, i32) {
    %c0_i32 = arith.constant 0 : i32
    %c0_i32_0 = arith.constant 0 : i32
    %c0_i32_1 = arith.constant 0 : i32
    return %arg0, %c0_i32, %c0_i32_0 : i32, i32, i32
  }
  func.func @transform_5(%arg0: i32) -> (i32, i32, i32) {
    %c0_i32 = arith.constant 0 : i32
    %c0_i32_0 = arith.constant 0 : i32
    %c0_i32_1 = arith.constant 0 : i32
    return %arg0, %c0_i32, %c0_i32_0 : i32, i32, i32
  }
  func.func @transform_6(%arg0: i32) -> (i32, i32, i32) {
    %c0_i32 = arith.constant 0 : i32
    %c0_i32_0 = arith.constant 0 : i32
    %c0_i32_1 = arith.constant 0 : i32
    return %arg0, %c0_i32, %c0_i32_0 : i32, i32, i32
  }
  func.func @transform_7(%arg0: i32) -> (i32, i32, i32) {
    %c0_i32 = arith.constant 0 : i32
    %c0_i32_0 = arith.constant 0 : i32
    %c0_i32_1 = arith.constant 0 : i32
    return %arg0, %c0_i32, %c0_i32_0 : i32, i32, i32
  }
  func.func @transform_8(%arg0: i32) -> (i32, i32, i32) {
    %c0_i32 = arith.constant 0 : i32
    %c0_i32_0 = arith.constant 0 : i32
    %c0_i32_1 = arith.constant 0 : i32
    return %arg0, %c0_i32, %c0_i32_0 : i32, i32, i32
  }
  func.func @transform_9(%arg0: i32) -> (i32, i32, i32) {
    %c0_i32 = arith.constant 0 : i32
    %c0_i32_0 = arith.constant 0 : i32
    %c0_i32_1 = arith.constant 0 : i32
    return %arg0, %c0_i32, %c0_i32_0 : i32, i32, i32
  }
  func.func @transform_10(%arg0: i32) -> (i32, i32, i32) {
    %c0_i32 = arith.constant 0 : i32
    %c0_i32_0 = arith.constant 0 : i32
    %c0_i32_1 = arith.constant 0 : i32
    return %arg0, %c0_i32, %c0_i32_0 : i32, i32, i32
  }
  func.func @transform_11(%arg0: i32) -> (i32, i32, i32) {
    %c0_i32 = arith.constant 0 : i32
    %c0_i32_0 = arith.constant 0 : i32
    %c0_i32_1 = arith.constant 0 : i32
    return %arg0, %c0_i32, %c0_i32_0 : i32, i32, i32
  }
  func.func @transform_12(%arg0: i32) -> (i32, i32, i32) {
    %c0_i32 = arith.constant 0 : i32
    %c0_i32_0 = arith.constant 0 : i32
    %c0_i32_1 = arith.constant 0 : i32
    return %arg0, %c0_i32, %c0_i32_0 : i32, i32, i32
  }
}

module attributes {stable_mosaic.version = 11 : i64} {
  func.func @_linear_kernel(%arg0: i32, %arg1: memref<16x32xf32, #tpu.memory_space<vmem>>, %arg2: memref<32x8xf32, #tpu.memory_space<vmem>>, %arg3: memref<1x8xf32, #tpu.memory_space<vmem>>, %arg4: memref<16x8xf32, #tpu.memory_space<vmem>>) attributes {dimension_semantics = [#tpu.dimension_semantics<arbitrary>], iteration_bounds = array<i64: 1>, scalar_prefetch = 0 : i64, scratch_operands = 0 : i64, tpu.core_type = #tpu.core_type<tc>, window_params = [{pipeline_mode = #tpu.pipeline_mode<synchronous>, transform_indices = @transform_0, window_bounds = array<i64: 16, 32>}, {pipeline_mode = #tpu.pipeline_mode<synchronous>, transform_indices = @transform_1, window_bounds = array<i64: 32, 8>}, {pipeline_mode = #tpu.pipeline_mode<synchronous>, transform_indices = @transform_2, window_bounds = array<i64: 1, 8>}, {pipeline_mode = #tpu.pipeline_mode<synchronous>, transform_indices = @transform_3, window_bounds = array<i64: 16, 8>}]} {
    %c0 = arith.constant 0 : index
    %c0_0 = arith.constant 0 : index
    %0 = vector.load %arg1[%c0, %c0_0] : memref<16x32xf32, #tpu.memory_space<vmem>>, vector<16x32xf32>
    %c0_1 = arith.constant 0 : index
    %c0_2 = arith.constant 0 : index
    %1 = vector.load %arg2[%c0_1, %c0_2] : memref<32x8xf32, #tpu.memory_space<vmem>>, vector<32x8xf32>
    %cst = arith.constant dense<0.000000e+00> : vector<16x8xf32>
    %2 = tpu.matmul %0, %1, %cst {dimension_numbers = #tpu.dot_dimension_numbers<[1], [0], [0], [1], [0, 0, 1, 1], [], []>} : vector<16x32xf32>, vector<32x8xf32>, vector<16x8xf32> -> vector<16x8xf32>
    %c0_3 = arith.constant 0 : index
    %c0_4 = arith.constant 0 : index
    %3 = vector.load %arg3[%c0_3, %c0_4] : memref<1x8xf32, #tpu.memory_space<vmem>>, vector<1x8xf32>
    %4 = vector.broadcast %3 : vector<1x8xf32> to vector<16x8xf32>
    %5 = arith.addf %2, %4 : vector<16x8xf32>
    %c0_5 = arith.constant 0 : index
    %c0_6 = arith.constant 0 : index
    %6 = vector.load %arg4[%c0_5, %c0_6] : memref<16x8xf32, #tpu.memory_space<vmem>>, vector<16x8xf32>
    tpu.vector_store %arg4[%c0_5, %c0_6], %5 {strides = array<i32>} : memref<16x8xf32, #tpu.memory_space<vmem>>, vector<16x8xf32>,
    return
  }
  func.func @transform_0(%arg0: i32) -> (i32, i32) {
    %c0_i32 = arith.constant 0 : i32
    %c0_i32_0 = arith.constant 0 : i32
    %c0_i32_1 = arith.constant 0 : i32
    return %c0_i32, %c0_i32_0 : i32, i32
  }
  func.func @transform_1(%arg0: i32) -> (i32, i32) {
    %c0_i32 = arith.constant 0 : i32
    %c0_i32_0 = arith.constant 0 : i32
    %c0_i32_1 = arith.constant 0 : i32
    return %c0_i32, %c0_i32_0 : i32, i32
  }
  func.func @transform_2(%arg0: i32) -> (i32, i32) {
    %c0_i32 = arith.constant 0 : i32
    %c0_i32_0 = arith.constant 0 : i32
    %c0_i32_1 = arith.constant 0 : i32
    return %c0_i32, %c0_i32_0 : i32, i32
  }
  func.func @transform_3(%arg0: i32) -> (i32, i32) {
    %c0_i32 = arith.constant 0 : i32
    %c0_i32_0 = arith.constant 0 : i32
    %c0_i32_1 = arith.constant 0 : i32
    return %c0_i32, %c0_i32_0 : i32, i32
  }
}

module attributes {stable_mosaic.version = 11 : i64} {
  func.func @_attn_tail_kernel(%arg0: i32, %arg1: memref<1x16x32xf32, #tpu.memory_space<vmem>>, %arg2: memref<1x16x32xf32, #tpu.memory_space<vmem>>, %arg3: memref<1x32x32xf32, #tpu.memory_space<vmem>>, %arg4: memref<1x1x32xf32, #tpu.memory_space<vmem>>, %arg5: memref<1x1x32xf32, #tpu.memory_space<vmem>>, %arg6: memref<1x1x32xf32, #tpu.memory_space<vmem>>, %arg7: memref<1x32x32xf32, #tpu.memory_space<vmem>>, %arg8: memref<1x1x32xf32, #tpu.memory_space<vmem>>, %arg9: memref<1x32x32xf32, #tpu.memory_space<vmem>>, %arg10: memref<1x1x32xf32, #tpu.memory_space<vmem>>, %arg11: memref<1x1x32xf32, #tpu.memory_space<vmem>>, %arg12: memref<1x1x32xf32, #tpu.memory_space<vmem>>, %arg13: memref<1x16x32xf32, #tpu.memory_space<vmem>>) attributes {dimension_semantics = [#tpu.dimension_semantics<parallel>], iteration_bounds = array<i64: 1>, scalar_prefetch = 0 : i64, scratch_operands = 0 : i64, tpu.core_type = #tpu.core_type<tc>, window_params = [{transform_indices = @transform_0, window_bounds = array<i64: 1, 16, 32>}, {transform_indices = @transform_1, window_bounds = array<i64: 1, 16, 32>}, {transform_indices = @transform_2, window_bounds = array<i64: 1, 32, 32>}, {transform_indices = @transform_3, window_bounds = array<i64: 1, 1, 32>}, {transform_indices = @transform_4, window_bounds = array<i64: 1, 1, 32>}, {transform_indices = @transform_5, window_bounds = array<i64: 1, 1, 32>}, {transform_indices = @transform_6, window_bounds = array<i64: 1, 32, 32>}, {transform_indices = @transform_7, window_bounds = array<i64: 1, 1, 32>}, {transform_indices = @transform_8, window_bounds = array<i64: 1, 32, 32>}, {transform_indices = @transform_9, window_bounds = array<i64: 1, 1, 32>}, {transform_indices = @transform_10, window_bounds = array<i64: 1, 1, 32>}, {transform_indices = @transform_11, window_bounds = array<i64: 1, 1, 32>}, {transform_indices = @transform_12, window_bounds = array<i64: 1, 16, 32>}]} {
    %c0 = arith.constant 0 : index
    %c0_0 = arith.constant 0 : index
    %c0_1 = arith.constant 0 : index
    %0 = vector.load %arg1[%c0, %c0_0, %c0_1] : memref<1x16x32xf32, #tpu.memory_space<vmem>>, vector<1x16x32xf32>
    %1 = vector.shape_cast %0 : vector<1x16x32xf32> to vector<16x32xf32>
    %c0_2 = arith.constant 0 : index
    %c0_3 = arith.constant 0 : index
    %c0_4 = arith.constant 0 : index
    %2 = vector.load %arg3[%c0_2, %c0_3, %c0_4] : memref<1x32x32xf32, #tpu.memory_space<vmem>>, vector<1x32x32xf32>
    %3 = vector.shape_cast %2 : vector<1x32x32xf32> to vector<32x32xf32>
    %cst = arith.constant dense<0.000000e+00> : vector<16x32xf32>
    %4 = tpu.matmul %1, %3, %cst {dimension_numbers = #tpu.dot_dimension_numbers<[1], [0], [0], [1], [0, 0, 1, 1], [], []>} : vector<16x32xf32>, vector<32x32xf32>, vector<16x32xf32> -> vector<16x32xf32>
    %c0_5 = arith.constant 0 : index
    %c0_6 = arith.constant 0 : index
    %c0_7 = arith.constant 0 : index
    %5 = vector.load %arg4[%c0_5, %c0_6, %c0_7] : memref<1x1x32xf32, #tpu.memory_space<vmem>>, vector<1x1x32xf32>
    %6 = vector.shape_cast %5 : vector<1x1x32xf32> to vector<1x32xf32>
    %7 = vector.broadcast %6 : vector<1x32xf32> to vector<16x32xf32>
    %8 = arith.addf %4, %7 : vector<16x32xf32>
    %c0_8 = arith.constant 0 : index
    %c0_9 = arith.constant 0 : index
    %c0_10 = arith.constant 0 : index
    %9 = vector.load %arg2[%c0_8, %c0_9, %c0_10] : memref<1x16x32xf32, #tpu.memory_space<vmem>>, vector<1x16x32xf32>
    %10 = vector.shape_cast %9 : vector<1x16x32xf32> to vector<16x32xf32>
    %11 = arith.addf %8, %10 : vector<16x32xf32>
    %c0_11 = arith.constant 0 : index
    %c0_12 = arith.constant 0 : index
    %c0_13 = arith.constant 0 : index
    %12 = vector.load %arg5[%c0_11, %c0_12, %c0_13] : memref<1x1x32xf32, #tpu.memory_space<vmem>>, vector<1x1x32xf32>
    %13 = vector.shape_cast %12 : vector<1x1x32xf32> to vector<1x32xf32>
    %c0_14 = arith.constant 0 : index
    %c0_15 = arith.constant 0 : index
    %c0_16 = arith.constant 0 : index
    %14 = vector.load %arg6[%c0_14, %c0_15, %c0_16] : memref<1x1x32xf32, #tpu.memory_space<vmem>>, vector<1x1x32xf32>
    %15 = vector.shape_cast %14 : vector<1x1x32xf32> to vector<1x32xf32>
    %cst_17 = arith.constant dense<0.000000e+00> : vector<16xf32>
    %16 = vector.multi_reduction <add>, %11, %cst_17 [1] : vector<16x32xf32> to vector<16xf32>
    %17 = vector.shape_cast %16 : vector<16xf32> to vector<16x1xf32>
    %cst_18 = arith.constant 3.200000e+01 : f32
    %18 = vector.broadcast %cst_18 : f32 to vector<16x1xf32>
    %19 = arith.divf %17, %18 : vector<16x1xf32>
    %20 = vector.broadcast %19 : vector<16x1xf32> to vector<16x32xf32>
    %21 = arith.subf %11, %20 : vector<16x32xf32>
    %22 = arith.mulf %21, %21 : vector<16x32xf32>
    %cst_19 = arith.constant dense<0.000000e+00> : vector<16xf32>
    %23 = vector.multi_reduction <add>, %22, %cst_19 [1] : vector<16x32xf32> to vector<16xf32>
    %24 = vector.shape_cast %23 : vector<16xf32> to vector<16x1xf32>
    %cst_20 = arith.constant 3.200000e+01 : f32
    %25 = vector.broadcast %cst_20 : f32 to vector<16x1xf32>
    %26 = arith.divf %24, %25 : vector<16x1xf32>
    %cst_21 = arith.constant 9.99999974E-6 : f32
    %27 = vector.broadcast %cst_21 : f32 to vector<16x1xf32>
    %28 = arith.addf %26, %27 : vector<16x1xf32>
    %29 = math.rsqrt %28 : vector<16x1xf32>
    %30 = vector.broadcast %29 : vector<16x1xf32> to vector<16x32xf32>
    %31 = arith.mulf %21, %30 : vector<16x32xf32>
    %32 = vector.broadcast %13 : vector<1x32xf32> to vector<16x32xf32>
    %33 = arith.mulf %32, %31 : vector<16x32xf32>
    %34 = vector.broadcast %15 : vector<1x32xf32> to vector<16x32xf32>
    %35 = arith.addf %33, %34 : vector<16x32xf32>
    %c0_22 = arith.constant 0 : index
    %c0_23 = arith.constant 0 : index
    %c0_24 = arith.constant 0 : index
    %36 = vector.load %arg7[%c0_22, %c0_23, %c0_24] : memref<1x32x32xf32, #tpu.memory_space<vmem>>, vector<1x32x32xf32>
    %37 = vector.shape_cast %36 : vector<1x32x32xf32> to vector<32x32xf32>
    %cst_25 = arith.constant dense<0.000000e+00> : vector<16x32xf32>
    %38 = tpu.matmul %35, %37, %cst_25 {dimension_numbers = #tpu.dot_dimension_numbers<[1], [0], [0], [1], [0, 0, 1, 1], [], []>} : vector<16x32xf32>, vector<32x32xf32>, vector<16x32xf32> -> vector<16x32xf32>
    %c0_26 = arith.constant 0 : index
    %c0_27 = arith.constant 0 : index
    %c0_28 = arith.constant 0 : index
    %39 = vector.load %arg8[%c0_26, %c0_27, %c0_28] : memref<1x1x32xf32, #tpu.memory_space<vmem>>, vector<1x1x32xf32>
    %40 = vector.shape_cast %39 : vector<1x1x32xf32> to vector<1x32xf32>
    %41 = vector.broadcast %40 : vector<1x32xf32> to vector<16x32xf32>
    %42 = arith.addf %38, %41 : vector<16x32xf32>
    %cst_29 = arith.constant 0.000000e+00 : f32
    %43 = vector.broadcast %cst_29 : f32 to vector<16x32xf32>
    %44 = arith.maximumf %42, %43 : vector<16x32xf32>
    %c0_30 = arith.constant 0 : index
    %c0_31 = arith.constant 0 : index
    %c0_32 = arith.constant 0 : index
    %45 = vector.load %arg9[%c0_30, %c0_31, %c0_32] : memref<1x32x32xf32, #tpu.memory_space<vmem>>, vector<1x32x32xf32>
    %46 = vector.shape_cast %45 : vector<1x32x32xf32> to vector<32x32xf32>
    %cst_33 = arith.constant dense<0.000000e+00> : vector<16x32xf32>
    %47 = tpu.matmul %44, %46, %cst_33 {dimension_numbers = #tpu.dot_dimension_numbers<[1], [0], [0], [1], [0, 0, 1, 1], [], []>} : vector<16x32xf32>, vector<32x32xf32>, vector<16x32xf32> -> vector<16x32xf32>
    %c0_34 = arith.constant 0 : index
    %c0_35 = arith.constant 0 : index
    %c0_36 = arith.constant 0 : index
    %48 = vector.load %arg10[%c0_34, %c0_35, %c0_36] : memref<1x1x32xf32, #tpu.memory_space<vmem>>, vector<1x1x32xf32>
    %49 = vector.shape_cast %48 : vector<1x1x32xf32> to vector<1x32xf32>
    %50 = vector.broadcast %49 : vector<1x32xf32> to vector<16x32xf32>
    %51 = arith.addf %47, %50 : vector<16x32xf32>
    %52 = arith.addf %51, %35 : vector<16x32xf32>
    %c0_37 = arith.constant 0 : index
    %c0_38 = arith.constant 0 : index
    %c0_39 = arith.constant 0 : index
    %53 = vector.load %arg11[%c0_37, %c0_38, %c0_39] : memref<1x1x32xf32, #tpu.memory_space<vmem>>, vector<1x1x32xf32>
    %54 = vector.shape_cast %53 : vector<1x1x32xf32> to vector<1x32xf32>
    %c0_40 = arith.constant 0 : index
    %c0_41 = arith.constant 0 : index
    %c0_42 = arith.constant 0 : index
    %55 = vector.load %arg12[%c0_40, %c0_41, %c0_42] : memref<1x1x32xf32, #tpu.memory_space<vmem>>, vector<1x1x32xf32>
    %56 = vector.shape_cast %55 : vector<1x1x32xf32> to vector<1x32xf32>
    %cst_43 = arith.constant dense<0.000000e+00> : vector<16xf32>
    %57 = vector.multi_reduction <add>, %52, %cst_43 [1] : vector<16x32xf32> to vector<16xf32>
    %58 = vector.shape_cast %57 : vector<16xf32> to vector<16x1xf32>
    %cst_44 = arith.constant 3.200000e+01 : f32
    %59 = vector.broadcast %cst_44 : f32 to vector<16x1xf32>
    %60 = arith.divf %58, %59 : vector<16x1xf32>
    %61 = vector.broadcast %60 : vector<16x1xf32> to vector<16x32xf32>
    %62 = arith.subf %52, %61 : vector<16x32xf32>
    %63 = arith.mulf %62, %62 : vector<16x32xf32>
    %cst_45 = arith.constant dense<0.000000e+00> : vector<16xf32>
    %64 = vector.multi_reduction <add>, %63, %cst_45 [1] : vector<16x32xf32> to vector<16xf32>
    %65 = vector.shape_cast %64 : vector<16xf32> to vector<16x1xf32>
    %cst_46 = arith.constant 3.200000e+01 : f32
    %66 = vector.broadcast %cst_46 : f32 to vector<16x1xf32>
    %67 = arith.divf %65, %66 : vector<16x1xf32>
    %cst_47 = arith.constant 9.99999974E-6 : f32
    %68 = vector.broadcast %cst_47 : f32 to vector<16x1xf32>
    %69 = arith.addf %67, %68 : vector<16x1xf32>
    %70 = math.rsqrt %69 : vector<16x1xf32>
    %71 = vector.broadcast %70 : vector<16x1xf32> to vector<16x32xf32>
    %72 = arith.mulf %62, %71 : vector<16x32xf32>
    %73 = vector.broadcast %54 : vector<1x32xf32> to vector<16x32xf32>
    %74 = arith.mulf %73, %72 : vector<16x32xf32>
    %75 = vector.broadcast %56 : vector<1x32xf32> to vector<16x32xf32>
    %76 = arith.addf %74, %75 : vector<16x32xf32>
    %c0_48 = arith.constant 0 : index
    %c0_49 = arith.constant 0 : index
    %c0_50 = arith.constant 0 : index
    %77 = vector.load %arg13[%c0_48, %c0_49, %c0_50] : memref<1x16x32xf32, #tpu.memory_space<vmem>>, vector<1x16x32xf32>
    %78 = vector.shape_cast %77 : vector<1x16x32xf32> to vector<16x32xf32>
    %79 = vector.shape_cast %76 : vector<16x32xf32> to vector<1x16x32xf32>
    tpu.vector_store %arg13[%c0_48, %c0_49, %c0_50], %79 {strides = array<i32>} : memref<1x16x32xf32, #tpu.memory_space<vmem>>, vector<1x16x32xf32>,
    return
  }
  func.func @transform_0(%arg0: i32) -> (i32, i32, i32) {
    %c0_i32 = arith.constant 0 : i32
    %c0_i32_0 = arith.constant 0 : i32
    %c0_i32_1 = arith.constant 0 : i32
    return %arg0, %c0_i32, %c0_i32_0 : i32, i32, i32
  }
  func.func @transform_1(%arg0: i32) -> (i32, i32, i32) {
    %c0_i32 = arith.constant 0 : i32
    %c0_i32_0 = arith.constant 0 : i32
    %c0_i32_1 = arith.constant 0 : i32
    return %arg0, %c0_i32, %c0_i32_0 : i32, i32, i32
  }
  func.func @transform_2(%arg0: i32) -> (i32, i32, i32) {
    %c0_i32 = arith.constant 0 : i32
    %c0_i32_0 = arith.constant 0 : i32
    %c0_i32_1 = arith.constant 0 : i32
    return %arg0, %c0_i32, %c0_i32_0 : i32, i32, i32
  }
  func.func @transform_3(%arg0: i32) -> (i32, i32, i32) {
    %c0_i32 = arith.constant 0 : i32
    %c0_i32_0 = arith.constant 0 : i32
    %c0_i32_1 = arith.constant 0 : i32
    return %arg0, %c0_i32, %c0_i32_0 : i32, i32, i32
  }
  func.func @transform_4(%arg0: i32) -> (i32, i32, i32) {
    %c0_i32 = arith.constant 0 : i32
    %c0_i32_0 = arith.constant 0 : i32
    %c0_i32_1 = arith.constant 0 : i32
    return %arg0, %c0_i32, %c0_i32_0 : i32, i32, i32
  }
  func.func @transform_5(%arg0: i32) -> (i32, i32, i32) {
    %c0_i32 = arith.constant 0 : i32
    %c0_i32_0 = arith.constant 0 : i32
    %c0_i32_1 = arith.constant 0 : i32
    return %arg0, %c0_i32, %c0_i32_0 : i32, i32, i32
  }
  func.func @transform_6(%arg0: i32) -> (i32, i32, i32) {
    %c0_i32 = arith.constant 0 : i32
    %c0_i32_0 = arith.constant 0 : i32
    %c0_i32_1 = arith.constant 0 : i32
    return %arg0, %c0_i32, %c0_i32_0 : i32, i32, i32
  }
  func.func @transform_7(%arg0: i32) -> (i32, i32, i32) {
    %c0_i32 = arith.constant 0 : i32
    %c0_i32_0 = arith.constant 0 : i32
    %c0_i32_1 = arith.constant 0 : i32
    return %arg0, %c0_i32, %c0_i32_0 : i32, i32, i32
  }
  func.func @transform_8(%arg0: i32) -> (i32, i32, i32) {
    %c0_i32 = arith.constant 0 : i32
    %c0_i32_0 = arith.constant 0 : i32
    %c0_i32_1 = arith.constant 0 : i32
    return %arg0, %c0_i32, %c0_i32_0 : i32, i32, i32
  }
  func.func @transform_9(%arg0: i32) -> (i32, i32, i32) {
    %c0_i32 = arith.constant 0 : i32
    %c0_i32_0 = arith.constant 0 : i32
    %c0_i32_1 = arith.constant 0 : i32
    return %arg0, %c0_i32, %c0_i32_0 : i32, i32, i32
  }
  func.func @transform_10(%arg0: i32) -> (i32, i32, i32) {
    %c0_i32 = arith.constant 0 : i32
    %c0_i32_0 = arith.constant 0 : i32
    %c0_i32_1 = arith.constant 0 : i32
    return %arg0, %c0_i32, %c0_i32_0 : i32, i32, i32
  }
  func.func @transform_11(%arg0: i32) -> (i32, i32, i32) {
    %c0_i32 = arith.constant 0 : i32
    %c0_i32_0 = arith.constant 0 : i32
    %c0_i32_1 = arith.constant 0 : i32
    return %arg0, %c0_i32, %c0_i32_0 : i32, i32, i32
  }
  func.func @transform_12(%arg0: i32) -> (i32, i32, i32) {
    %c0_i32 = arith.constant 0 : i32
    %c0_i32_0 = arith.constant 0 : i32
    %c0_i32_1 = arith.constant 0 : i32
    return %arg0, %c0_i32, %c0_i32_0 : i32, i32, i32
  }
}

</mosaic_0001>

<bundles_post_ra>
// kernel: transformer_forward_pallas.7
= control target key start
LH: loop header
LB: loop body
LE: loop exit
PB: predicated region body
PF: predicated region fallthrough
CT: control target
= control target key end

     0   :  { %s1299_s21 = smov 0   ;;  %s1381_s0 = inlined_call_operand.vmem [shape: f32[2,16,16], index: 0, kind: input, shape index: {}]   ;;  %s1382_s1 = inlined_call_operand.vmem [shape: f32[2,16,16], index: 1, kind: input, shape index: {}]   ;;  %s1383_s2 = inlined_call_operand.vmem [shape: f32[2,16,16], index: 2, kind: input, shape index: {}]   ;;  %s1384_s3 = inlined_call_operand.vmem [shape: f32[2,1,16], index: 3, kind: input, shape index: {}]   ;;  %s1385_s4 = inlined_call_operand.vmem [shape: f32[2,1,16], index: 4, kind: input, shape index: {}]   ;;  %s1386_s5 = inlined_call_operand.vmem [shape: f32[2,1,16], index: 5, kind: input, shape index: {}]   ;;  %s1387_s6 = inlined_call_operand.vmem [shape: f32[2,16,32], index: 6, kind: input, shape index: {}]   ;;  %s1388_s7 = inlined_call_operand.vmem [shape: f32[2,1,32], index: 7, kind: input, shape index: {}]   ;;  %s1389_s8 = inlined_call_operand.vmem [shape: f32[2,32,16], index: 8, kind: input, shape index: {}]   ;;  %s1390_s9 = inlined_call_operand.vmem [shape: f32[2,1,16], index: 9, kind: input, shape index: {}]   ;;  %s1391_s10 = inlined_call_operand.vmem [shape: f32[2,1,16], index: 10, kind: input, shape index: {}]   ;;  %s1392_s11 = inlined_call_operand.vmem [shape: f32[2,1,16], index: 11, kind: input, shape index: {}]   ;;  %s1393_s12 = inlined_call_operand.vmem [shape: f32[2,16,16], index: 12, kind: output, shape index: {}]  }
   0x1 LB: > { %s1133_s22 = sadd.s32 4294967295, %s1232_s21   ;;  %p1137_p0 = scmp.ge.s32.totalorder %s1232_s21, 1  ;;  %s1232_s21 = sphi %s1299_s21, %s22_s21  }
   0x2   : > { %p458_p1 = scmp.lt.s32.totalorder %s1232_s21, 3 }
   0x4   : > { %p459_p2 = pnand %p1137_p0, %p458_p1 }
   0x5   : > { %p541_p3 = scmp.lt.s32.totalorder (!%p459_p2), %s1133_s22, 1 }
   0x6   : > { %462 = sbr.rel (%p459_p2) target bundleno = 1238 (0x4d6), region = 68 }
   0xb   : > { %s1395_s22 = smov (!%p541_p3, %s1133_s22), 1  ;;  %vm603_vm0 = vcmask 130048   ;;  %vm837_vm1 = vcmask 261120  }
   0xc   : > { %s1310_s23 = sshll.u32 %s1395_s22, 4  ;;  %s558_s14 = scalar_lea.vmem %s1384_s3, %s1395_s22 }
   0xd   : > { %s555_s26 = scalar_lea.vmem %s1383_s2, %s1310_s23  ;;  %s545_s29 = scalar_lea.vmem %s1381_s0, %s1310_s23  ;;  %v1150_v5 = vld [vmem:[%s558_s14] ss:$0 sm:$0xff] }
   0xe   : > { %v595_v0 = vld [vmem:[%s555_s26 + $0x8] sm:$0xff]  ;;  %v594_v1 = vld [vmem:[%s555_s26] sm:$0xff]  ;;  %s550_s17 = scalar_lea.vmem %s1382_s1, %s1310_s23  ;;  %s569_s20 = scalar_lea.vmem %s1387_s6, %s1310_s23 }
   0xf   : > { %1185 = vmatprep.subr.mxu1 %v595_v0  ;;  %v592_v2 = vld [vmem:[%s545_s29] sm:$0xff]  ;;  %v593_v3 = vld [vmem:[%s545_s29 + $0x8] sm:$0xff]  ;;  %s561_s26 = scalar_lea.vmem %s1385_s4, %s1395_s22  ;;  %s564_s29 = scalar_lea.vmem %s1386_s5, %s1395_s22 }
  0x10   : > { %1186 = vmatpush3.msra.mxu1 %v595_v0  ;;  %1189 = vmatprep.mubr.msk.f32.mxu1 %vm603_vm0, %v592_v2  ;;  %v685_v7 = vld [vmem:[%s550_s17] sm:$0xff]  ;;  %v686_v10 = vld [vmem:[%s550_s17 + $0x8] sm:$0xff]  ;;  %s1169_s30 = sshll.u32 %s1395_s22, 5  ;;  %s572_s18 = scalar_lea.vmem %s1388_s7, %s1395_s22 }
  0x11   : > { %1187 = vmatprep.subr.mxu1 %v594_v1  ;;  %v735_v25 = vld [vmem:[%s569_s20 + $0x8] sm:$0xff]  ;;  %v734_v26 = vld [vmem:[%s569_s20] sm:$0xff]  ;;  %s577_s15 = scalar_lea.vmem %s1389_s8, %s1169_s30  ;;  %s580_s24 = scalar_lea.vmem %s1390_s9, %s1395_s22 }
  0x12   : > { %1188 = vmatpush3.msra.mxu1 %v594_v1  ;;  %v1153_v34 = vld [vmem:[%s561_s26] ss:$0 sm:$0xff]  ;;  %v829_v43 = vld [vmem:[%s577_s15 + $0x18] sm:$0xff]  ;;  %v828_v44 = vld [vmem:[%s577_s15 + $0x10] sm:$0xff]  ;;  %s583_s27 = scalar_lea.vmem %s1391_s10, %s1395_s22  ;;  %s586_s30 = scalar_lea.vmem %s1392_s11, %s1395_s22 }
  0x13   : > { %1190 = vmatmul.mubr.msk.f32.vlgmr.msra.gmra.mxu1 %vm603_vm0, %v593_v3  ;;  %1192 = vmatprep.subr.mxu1 %v735_v25  ;;  %v1154_v36 = vld [vmem:[%s564_s29] ss:$0 sm:$0xff]  ;;  %v827_v45 = vld [vmem:[%s577_s15 + $0x8] sm:$0xff] }
  0x14   : > { %1193 = vmatpush3.msra.mxu1 %v735_v25  ;;  %1199 = vmatprep.subr.mxu0 %v829_v43  ;;  %v826_v46 = vld [vmem:[%s577_s15] sm:$0xff]  ;;  %s591_s15 = scalar_lea.vmem %s1393_s12, %s1310_s23 }
  0x15   : > { %1194 = vmatprep.subr.mxu1 %v734_v26  ;;  %1200 = vmatpush3.msra.mxu0 %v829_v43  ;;  %v1155_v47 = vld [vmem:[%s572_s18] ss:$0 sm:$0xff] }
  0x16   : > { %1195 = vmatpush3.msra.mxu1 %v734_v26  ;;  %1201 = vmatprep.subr.mxu0 %v828_v44  ;;  %v1158_v54 = vld [vmem:[%s580_s24] ss:$0 sm:$0xff] }
  0x17   : > { %1202 = vmatpush3.msra.mxu0 %v828_v44 }
  0x18   : > { %1203 = vmatprep.subr.mxu0 %v827_v45 }
  0x19   : > { %1204 = vmatpush3.msra.mxu0 %v827_v45 }
  0x1a   : > { %1205 = vmatprep.subr.mxu0 %v826_v46 }
  0x1b   : > { %1206 = vmatpush3.msra.mxu0 %v826_v46 }
  0xd3   : > { %v1191_v4 = vpop.f32.mrf.mxu1 }
  0xd4   : > { %v682_v8 = vadd.f32 %v1191_v4, %v1150_v5 }
  0xd5   : > { %v676_v6 = vpop.f32.mrf.mxu1 }
  0xd6   : > { %v677_v9 = vadd.f32 %v1150_v5, %v676_v6  ;;  %v688_v13 = vadd.f32 %v686_v10, %v682_v8 }
  0xd8   : > { %v687_v11 = vadd.f32 %v685_v7, %v677_v9  ;;  %v694_v14 = vsel %vm603_vm0, %v688_v13, 0.0 }
  0xda   : > { %v691_v12 = vsel %vm603_vm0, %v687_v11, 0.0 }
  0xdb   : > { %692 = vadd.xlane.f32.xlu0 %v691_v12 }
  0xdf   : > { %695 = vadd.xlane.f32.xlu0 %v694_v14 }
 0x164   : > { %v693_v15 = vpop.xlane.xlu0 %692 }
 0x165   : > { %v698_v16 = vmul.f32 0.0625, %v693_v15 }
 0x167   : > { %v700_v17 = vsub.f32 %v687_v11, %v698_v16  ;;  %v1161_v16 = vld [vmem:[%s583_s27] ss:$0 sm:$0xff] }
 0x168   : > { %v696_v18 = vpop.xlane.xlu0 %695 }
 0x169   : > { %v699_v19 = vmul.f32 0.0625, %v696_v18  ;;  %v702_v20 = vmul.f32 %v700_v17, %v700_v17 }
 0x16b   : > { %v701_v21 = vsub.f32 %v688_v13, %v699_v19  ;;  %v704_v22 = vsel %vm603_vm0, %v702_v20, 0.0  ;;  %v1162_v19 = vld [vmem:[%s586_s30] ss:$0 sm:$0xff] }
 0x16c   : > { %705 = vadd.xlane.f32.xlu1 %v704_v22 }
 0x16d   : > { %v703_v23 = vmul.f32 %v701_v21, %v701_v21 }
 0x16f   : > { %v707_v24 = vsel %vm603_vm0, %v703_v23, 0.0 }
 0x170   : > { %708 = vadd.xlane.f32.xlu1 %v707_v24 }
 0x1f5   : > { %v706_v27 = vpop.xlane.xlu1 %705 }
 0x1f6   : > { %v710_v28 = vmul.f32 0.0625, %v706_v27 }
 0x1f8   : > { %v712_v29 = vadd.f32 1e-05, %v710_v28 }
 0x1f9   : > { %v709_v30 = vpop.xlane.xlu1 %708 }
 0x1fa   : > { %1218 = vrsqrt.f32 %v712_v29  ;;  %v711_v31 = vmul.f32 0.0625, %v709_v30 }
 0x1fc   : > { %v713_v32 = vadd.f32 1e-05, %v711_v31 }
 0x1fe   : > { %1220 = vrsqrt.f32 %v713_v32 }
 0x207   : > { %v1219_v33 = vpop.eup %1218 }
 0x208   : > { %v716_v35 = vmul.f32 %v1219_v33, %v700_v17 }
 0x20a   : > { %v724_v37 = vmul.f32 %v1153_v34, %v716_v35 }
 0x20b   : > { %v1221_v38 = vpop.eup %1220 }
 0x20c   : > { %v717_v39 = vmul.f32 %v1221_v38, %v701_v21  ;;  %v732_v40 = vadd.f32 %v1154_v36, %v724_v37 }
 0x20e   : > { %v725_v41 = vmul.f32 %v1153_v34, %v717_v39  ;;  %1196 = vmatprep.mubr.msk.f32.mxu1 %vm603_vm0, %v732_v40 }
 0x210   : > { %v733_v42 = vadd.f32 %v1154_v36, %v725_v41 }
 0x212   : > { %1197 = vmatmul.mubr.msk.f32.vlgmr.msra.gmra.mxu1 %vm603_vm0, %v733_v42 }
 0x2d2   : > { %v1198_v48 = vpop.f32.mrf.mxu1 }
 0x2d3   : > { %v821_v49 = vadd.f32 %v1198_v48, %v1155_v47 }
 0x2d4   : > { %v815_v50 = vpop.f32.mrf.mxu1 }
 0x2d5   : > { %v816_v51 = vadd.f32 %v1155_v47, %v815_v50  ;;  %v825_v53 = vmax.f32 %v821_v49, 0.0 }
 0x2d7   : > { %v824_v52 = vmax.f32 %v816_v51, 0.0 }
 0x2d9   : > { %1207 = vmatprep.mubr.msk.f32.mxu0 %vm837_vm1, %v824_v52 }
 0x2da   : > { %1208 = vmatmul.mubr.msk.f32.vlgmr.msra.gmra.mxu0 %vm837_vm1, %v825_v53 }
 0x39a   : > { %v1209_v55 = vpop.f32.mrf.mxu0 }
 0x39b   : > { %v916_v56 = vadd.f32 %v1209_v55, %v1158_v54 }
 0x39c   : > { %v910_v57 = vpop.f32.mrf.mxu0 }
 0x39d   : > { %v911_v58 = vadd.f32 %v1158_v54, %v910_v57  ;;  %v920_v59 = vadd.f32 %v916_v56, %v733_v42 }
 0x39f   : > { %v926_v60 = vsel %vm603_vm0, %v920_v59, 0.0  ;;  %v919_v61 = vadd.f32 %v911_v58, %v732_v40 }
 0x3a0   : > { %927 = vadd.xlane.f32.xlu1 %v926_v60 }
 0x3a1   : > { %v923_v62 = vsel %vm603_vm0, %v919_v61, 0.0 }
 0x3a2   : > { %924 = vadd.xlane.f32.xlu0 %v923_v62 }
 0x429   : > { %v928_v63 = vpop.xlane.xlu1 %927 }
 0x42a   : > { %v930_v0 = vmul.f32 0.0625, %v928_v63 }
 0x42b   : > { %v925_v1 = vpop.xlane.xlu0 %924 }
 0x42c   : > { %v932_v2 = vsub.f32 %v920_v59, %v930_v0  ;;  %v929_v3 = vmul.f32 0.0625, %v925_v1 }
 0x42e   : > { %v931_v4 = vsub.f32 %v919_v61, %v929_v3  ;;  %v934_v5 = vmul.f32 %v932_v2, %v932_v2 }
 0x430   : > { %v938_v6 = vsel %vm603_vm0, %v934_v5, 0.0  ;;  %v933_v7 = vmul.f32 %v931_v4, %v931_v4 }
 0x431   : > { %939 = vadd.xlane.f32.xlu1 %v938_v6 }
 0x432   : > { %v935_v8 = vsel %vm603_vm0, %v933_v7, 0.0 }
 0x433   : > { %936 = vadd.xlane.f32.xlu0 %v935_v8 }
 0x4ba   : > { %v940_v9 = vpop.xlane.xlu1 %939 }
 0x4bb   : > { %v942_v10 = vmul.f32 0.0625, %v940_v9 }
 0x4bc   : > { %v937_v11 = vpop.xlane.xlu0 %936 }
 0x4bd   : > { %v944_v12 = vadd.f32 1e-05, %v942_v10  ;;  %v941_v13 = vmul.f32 0.0625, %v937_v11 }
 0x4bf   : > { %1222 = vrsqrt.f32 %v944_v12  ;;  %v943_v14 = vadd.f32 1e-05, %v941_v13 }
 0x4c1   : > { %1224 = vrsqrt.f32 %v943_v14 }
 0x4cc   : > { %v1223_v15 = vpop.eup %1222 }
 0x4cd   : > { %v948_v17 = vmul.f32 %v1223_v15, %v932_v2 }
 0x4ce   : > { %v1225_v18 = vpop.eup %1224 }
 0x4cf   : > { %v956_v20 = vmul.f32 %v1161_v16, %v948_v17  ;;  %v947_v21 = vmul.f32 %v1225_v18, %v931_v4 }
 0x4d1   : > { %v964_v22 = vadd.f32 %v1162_v19, %v956_v20  ;;  %v955_v23 = vmul.f32 %v1161_v16, %v947_v21 }
 0x4d3   : > { %966 = vst.msk [vmem:[%s591_s15 + $0x8] sm:$0xff] %vm603_vm0, %v964_v22  ;;  %v963_v24 = vadd.f32 %v1162_v19, %v955_v23 }
 0x4d5   : > { %965 = vst.msk [vmem:[%s591_s15] sm:$0xff] %vm603_vm0, %v963_v24 }
 0x4d6 PF: > { %s22_s21 = sadd.s32 1, %s1232_s21  }
 0x4d7   : > { %p19_p4 = scmp.ge.s32.totalorder %s22_s21, 4  }
 0x4d9   :  { %21 = sbr.rel (!%p19_p4) target bundleno = 1 (0x1), region = 131 }

// kernel: transformer_forward_pallas.8
= control target key start
LH: loop header
LB: loop body
LE: loop exit
PB: predicated region body
PF: predicated region fallthrough
CT: control target
= control target key end

     0   :  { %vm32_vm0 = vcmask 64512   ;;  %vm114_vm1 = vcmask 261120   ;;  %v1763_v12 = vmov 0.0   ;;  %vm1764_vm2 = vmmov 0   ;;  %s1766_s15 = smov 120   ;;  %s1767_s16 = smov 72   ;;  %s2021_s1 = inlined_call_operand.vmem [shape: f32[1,8,32], index: 1, kind: input, shape index: {}]   ;;  %s2022_s0 = inlined_call_operand.vmem [shape: f32[1,16,8], index: 0, kind: input, shape index: {}]   ;;  %s2023_s3 = inlined_call_operand.vmem [shape: f32[1,32,96], index: 3, kind: input, shape index: {}]   ;;  %s2024_s2 = inlined_call_operand.vmem [shape: f32[1,1,32], index: 2, kind: input, shape index: {}]   ;;  %s2025_s5 = inlined_call_operand.vmem [shape: f32[1,16,32], index: 5, kind: output, shape index: {0}]   ;;  %s2026_s4 = inlined_call_operand.vmem [shape: f32[1,1,96], index: 4, kind: input, shape index: {}]   ;;  %s2027_s6 = inlined_call_operand.vmem [shape: f32[1,64,8], index: 6, kind: output, shape index: {1}]  }
   0x1   :  { %v24_v0 = vld [vmem:[%s2021_s1] sm:$0xff]  ;;  %v23_v2 = vld [vmem:[%s2022_s0 + $0x8] sm:$0xff]  ;;  %v120_v3 = vld [vmem:[%s2023_s3 + $0x18] sm:$0xff]  ;;  %s1768_s17 = smov 96   ;;  %s1769_s18 = smov 48  }
   0x2   :  { %v22_v1 = vld [vmem:[%s2022_s0] sm:$0xff]  ;;  %1622 = vmatprep.subr.mxu0 %v24_v0  ;;  %1627 = vmatprep.subr.mxu1 %v120_v3  ;;  %v119_v4 = vld [vmem:[%s2023_s3 + $0x10] sm:$0xff]  ;;  %v118_v5 = vld [vmem:[%s2023_s3 + $0x8] sm:$0xff]  ;;  %s1770_s19 = smov 80   ;;  %s1772_s20 = smov 88  }
   0x3   :  { %1624 = vmatprep.mubr.msk.f32.mxu0 %vm32_vm0, %v22_v1  ;;  %1623 = vmatpush3.msra.mxu0 %v24_v0  ;;  %v117_v6 = vld [vmem:[%s2023_s3] sm:$0xff]  ;;  %s1773_s21 = smov 112   ;;  %s1774_s22 = smov 40  }
   0x4   :  { %1625 = vmatmul.mubr.msk.f32.vlgmr.msra.gmra.mxu0 %vm32_vm0, %v23_v2  ;;  %1628 = vmatpush3.msra.mxu1 %v120_v3  ;;  %v1551_v7 = vld [vmem:[%s2024_s2] ss:$0 sm:$0xff]  ;;  %s1775_s23 = smov 64  }
   0x5   :  { %1629 = vmatprep.subr.mxu1 %v119_v4  ;;  %1638 = vmatprep.subr.mxu0 %v1763_v12  ;;  %v1554_v14 = vld [vmem:[%s2026_s4] ss:$0 sm:$0xff]  ;;  %s1771_s4 = smov 56  }
   0x6   :  { %1630 = vmatpush3.msra.mxu1 %v119_v4  ;;  %1640 = vmatprep.mubr.msk.f32.mxu0 %vm1764_vm2, %v1763_v12 }
   0x7   :  { %1631 = vmatprep.subr.mxu1 %v118_v5 }
   0x8   :  { %1632 = vmatpush3.msra.mxu1 %v118_v5 }
   0x9   :  { %1633 = vmatprep.subr.mxu1 %v117_v6 }
   0xa   :  { %1634 = vmatpush3.msra.mxu1 %v117_v6 }
   0xb   :  { %1648 = vmatprep.subr.mxu1 %v1763_v12 }
  0xc4   :  { %v1626_v8 = vpop.f32.mrf.mxu0 }
  0xc5   :  { %v111_v9 = vadd.f32 %v1626_v8, %v1551_v7 }
  0xc6   :  { %v105_v10 = vpop.f32.mrf.mxu0 }
  0xc7   :  { %v106_v11 = vadd.f32 %v1551_v7, %v105_v10  ;;  %116 = vst.msk [vmem:[%s2025_s5 + $0x8] sm:$0xff] %vm114_vm1, %v111_v9 }
  0xc9   :  { %115 = vst.msk [vmem:[%s2025_s5] sm:$0xff] %vm114_vm1, %v106_v11  ;;  %1635 = vmatprep.mubr.msk.f32.mxu1 %vm114_vm1, %v106_v11  ;;  %s1765_s5 = smov 104  }
  0xca   :  { %1636 = vmatmul.mubr.msk.f32.vlgmr.msra.gmra.mxu1 %vm114_vm1, %v111_v9 }
  0xcb   :  { %1650 = vmatprep.mubr.msk.f32.mxu1 %vm1764_vm2, %v1763_v12 }
 0x18a   :  { %v1637_v13 = vpop.f32.mrf.mxu1 }
 0x18b   :  { %v1860_v17 = vadd.f32 %v1637_v13, %v1554_v14 }
 0x18c   :  { %v200_v15 = vpop.f32.mrf.mxu1 }
 0x18d   :  { %v1852_v16 = vadd.f32 %v1554_v14, %v200_v15 }
 0x18f   :  { %375 = vrot.lane.b32.xlu1 %v1852_v16, %s1765_s5  ;;  %210 = vrot.lane.b32.xlu0 %v1852_v16, %s1766_s15 }
 0x193   :  { %544 = vrot.lane.b32.xlu1 %v1852_v16, %s1767_s16  ;;  %377 = vrot.lane.b32.xlu0 %v1852_v16, %s1768_s17 }
 0x197   :  { %711 = vrot.lane.b32.xlu1 %v1852_v16, %s1769_s18  ;;  %542 = vrot.lane.b32.xlu0 %v1852_v16, %s1770_s19 }
 0x19b   :  { %877 = vrot.lane.b32.xlu1 %v1860_v17, %s1766_s15  ;;  %709 = vrot.lane.b32.xlu0 %v1852_v16, %s1771_s4 }
 0x19f   :  { %1042 = vrot.lane.b32.xlu1 %v1860_v17, %s1765_s5  ;;  %1044 = vrot.lane.b32.xlu0 %v1860_v17, %s1768_s17 }
 0x1a3   :  { %1209 = vrot.lane.b32.xlu1 %v1860_v17, %s1770_s19  ;;  %1211 = vrot.lane.b32.xlu0 %v1860_v17, %s1767_s16 }
 0x1a7   :  { %1376 = vrot.lane.b32.xlu1 %v1860_v17, %s1771_s4  ;;  %1378 = vrot.lane.b32.xlu0 %v1860_v17, %s1769_s18 }
 0x1ab   :  { %465 = vrot.lane.b32.xlu1 %v1852_v16, %s1772_s20  ;;  %298 = vrot.lane.b32.xlu0 %v1852_v16, %s1773_s21 }
 0x201   :  { %v376_v18 = vpop.permute.xlu1 %375  ;;  %v211_v19 = vpop.permute.xlu0 %210 }
 0x202   :  { %1639 = vmatpush3.xpose.msk.msra.mxu0 %vm32_vm0, %v211_v19 }
 0x203   :  { %1643 = vmatprep.subr.mxu0 %v1763_v12 }
 0x205   :  { %v545_v20 = vpop.permute.xlu1 %544  ;;  %1641 = vmatmul.mubr.msk.f32.vlgmr.msra.gmra.mxu0 %vm32_vm0, %v1852_v16  ;;  %v378_v21 = vpop.permute.xlu0 %377 }
 0x206   :  { %1649 = vmatpush3.xpose.msk.msra.mxu1 %vm32_vm0, %v378_v21  ;;  %1645 = vmatprep.mubr.msk.f32.mxu0 %vm1764_vm2, %v1763_v12 }
 0x207   :  { %1658 = vmatprep.subr.mxu1 %v1763_v12 }
 0x209   :  { %v712_v22 = vpop.permute.xlu1 %711  ;;  %1651 = vmatmul.mubr.msk.f32.vlgmr.msra.gmra.mxu1 %vm32_vm0, %v376_v18  ;;  %v543_v23 = vpop.permute.xlu0 %542 }
 0x20a   :  { %1659 = vmatpush3.xpose.msk.msra.mxu1 %vm32_vm0, %v545_v20  ;;  %1660 = vmatprep.mubr.msk.f32.mxu1 %vm1764_vm2, %v1763_v12 }
 0x20b   :  { %1668 = vmatprep.subr.mxu1 %v1763_v12 }
 0x20d   :  { %1661 = vmatmul.mubr.msk.f32.vlgmr.msra.gmra.mxu1 %vm32_vm0, %v543_v23  ;;  %v710_v24 = vpop.permute.xlu0 %709  ;;  %v878_v25 = vpop.permute.xlu1 %877 }
 0x20e   :  { %1669 = vmatpush3.xpose.msk.msra.mxu1 %vm32_vm0, %v712_v22  ;;  %1670 = vmatprep.mubr.msk.f32.mxu1 %vm1764_vm2, %v1763_v12 }
 0x20f   :  { %1678 = vmatprep.subr.mxu1 %v1763_v12 }
 0x211   :  { %1671 = vmatmul.mubr.msk.f32.vlgmr.msra.gmra.mxu1 %vm32_vm0, %v710_v24  ;;  %v1045_v26 = vpop.permute.xlu0 %1044  ;;  %v1043_v27 = vpop.permute.xlu1 %1042 }
 0x212   :  { %1679 = vmatpush3.xpose.msk.msra.mxu1 %vm32_vm0, %v878_v25  ;;  %1680 = vmatprep.mubr.msk.f32.mxu1 %vm1764_vm2, %v1763_v12 }
 0x213   :  { %1688 = vmatprep.subr.mxu1 %v1763_v12 }
 0x215   :  { %1681 = vmatmul.mubr.msk.f32.vlgmr.msra.gmra.mxu1 %vm32_vm0, %v1860_v17  ;;  %v1212_v28 = vpop.permute.xlu0 %1211  ;;  %v1210_v30 = vpop.permute.xlu1 %1209 }
 0x216   :  { %1689 = vmatpush3.xpose.msk.msra.mxu1 %vm32_vm0, %v1045_v26  ;;  %1690 = vmatprep.mubr.msk.f32.mxu1 %vm1764_vm2, %v1763_v12 }
 0x217   :  { %1698 = vmatprep.subr.mxu1 %v1763_v12 }
 0x219   :  { %1691 = vmatmul.mubr.msk.f32.vlgmr.msra.gmra.mxu1 %vm32_vm0, %v1043_v27  ;;  %v1379_v29 = vpop.permute.xlu0 %1378  ;;  %v1377_v32 = vpop.permute.xlu1 %1376 }
 0x21a   :  { %1699 = vmatpush3.xpose.msk.msra.mxu1 %vm32_vm0, %v1212_v28  ;;  %1700 = vmatprep.mubr.msk.f32.mxu1 %vm1764_vm2, %v1763_v12 }
 0x21b   :  { %1708 = vmatprep.subr.mxu1 %v1763_v12 }
 0x21d   :  { %1701 = vmatmul.mubr.msk.f32.vlgmr.msra.gmra.mxu1 %vm32_vm0, %v1210_v30  ;;  %v299_v31 = vpop.permute.xlu0 %298  ;;  %v1926_v1 = vpop.permute.xlu1 %465 }
 0x21e   :  { %1644 = vmatpush3.msra.mxu0 %v299_v31  ;;  %1709 = vmatpush3.xpose.msk.msra.mxu1 %vm32_vm0, %v1379_v29 }
 0x21f   :  { %1710 = vmatprep.mubr.msk.f32.mxu1 %vm1764_vm2, %v1763_v12  ;;  %1653 = vmatprep.subr.mxu0 %v1763_v12 }
 0x221   :  { %1711 = vmatmul.mubr.msk.f32.vlgmr.msra.gmra.mxu1 %vm32_vm0, %v1377_v32 }
 0x2c5   :  { %v282_v33 = vpop.f32.mrf.mxu0 }
 0x2c6   :  { %v286_v34 = vmul.f32 0.35355338, %v282_v33 }
 0x2c7   :  { %v1642_v35 = vpop.f32.mrf.mxu0 }
 0x2c8   :  { %v287_v36 = vsel %vm32_vm0, %v286_v34, -inf }
 0x2c9   :  { %288 = vmax.xlane.f32.xlu0 %v287_v36  ;;  %v449_v37 = vpop.f32.mrf.mxu1 }
 0x2ca   :  { %v453_v38 = vmul.f32 0.35355338, %v449_v37 }
 0x2cb   :  { %v1652_v39 = vpop.f32.mrf.mxu1 }
 0x2cc   :  { %v454_v40 = vsel %vm32_vm0, %v453_v38, -inf }
 0x2cd   :  { %455 = vmax.xlane.f32.xlu1 %v454_v40  ;;  %v616_v41 = vpop.f32.mrf.mxu1 }
 0x2ce   :  { %v620_v42 = vmul.f32 0.35355338, %v616_v41 }
 0x2cf   :  { %v1662_v43 = vpop.f32.mrf.mxu1 }
 0x2d0   :  { %v621_v44 = vsel %vm32_vm0, %v620_v42, -inf }
 0x2d1   :  { %622 = vmax.xlane.f32.xlu0 %v621_v44  ;;  %v783_v45 = vpop.f32.mrf.mxu1 }
 0x2d2   :  { %v787_v46 = vmul.f32 0.35355338, %v783_v45 }
 0x2d3   :  { %v1672_v47 = vpop.f32.mrf.mxu1 }
 0x2d4   :  { %v788_v48 = vsel %vm32_vm0, %v787_v46, -inf }
 0x2d5   :  { %789 = vmax.xlane.f32.xlu0 %v788_v48  ;;  %v949_v49 = vpop.f32.mrf.mxu1 }
 0x2d6   :  { %v953_v50 = vmul.f32 0.35355338, %v949_v49 }
 0x2d7   :  { %v1682_v51 = vpop.f32.mrf.mxu1 }
 0x2d8   :  { %v954_v52 = vsel %vm32_vm0, %v953_v50, -inf }
 0x2d9   :  { %955 = vmax.xlane.f32.xlu1 %v954_v52  ;;  %v1116_v53 = vpop.f32.mrf.mxu1 }
 0x2da   :  { %v1120_v54 = vmul.f32 0.35355338, %v1116_v53 }
 0x2db   :  { %v1692_v55 = vpop.f32.mrf.mxu1 }
 0x2dc   :  { %v1121_v56 = vsel %vm32_vm0, %v1120_v54, -inf }
 0x2dd   :  { %1122 = vmax.xlane.f32.xlu0 %v1121_v56  ;;  %v1283_v57 = vpop.f32.mrf.mxu1 }
 0x2de   :  { %v1287_v58 = vmul.f32 0.35355338, %v1283_v57 }
 0x2df   :  { %v1702_v59 = vpop.f32.mrf.mxu1 }
 0x2e0   :  { %v1288_v60 = vsel %vm32_vm0, %v1287_v58, -inf }
 0x2e1   :  { %1289 = vmax.xlane.f32.xlu1 %v1288_v60  ;;  %v1450_v61 = vpop.f32.mrf.mxu1 }
 0x2e2   :  { %v1454_v62 = vmul.f32 0.35355338, %v1450_v61 }
 0x2e3   :  { %v1712_v63 = vpop.f32.mrf.mxu1 }
 0x2e4   :  { %v1455_v0 = vsel %vm32_vm0, %v1454_v62, -inf }
 0x2e5   :  { %1456 = vmax.xlane.f32.xlu0 %v1455_v0 }
 0x2f2   :  { %799 = vrot.lane.b32.xlu1 %v1852_v16, %s1774_s22 }
 0x2fb   :  { %632 = vrot.lane.b32.xlu0 %v1852_v16, %s1775_s23 }
 0x352   :  { %v289_v2 = vpop.xlane.xlu0 %288 }
 0x353   :  { %v290_v3 = vsub.f32 %v286_v34, %v289_v2 }
 0x355   :  { %v291_v4 = vmul.f32 1.442695, %v290_v3 }
 0x356   :  { %v456_v5 = vpop.xlane.xlu1 %455 }
 0x357   :  { %1731 = vpow2.f32 %v291_v4  ;;  %v457_v6 = vsub.f32 %v453_v38, %v456_v5 }
 0x359   :  { %v458_v7 = vmul.f32 1.442695, %v457_v6 }
 0x35a   :  { %v623_v8 = vpop.xlane.xlu0 %622 }
 0x35b   :  { %1733 = vpow2.f32 %v458_v7  ;;  %v624_v9 = vsub.f32 %v620_v42, %v623_v8 }
 0x35d   :  { %v625_v10 = vmul.f32 1.442695, %v624_v9 }
 0x35e   :  { %v790_v11 = vpop.xlane.xlu0 %789 }
 0x35f   :  { %1735 = vpow2.f32 %v625_v10  ;;  %v791_v13 = vsub.f32 %v787_v46, %v790_v11 }
 0x361   :  { %v792_v14 = vmul.f32 1.442695, %v791_v13 }
 0x362   :  { %v956_v24 = vpop.xlane.xlu1 %955 }
 0x363   :  { %1737 = vpow2.f32 %v792_v14  ;;  %v957_v25 = vsub.f32 %v953_v50, %v956_v24 }
 0x364   :  { %v1732_v15 = vpop.eup %1731 }
 0x365   :  { %v293_v16 = vsel %vm32_vm0, %v1732_v15, 0.0  ;;  %v958_v29 = vmul.f32 1.442695, %v957_v25 }
 0x366   :  { %294 = vadd.xlane.f32.xlu1 %v293_v16  ;;  %v1123_v26 = vpop.xlane.xlu0 %1122 }
 0x367   :  { %v1124_v28 = vsub.f32 %v1120_v54, %v1123_v26  ;;  %1739 = vpow2.f32 %v958_v29 }
 0x368   :  { %v1734_v18 = vpop.eup %1733 }
 0x369   :  { %v460_v19 = vsel %vm32_vm0, %v1734_v18, 0.0  ;;  %v1125_v32 = vmul.f32 1.442695, %v1124_v28 }
 0x36a   :  { %461 = vadd.xlane.f32.xlu0 %v460_v19  ;;  %v1290_v27 = vpop.xlane.xlu1 %1289 }
 0x36b   :  { %v1291_v30 = vsub.f32 %v1287_v58, %v1290_v27  ;;  %1741 = vpow2.f32 %v1125_v32 }
 0x36c   :  { %v1736_v20 = vpop.eup %1735 }
 0x36d   :  { %v627_v21 = vsel %vm32_vm0, %v1736_v20, 0.0  ;;  %v1292_v33 = vmul.f32 1.442695, %v1291_v30 }
 0x36e   :  { %628 = vadd.xlane.f32.xlu1 %v627_v21  ;;  %v1457_v31 = vpop.xlane.xlu0 %1456  ;;  %v800_v44 = vpop.permute.xlu1 %799 }
 0x36f   :  { %v1458_v34 = vsub.f32 %v1454_v62, %v1457_v31  ;;  %1743 = vpow2.f32 %v1292_v33 }
 0x370   :  { %v1931_v22 = vpop.eup %1737 }
 0x371   :  { %v794_v23 = vsel %vm32_vm0, %v1931_v22, 0.0  ;;  %v1459_v35 = vmul.f32 1.442695, %v1458_v34 }
 0x372   :  { %795 = vadd.xlane.f32.xlu0 %v794_v23  ;;  %v633_v45 = vpop.permute.xlu0 %632 }
 0x373   :  { %1745 = vpow2.f32 %v1459_v35 }
 0x374   :  { %v1740_v36 = vpop.eup %1739 }
 0x375   :  { %v960_v38 = vsel %vm32_vm0, %v1740_v36, 0.0 }
 0x378   :  { %v1939_v37 = vpop.eup %1741 }
 0x379   :  { %v1127_v41 = vsel %vm32_vm0, %v1939_v37, 0.0 }
 0x37c   :  { %v1942_v39 = vpop.eup %1743 }
 0x37d   :  { %v1294_v40 = vsel %vm32_vm0, %v1942_v39, 0.0 }
 0x37f   :  { %1132 = vrot.lane.b32.xlu1 %v1860_v17, %s1772_s20 }
 0x380   :  { %v1948_v42 = vpop.eup %1745 }
 0x381   :  { %v1461_v43 = vsel %vm32_vm0, %v1948_v42, 0.0 }
 0x388   :  { %965 = vrot.lane.b32.xlu0 %v1860_v17, %s1773_s21 }
 0x3a3   :  { %961 = vadd.xlane.f32.xlu1 %v960_v38 }
 0x3a7   :  { %1295 = vadd.xlane.f32.xlu1 %v1294_v40  ;;  %1128 = vadd.xlane.f32.xlu0 %v1127_v41 }
 0x3ab   :  { %1462 = vadd.xlane.f32.xlu1 %v1461_v43 }
 0x3bc   :  { %1466 = vrot.lane.b32.xlu1 %v1860_v17, %s1774_s22 }
 0x3bd   :  { %1299 = vrot.lane.b32.xlu0 %v1860_v17, %s1775_s23 }
 0x3ef   :  { %v295_v46 = vpop.xlane.xlu1 %294 }
 0x3f0   :  { %1747 = vrcp.f32 %v295_v46 }
 0x3f3   :  { %v462_v47 = vpop.xlane.xlu0 %461 }
 0x3f4   :  { %1749 = vrcp.f32 %v462_v47 }
 0x3f7   :  { %v629_v48 = vpop.xlane.xlu1 %628 }
 0x3f8   :  { %1751 = vrcp.f32 %v629_v48 }
 0x3fb   :  { %v796_v49 = vpop.xlane.xlu0 %795  ;;  %v1133_v58 = vpop.permute.xlu1 %1132 }
 0x3fc   :  { %1753 = vrcp.f32 %v796_v49 }
 0x3fd   :  { %v1748_v50 = vpop.eup %1747 }
 0x3fe   :  { %v297_v51 = vmul.f32 %v1748_v50, %v1732_v15 }
 0x3ff   :  { %v966_v57 = vpop.permute.xlu0 %965 }
 0x400   :  { %1646 = vmatmul.mubr.msk.f32.vlgmr.msra.gmra.mxu0 %vm32_vm0, %v297_v51 }
 0x401   :  { %v1750_v52 = vpop.eup %1749  ;;  %1654 = vmatpush3.msra.mxu0 %v1926_v1  ;;  %1655 = vmatprep.mubr.msk.f32.mxu0 %vm1764_vm2, %v1763_v12 }
 0x402   :  { %1663 = vmatprep.subr.mxu0 %v1763_v12  ;;  %v464_v17 = vmul.f32 %v1750_v52, %v1734_v18 }
 0x404   :  { %1656 = vmatmul.mubr.msk.f32.vlgmr.msra.gmra.mxu0 %vm32_vm0, %v464_v17 }
 0x405   :  { %v1752_v53 = vpop.eup %1751  ;;  %1664 = vmatpush3.msra.mxu0 %v633_v45  ;;  %1665 = vmatprep.mubr.msk.f32.mxu0 %vm1764_vm2, %v1763_v12 }
 0x406   :  { %1673 = vmatprep.subr.mxu0 %v1763_v12  ;;  %v631_v54 = vmul.f32 %v1752_v53, %v1736_v20 }
 0x408   :  { %1666 = vmatmul.mubr.msk.f32.vlgmr.msra.gmra.mxu0 %vm32_vm0, %v631_v54 }
 0x409   :  { %v1754_v55 = vpop.eup %1753  ;;  %1674 = vmatpush3.msra.mxu0 %v800_v44  ;;  %1675 = vmatprep.mubr.msk.f32.mxu0 %vm1764_vm2, %v1763_v12 }
 0x40a   :  { %1683 = vmatprep.subr.mxu0 %v1763_v12  ;;  %v798_v56 = vmul.f32 %v1754_v55, %v1931_v22 }
 0x40c   :  { %1676 = vmatmul.mubr.msk.f32.vlgmr.msra.gmra.mxu0 %vm32_vm0, %v798_v56 }
 0x40d   :  { %1684 = vmatpush3.msra.mxu0 %v966_v57  ;;  %1685 = vmatprep.mubr.msk.f32.mxu0 %vm1764_vm2, %v1763_v12 }
 0x40e   :  { %1693 = vmatprep.subr.mxu0 %v1763_v12 }
 0x42c   :  { %v962_v59 = vpop.xlane.xlu1 %961 }
 0x42d   :  { %1755 = vrcp.f32 %v962_v59 }
 0x430   :  { %v1296_v60 = vpop.xlane.xlu1 %1295  ;;  %v1129_v61 = vpop.xlane.xlu0 %1128 }
 0x431   :  { %1757 = vrcp.f32 %v1129_v61 }
 0x432   :  { %1759 = vrcp.f32 %v1296_v60 }
 0x434   :  { %v1463_v62 = vpop.xlane.xlu1 %1462  ;;  %v1300_v4 = vpop.permute.xlu0 %1299 }
 0x435   :  { %1761 = vrcp.f32 %v1463_v62 }
 0x438   :  { %v1467_v7 = vpop.permute.xlu1 %1466 }
 0x43a   :  { %v1756_v63 = vpop.eup %1755 }
 0x43b   :  { %v964_v0 = vmul.f32 %v1756_v63, %v1740_v36 }
 0x43d   :  { %1686 = vmatmul.mubr.msk.f32.vlgmr.msra.gmra.mxu0 %vm32_vm0, %v964_v0 }
 0x43e   :  { %1694 = vmatpush3.msra.mxu0 %v1133_v58  ;;  %1695 = vmatprep.mubr.msk.f32.mxu0 %vm1764_vm2, %v1763_v12  ;;  %v1758_v1 = vpop.eup %1757 }
 0x43f   :  { %1703 = vmatprep.subr.mxu0 %v1763_v12  ;;  %v1131_v2 = vmul.f32 %v1758_v1, %v1939_v37  ;;  %v1760_v3 = vpop.eup %1759 }
 0x440   :  { %v1298_v5 = vmul.f32 %v1760_v3, %v1942_v39 }
 0x441   :  { %1696 = vmatmul.mubr.msk.f32.vlgmr.msra.gmra.mxu0 %vm32_vm0, %v1131_v2 }
 0x442   :  { %1704 = vmatpush3.msra.mxu0 %v1300_v4  ;;  %1705 = vmatprep.mubr.msk.f32.mxu0 %vm1764_vm2, %v1763_v12  ;;  %v1762_v6 = vpop.eup %1761 }
 0x443   :  { %1713 = vmatprep.subr.mxu0 %v1763_v12  ;;  %v1465_v8 = vmul.f32 %v1762_v6, %v1948_v42 }
 0x445   :  { %1706 = vmatmul.mubr.msk.f32.vlgmr.msra.gmra.mxu0 %vm32_vm0, %v1298_v5 }
 0x446   :  { %1714 = vmatpush3.msra.mxu0 %v1467_v7  ;;  %1715 = vmatprep.mubr.msk.f32.mxu0 %vm1764_vm2, %v1763_v12 }
 0x449   :  { %1716 = vmatmul.mubr.msk.f32.vlgmr.msra.gmra.mxu0 %vm32_vm0, %v1465_v8 }
 0x4c0   :  { %v370_v9 = vpop.f32.mrf.mxu0 }
 0x4c1   :  { %374 = vst.msk [vmem:[%s2027_s6] sm:$0xff] %vm32_vm0, %v370_v9 }
 0x4c2   :  { %v1647_v10 = vpop.f32.mrf.mxu0 }
 0x4c4   :  { %v537_v11 = vpop.f32.mrf.mxu0 }
 0x4c5   :  { %541 = vst.msk [vmem:[%s2027_s6 + $0x8] sm:$0xff] %vm32_vm0, %v537_v11 }
 0x4c6   :  { %v1657_v13 = vpop.f32.mrf.mxu0 }
 0x4c8   :  { %v704_v14 = vpop.f32.mrf.mxu0 }
 0x4c9   :  { %708 = vst.msk [vmem:[%s2027_s6 + $0x10] sm:$0xff] %vm32_vm0, %v704_v14 }
 0x4ca   :  { %v1667_v12 = vpop.f32.mrf.mxu0 }
 0x4cc   :  { %v871_v15 = vpop.f32.mrf.mxu0 }
 0x4cd   :  { %875 = vst.msk [vmem:[%s2027_s6 + $0x18] sm:$0xff] %vm32_vm0, %v871_v15 }
 0x4ce   :  { %v1677_v16 = vpop.f32.mrf.mxu0 }
 0x4fd   :  { %v1037_v18 = vpop.f32.mrf.mxu0 }
 0x4fe   :  { %1041 = vst.msk [vmem:[%s2027_s6 + $0x20] sm:$0xff] %vm32_vm0, %v1037_v18 }
 0x4ff   :  { %v1687_v19 = vpop.f32.mrf.mxu0 }
 0x501   :  { %v1204_v20 = vpop.f32.mrf.mxu0 }
 0x502   :  { %1208 = vst.msk [vmem:[%s2027_s6 + $0x28] sm:$0xff] %vm32_vm0, %v1204_v20 }
 0x503   :  { %v1697_v21 = vpop.f32.mrf.mxu0 }
 0x505   :  { %v1371_v22 = vpop.f32.mrf.mxu0 }
 0x506   :  { %1375 = vst.msk [vmem:[%s2027_s6 + $0x30] sm:$0xff] %vm32_vm0, %v1371_v22 }
 0x507   :  { %v1707_v23 = vpop.f32.mrf.mxu0 }
 0x509   :  { %v1538_v24 = vpop.f32.mrf.mxu0 }
 0x50a   :  { %1542 = vst.msk [vmem:[%s2027_s6 + $0x38] sm:$0xff] %vm32_vm0, %v1538_v24 }
 0x50b   :  { %v1717_v25 = vpop.f32.mrf.mxu0 }

// kernel: transformer_forward_pallas.6
= control target key start
LH: loop header
LB: loop body
LE: loop exit
PB: predicated region body
PF: predicated region fallthrough
CT: control target
= control target key end

     0   :  { %s2270_s21 = smov 0   ;;  %s2462_s0 = inlined_call_operand.vmem [shape: f32[2,16,8], index: 0, kind: input, shape index: {}]   ;;  %s2463_s1 = inlined_call_operand.vmem [shape: f32[2,8,16], index: 1, kind: input, shape index: {}]   ;;  %s2464_s2 = inlined_call_operand.vmem [shape: f32[2,1,16], index: 2, kind: input, shape index: {}]   ;;  %s2465_s3 = inlined_call_operand.vmem [shape: f32[2,16,48], index: 3, kind: input, shape index: {}]   ;;  %s2466_s4 = inlined_call_operand.vmem [shape: f32[2,1,48], index: 4, kind: input, shape index: {}]   ;;  %s2467_s5 = inlined_call_operand.vmem [shape: f32[2,16,16], index: 5, kind: output, shape index: {0}]   ;;  %s2468_s6 = inlined_call_operand.vmem [shape: f32[2,64,4], index: 6, kind: output, shape index: {1}]  }
   0x1 LB: > { %s1980_s22 = sadd.s32 4294967295, %s2220_s21   ;;  %p1984_p0 = scmp.ge.s32.totalorder %s2220_s21, 1  ;;  %s2220_s21 = sphi %s2270_s21, %s17_s21  }
   0x2   : > { %p250_p1 = scmp.lt.s32.totalorder %s2220_s21, 3 }
   0x4   : > { %p251_p2 = pnand %p1984_p0, %p250_p1 }
   0x5   : > { %p300_p3 = scmp.lt.s32.totalorder (!%p251_p2), %s1980_s22, 1  ;;  %s2224_s19 = smov (!%p251_p2), 116  }
   0x6   : > { %254 = sbr.rel (%p251_p2) target bundleno = 1305 (0x519), region = 40  ;;  %s2225_s20 = smov (!%p251_p2), 124  }
   0x7   : > { %s2228_s25 = smov (!%p251_p2), 88   ;;  %s2229_s26 = smov (!%p251_p2), 104  }
   0x8   : > { %s2231_s28 = smov (!%p251_p2), 108   ;;  %s2232_s29 = smov (!%p251_p2), 120  }
   0x9   : > { %s2234_s7 = smov (!%p251_p2), 96  }
   0xb   : > { %s2470_s22 = smov (!%p300_p3, %s1980_s22), 1  ;;  %vm340_vm0 = vcmask 64512   ;;  %vm422_vm1 = vcmask 130048   ;;  %v2222_v10 = vmov 0.0   ;;  %vm2223_vm2 = vmmov 0  }
   0xc   : > { %s1987_s23 = sshll.u32 %s2470_s22, 3  ;;  %s2026_s24 = sshll.u32 %s2470_s22, 4  ;;  %vm518_vm3 = vcmask 31744  }
   0xd   : > { %s308_s27 = scalar_lea.vmem %s2463_s1, %s1987_s23  ;;  %s304_s30 = scalar_lea.vmem %s2462_s0, %s2026_s24 }
   0xe   : > { %v332_v0 = vld [vmem:[%s308_s27] sm:$0xff]  ;;  %v331_v2 = vld [vmem:[%s304_s30 + $0x8] sm:$0xff]  ;;  %s316_s9 = scalar_lea.vmem %s2465_s3, %s2026_s24  ;;  %s311_s12 = scalar_lea.vmem %s2464_s2, %s2470_s22 }
   0xf   : > { %v330_v1 = vld [vmem:[%s304_s30] sm:$0xff]  ;;  %2069 = vmatprep.subr.mxu0 %v332_v0  ;;  %v426_v3 = vld [vmem:[%s316_s9 + $0x8] sm:$0xff]  ;;  %s324_s15 = scalar_lea.vmem %s2467_s5, %s2026_s24  ;;  %s319_s18 = scalar_lea.vmem %s2466_s4, %s2470_s22 }
  0x10   : > { %2071 = vmatprep.mubr.msk.f32.mxu0 %vm340_vm0, %v330_v1  ;;  %2070 = vmatpush3.msra.mxu0 %v332_v0  ;;  %v425_v4 = vld [vmem:[%s316_s9] sm:$0xff]  ;;  %s2226_s23 = smov 100   ;;  %s2227_s24 = smov 112  }
  0x11   : > { %2072 = vmatmul.mubr.msk.f32.vlgmr.msra.gmra.mxu0 %vm340_vm0, %v331_v2  ;;  %2074 = vmatprep.subr.mxu1 %v426_v3  ;;  %v1994_v5 = vld [vmem:[%s311_s12] ss:$0 sm:$0xff]  ;;  %s2230_s27 = smov 92   ;;  %s2233_s30 = smov 84  }
  0x12   : > { %2075 = vmatpush3.msra.mxu1 %v426_v3  ;;  %2081 = vmatprep.subr.mxu0 %v2222_v10  ;;  %v1997_v12 = vld [vmem:[%s319_s18] ss:$0 sm:$0xff]  ;;  %s2029_s8 = sshll.u32 %s2470_s22, 6 }
  0x13   : > { %2076 = vmatprep.subr.mxu1 %v425_v4  ;;  %2083 = vmatprep.mubr.msk.f32.mxu0 %vm2223_vm2, %v2222_v10  ;;  %s329_s11 = scalar_lea.vmem %s2468_s6, %s2029_s8 }
  0x14   : > { %2077 = vmatpush3.msra.mxu1 %v425_v4 }
  0x15   : > { %2086 = vmatprep.subr.mxu1 %v2222_v10 }
  0xd1   : > { %v2073_v6 = vpop.f32.mrf.mxu0 }
  0xd2   : > { %v419_v7 = vadd.f32 %v2073_v6, %v1994_v5 }
  0xd3   : > { %v413_v8 = vpop.f32.mrf.mxu0 }
  0xd4   : > { %v414_v9 = vadd.f32 %v1994_v5, %v413_v8  ;;  %424 = vst.msk [vmem:[%s324_s15 + $0x8] sm:$0xff] %vm422_vm1, %v419_v7 }
  0xd6   : > { %423 = vst.msk [vmem:[%s324_s15] sm:$0xff] %vm422_vm1, %v414_v9  ;;  %2078 = vmatprep.mubr.msk.f32.mxu1 %vm422_vm1, %v414_v9 }
  0xd7   : > { %2079 = vmatmul.mubr.msk.f32.vlgmr.msra.gmra.mxu1 %vm422_vm1, %v419_v7 }
  0xd8   : > { %2088 = vmatprep.mubr.msk.f32.mxu1 %vm2223_vm2, %v2222_v10 }
 0x197   : > { %v2080_v11 = vpop.f32.mrf.mxu1 }
 0x198   : > { %v2318_v15 = vadd.f32 %v2080_v11, %v1997_v12 }
 0x199   : > { %v506_v13 = vpop.f32.mrf.mxu1 }
 0x19a   : > { %v2310_v14 = vadd.f32 %v1997_v12, %v506_v13 }
 0x19c   : > { %682 = vrot.lane.b32.xlu1 %v2310_v14, %s2224_s19  ;;  %516 = vrot.lane.b32.xlu0 %v2310_v14, %s2225_s20 }
 0x1a0   : > { %851 = vrot.lane.b32.xlu1 %v2310_v14, %s2226_s23  ;;  %684 = vrot.lane.b32.xlu0 %v2310_v14, %s2227_s24 }
 0x1a4   : > { %1018 = vrot.lane.b32.xlu1 %v2310_v14, %s2228_s25  ;;  %849 = vrot.lane.b32.xlu0 %v2310_v14, %s2229_s26 }
 0x1a8   : > { %1184 = vrot.lane.b32.xlu1 %v2318_v15, %s2225_s20  ;;  %1016 = vrot.lane.b32.xlu0 %v2310_v14, %s2230_s27 }
 0x1ac   : > { %1349 = vrot.lane.b32.xlu1 %v2318_v15, %s2224_s19  ;;  %1351 = vrot.lane.b32.xlu0 %v2318_v15, %s2227_s24 }
 0x1b0   : > { %1516 = vrot.lane.b32.xlu1 %v2318_v15, %s2229_s26  ;;  %1518 = vrot.lane.b32.xlu0 %v2318_v15, %s2226_s23 }
 0x1b4   : > { %1683 = vrot.lane.b32.xlu1 %v2318_v15, %s2230_s27  ;;  %1685 = vrot.lane.b32.xlu0 %v2318_v15, %s2228_s25 }
 0x1b8   : > { %772 = vrot.lane.b32.xlu1 %v2310_v14, %s2231_s28  ;;  %605 = vrot.lane.b32.xlu0 %v2310_v14, %s2232_s29 }
 0x20e   : > { %v683_v16 = vpop.permute.xlu1 %682  ;;  %v517_v17 = vpop.permute.xlu0 %516 }
 0x20f   : > { %2082 = vmatpush3.xpose.msk.msra.mxu0 %vm518_vm3, %v517_v17 }
 0x210   : > { %2091 = vmatprep.subr.mxu0 %v2222_v10 }
 0x212   : > { %v852_v18 = vpop.permute.xlu1 %851  ;;  %2084 = vmatmul.mubr.msk.f32.vlgmr.msra.gmra.mxu0 %vm518_vm3, %v2310_v14  ;;  %v685_v19 = vpop.permute.xlu0 %684 }
 0x213   : > { %2092 = vmatpush3.xpose.msk.msra.mxu0 %vm518_vm3, %v685_v19  ;;  %2093 = vmatprep.mubr.msk.f32.mxu0 %vm2223_vm2, %v2222_v10 }
 0x214   : > { %2101 = vmatprep.subr.mxu0 %v2222_v10 }
 0x216   : > { %v1019_v20 = vpop.permute.xlu1 %1018  ;;  %2094 = vmatmul.mubr.msk.f32.vlgmr.msra.gmra.mxu0 %vm518_vm3, %v683_v16  ;;  %v850_v21 = vpop.permute.xlu0 %849 }
 0x217   : > { %2102 = vmatpush3.xpose.msk.msra.mxu0 %vm518_vm3, %v852_v18  ;;  %2103 = vmatprep.mubr.msk.f32.mxu0 %vm2223_vm2, %v2222_v10 }
 0x218   : > { %2111 = vmatprep.subr.mxu0 %v2222_v10 }
 0x21a   : > { %2104 = vmatmul.mubr.msk.f32.vlgmr.msra.gmra.mxu0 %vm518_vm3, %v850_v21  ;;  %v1017_v22 = vpop.permute.xlu0 %1016  ;;  %v1185_v23 = vpop.permute.xlu1 %1184 }
 0x21b   : > { %2112 = vmatpush3.xpose.msk.msra.mxu0 %vm518_vm3, %v1019_v20  ;;  %2113 = vmatprep.mubr.msk.f32.mxu0 %vm2223_vm2, %v2222_v10 }
 0x21c   : > { %2121 = vmatprep.subr.mxu0 %v2222_v10 }
 0x21e   : > { %2114 = vmatmul.mubr.msk.f32.vlgmr.msra.gmra.mxu0 %vm518_vm3, %v1017_v22  ;;  %v1352_v24 = vpop.permute.xlu0 %1351  ;;  %v1350_v25 = vpop.permute.xlu1 %1349 }
 0x21f   : > { %2122 = vmatpush3.xpose.msk.msra.mxu0 %vm518_vm3, %v1185_v23  ;;  %2123 = vmatprep.mubr.msk.f32.mxu0 %vm2223_vm2, %v2222_v10 }
 0x220   : > { %2131 = vmatprep.subr.mxu0 %v2222_v10 }
 0x222   : > { %2124 = vmatmul.mubr.msk.f32.vlgmr.msra.gmra.mxu0 %vm518_vm3, %v2318_v15  ;;  %v1519_v26 = vpop.permute.xlu0 %1518  ;;  %v1517_v28 = vpop.permute.xlu1 %1516 }
 0x223   : > { %2132 = vmatpush3.xpose.msk.msra.mxu0 %vm518_vm3, %v1352_v24  ;;  %2133 = vmatprep.mubr.msk.f32.mxu0 %vm2223_vm2, %v2222_v10 }
 0x224   : > { %2141 = vmatprep.subr.mxu0 %v2222_v10 }
 0x226   : > { %2134 = vmatmul.mubr.msk.f32.vlgmr.msra.gmra.mxu0 %vm518_vm3, %v1350_v25  ;;  %v1686_v27 = vpop.permute.xlu0 %1685  ;;  %v1684_v30 = vpop.permute.xlu1 %1683 }
 0x227   : > { %2142 = vmatpush3.xpose.msk.msra.mxu0 %vm518_vm3, %v1519_v26  ;;  %2143 = vmatprep.mubr.msk.f32.mxu0 %vm2223_vm2, %v2222_v10 }
 0x228   : > { %2151 = vmatprep.subr.mxu0 %v2222_v10 }
 0x22a   : > { %2144 = vmatmul.mubr.msk.f32.vlgmr.msra.gmra.mxu0 %vm518_vm3, %v1517_v28  ;;  %v606_v29 = vpop.permute.xlu0 %605  ;;  %v2384_v63 = vpop.permute.xlu1 %772 }
 0x22b   : > { %2087 = vmatpush3.msra.mxu1 %v606_v29  ;;  %2152 = vmatpush3.xpose.msk.msra.mxu0 %vm518_vm3, %v1686_v27 }
 0x22c   : > { %2153 = vmatprep.mubr.msk.f32.mxu0 %vm2223_vm2, %v2222_v10  ;;  %2096 = vmatprep.subr.mxu1 %v2222_v10 }
 0x22e   : > { %2154 = vmatmul.mubr.msk.f32.vlgmr.msra.gmra.mxu0 %vm518_vm3, %v1684_v30 }
 0x2d2   : > { %v589_v31 = vpop.f32.mrf.mxu0 }
 0x2d3   : > { %v593_v32 = vmul.f32 0.5, %v589_v31 }
 0x2d4   : > { %v2085_v33 = vpop.f32.mrf.mxu0 }
 0x2d5   : > { %v594_v34 = vsel %vm340_vm0, %v593_v32, -inf }
 0x2d6   : > { %595 = vmax.xlane.f32.xlu0 %v594_v34  ;;  %v756_v35 = vpop.f32.mrf.mxu0 }
 0x2d7   : > { %v760_v36 = vmul.f32 0.5, %v756_v35 }
 0x2d8   : > { %v2095_v37 = vpop.f32.mrf.mxu0 }
 0x2d9   : > { %v761_v38 = vsel %vm340_vm0, %v760_v36, -inf }
 0x2da   : > { %762 = vmax.xlane.f32.xlu1 %v761_v38  ;;  %v923_v39 = vpop.f32.mrf.mxu0 }
 0x2db   : > { %v927_v40 = vmul.f32 0.5, %v923_v39 }
 0x2dc   : > { %v2105_v41 = vpop.f32.mrf.mxu0 }
 0x2dd   : > { %v928_v42 = vsel %vm340_vm0, %v927_v40, -inf }
 0x2de   : > { %929 = vmax.xlane.f32.xlu0 %v928_v42  ;;  %v1090_v43 = vpop.f32.mrf.mxu0 }
 0x2df   : > { %v1094_v44 = vmul.f32 0.5, %v1090_v43 }
 0x2e0   : > { %v2115_v45 = vpop.f32.mrf.mxu0 }
 0x2e1   : > { %v1095_v46 = vsel %vm340_vm0, %v1094_v44, -inf }
 0x2e2   : > { %1096 = vmax.xlane.f32.xlu0 %v1095_v46  ;;  %v1256_v47 = vpop.f32.mrf.mxu0 }
 0x2e3   : > { %v1260_v48 = vmul.f32 0.5, %v1256_v47 }
 0x2e4   : > { %v2125_v49 = vpop.f32.mrf.mxu0 }
 0x2e5   : > { %v1261_v50 = vsel %vm340_vm0, %v1260_v48, -inf }
 0x2e6   : > { %1262 = vmax.xlane.f32.xlu1 %v1261_v50  ;;  %v1423_v51 = vpop.f32.mrf.mxu0 }
 0x2e7   : > { %v1427_v52 = vmul.f32 0.5, %v1423_v51 }
 0x2e8   : > { %v2135_v53 = vpop.f32.mrf.mxu0 }
 0x2e9   : > { %v1428_v54 = vsel %vm340_vm0, %v1427_v52, -inf }
 0x2ea   : > { %1429 = vmax.xlane.f32.xlu0 %v1428_v54  ;;  %v1590_v55 = vpop.f32.mrf.mxu0 }
 0x2eb   : > { %v1594_v56 = vmul.f32 0.5, %v1590_v55 }
 0x2ec   : > { %v2145_v57 = vpop.f32.mrf.mxu0 }
 0x2ed   : > { %v1595_v58 = vsel %vm340_vm0, %v1594_v56, -inf }
 0x2ee   : > { %1596 = vmax.xlane.f32.xlu1 %v1595_v58  ;;  %v1757_v59 = vpop.f32.mrf.mxu0 }
 0x2ef   : > { %v1761_v60 = vmul.f32 0.5, %v1757_v59 }
 0x2f0   : > { %v2155_v61 = vpop.f32.mrf.mxu0 }
 0x2f1   : > { %v1762_v62 = vsel %vm340_vm0, %v1761_v60, -inf }
 0x2f2   : > { %1763 = vmax.xlane.f32.xlu0 %v1762_v62 }
 0x2ff   : > { %1106 = vrot.lane.b32.xlu1 %v2310_v14, %s2233_s30 }
 0x308   : > { %939 = vrot.lane.b32.xlu0 %v2310_v14, %s2234_s7 }
 0x35f   : > { %v596_v0 = vpop.xlane.xlu0 %595 }
 0x360   : > { %v597_v1 = vsub.f32 %v593_v32, %v596_v0 }
 0x362   : > { %v598_v2 = vmul.f32 1.442695, %v597_v1 }
 0x363   : > { %v763_v3 = vpop.xlane.xlu1 %762 }
 0x364   : > { %2182 = vpow2.f32 %v598_v2  ;;  %v764_v4 = vsub.f32 %v760_v36, %v763_v3 }
 0x366   : > { %v765_v5 = vmul.f32 1.442695, %v764_v4 }
 0x367   : > { %v930_v6 = vpop.xlane.xlu0 %929 }
 0x368   : > { %2184 = vpow2.f32 %v765_v5  ;;  %v931_v7 = vsub.f32 %v927_v40, %v930_v6 }
 0x36a   : > { %v932_v8 = vmul.f32 1.442695, %v931_v7 }
 0x36b   : > { %v1097_v9 = vpop.xlane.xlu0 %1096 }
 0x36c   : > { %2186 = vpow2.f32 %v932_v8  ;;  %v1098_v11 = vsub.f32 %v1094_v44, %v1097_v9 }
 0x36e   : > { %v1099_v12 = vmul.f32 1.442695, %v1098_v11 }
 0x36f   : > { %v1263_v22 = vpop.xlane.xlu1 %1262 }
 0x370   : > { %2188 = vpow2.f32 %v1099_v12  ;;  %v1264_v23 = vsub.f32 %v1260_v48, %v1263_v22 }
 0x371   : > { %v2183_v13 = vpop.eup %2182 }
 0x372   : > { %v600_v14 = vsel %vm340_vm0, %v2183_v13, 0.0  ;;  %v1265_v27 = vmul.f32 1.442695, %v1264_v23 }
 0x373   : > { %601 = vadd.xlane.f32.xlu1 %v600_v14  ;;  %v1430_v24 = vpop.xlane.xlu0 %1429 }
 0x374   : > { %v1431_v26 = vsub.f32 %v1427_v52, %v1430_v24  ;;  %2190 = vpow2.f32 %v1265_v27 }
 0x375   : > { %v2185_v16 = vpop.eup %2184 }
 0x376   : > { %v767_v17 = vsel %vm340_vm0, %v2185_v16, 0.0  ;;  %v1432_v30 = vmul.f32 1.442695, %v1431_v26 }
 0x377   : > { %768 = vadd.xlane.f32.xlu0 %v767_v17  ;;  %v1597_v25 = vpop.xlane.xlu1 %1596 }
 0x378   : > { %v1598_v28 = vsub.f32 %v1594_v56, %v1597_v25  ;;  %2192 = vpow2.f32 %v1432_v30 }
 0x379   : > { %v2187_v18 = vpop.eup %2186 }
 0x37a   : > { %v934_v19 = vsel %vm340_vm0, %v2187_v18, 0.0  ;;  %v1599_v31 = vmul.f32 1.442695, %v1598_v28 }
 0x37b   : > { %935 = vadd.xlane.f32.xlu1 %v934_v19  ;;  %v1764_v29 = vpop.xlane.xlu0 %1763  ;;  %v1107_v42 = vpop.permute.xlu1 %1106 }
 0x37c   : > { %v1765_v32 = vsub.f32 %v1761_v60, %v1764_v29  ;;  %2194 = vpow2.f32 %v1599_v31 }
 0x37d   : > { %v2389_v20 = vpop.eup %2188 }
 0x37e   : > { %v1101_v21 = vsel %vm340_vm0, %v2389_v20, 0.0  ;;  %v1766_v33 = vmul.f32 1.442695, %v1765_v32 }
 0x37f   : > { %1102 = vadd.xlane.f32.xlu0 %v1101_v21  ;;  %v940_v43 = vpop.permute.xlu0 %939 }
 0x380   : > { %2196 = vpow2.f32 %v1766_v33 }
 0x381   : > { %v2191_v34 = vpop.eup %2190 }
 0x382   : > { %v1267_v36 = vsel %vm340_vm0, %v2191_v34, 0.0 }
 0x385   : > { %v2397_v35 = vpop.eup %2192 }
 0x386   : > { %v1434_v39 = vsel %vm340_vm0, %v2397_v35, 0.0 }
 0x389   : > { %v2400_v37 = vpop.eup %2194 }
 0x38a   : > { %v1601_v38 = vsel %vm340_vm0, %v2400_v37, 0.0 }
 0x38c   : > { %1439 = vrot.lane.b32.xlu1 %v2318_v15, %s2231_s28 }
 0x38d   : > { %v2406_v40 = vpop.eup %2196 }
 0x38e   : > { %v1768_v41 = vsel %vm340_vm0, %v2406_v40, 0.0 }
 0x395   : > { %1272 = vrot.lane.b32.xlu0 %v2318_v15, %s2232_s29 }
 0x3b0   : > { %1268 = vadd.xlane.f32.xlu1 %v1267_v36 }
 0x3b4   : > { %1602 = vadd.xlane.f32.xlu1 %v1601_v38  ;;  %1435 = vadd.xlane.f32.xlu0 %v1434_v39 }
 0x3b8   : > { %1769 = vadd.xlane.f32.xlu1 %v1768_v41 }
 0x3c9   : > { %1773 = vrot.lane.b32.xlu1 %v2318_v15, %s2233_s30 }
 0x3ca   : > { %1606 = vrot.lane.b32.xlu0 %v2318_v15, %s2234_s7 }
 0x3fc   : > { %v602_v44 = vpop.xlane.xlu1 %601 }
 0x3fd   : > { %2198 = vrcp.f32 %v602_v44 }
 0x400   : > { %v769_v45 = vpop.xlane.xlu0 %768 }
 0x401   : > { %2200 = vrcp.f32 %v769_v45 }
 0x404   : > { %v936_v46 = vpop.xlane.xlu1 %935 }
 0x405   : > { %2202 = vrcp.f32 %v936_v46 }
 0x408   : > { %v1103_v47 = vpop.xlane.xlu0 %1102  ;;  %v1440_v56 = vpop.permute.xlu1 %1439 }
 0x409   : > { %2204 = vrcp.f32 %v1103_v47 }
 0x40a   : > { %v2199_v48 = vpop.eup %2198 }
 0x40b   : > { %v604_v49 = vmul.f32 %v2199_v48, %v2183_v13 }
 0x40c   : > { %v1273_v55 = vpop.permute.xlu0 %1272 }
 0x40d   : > { %2089 = vmatmul.mubr.msk.f32.vlgmr.msra.gmra.mxu1 %vm340_vm0, %v604_v49 }
 0x40e   : > { %v2201_v50 = vpop.eup %2200  ;;  %2097 = vmatpush3.msra.mxu1 %v2384_v63  ;;  %2098 = vmatprep.mubr.msk.f32.mxu1 %vm2223_vm2, %v2222_v10 }
 0x40f   : > { %2106 = vmatprep.subr.mxu1 %v2222_v10  ;;  %v771_v15 = vmul.f32 %v2201_v50, %v2185_v16 }
 0x411   : > { %2099 = vmatmul.mubr.msk.f32.vlgmr.msra.gmra.mxu1 %vm340_vm0, %v771_v15 }
 0x412   : > { %v2203_v51 = vpop.eup %2202  ;;  %2107 = vmatpush3.msra.mxu1 %v940_v43  ;;  %2108 = vmatprep.mubr.msk.f32.mxu1 %vm2223_vm2, %v2222_v10 }
 0x413   : > { %2116 = vmatprep.subr.mxu1 %v2222_v10  ;;  %v938_v52 = vmul.f32 %v2203_v51, %v2187_v18 }
 0x415   : > { %2109 = vmatmul.mubr.msk.f32.vlgmr.msra.gmra.mxu1 %vm340_vm0, %v938_v52 }
 0x416   : > { %v2205_v53 = vpop.eup %2204  ;;  %2117 = vmatpush3.msra.mxu1 %v1107_v42  ;;  %2118 = vmatprep.mubr.msk.f32.mxu1 %vm2223_vm2, %v2222_v10 }
 0x417   : > { %2126 = vmatprep.subr.mxu1 %v2222_v10  ;;  %v1105_v54 = vmul.f32 %v2205_v53, %v2389_v20 }
 0x419   : > { %2119 = vmatmul.mubr.msk.f32.vlgmr.msra.gmra.mxu1 %vm340_vm0, %v1105_v54 }
 0x41a   : > { %2127 = vmatpush3.msra.mxu1 %v1273_v55  ;;  %2128 = vmatprep.mubr.msk.f32.mxu1 %vm2223_vm2, %v2222_v10 }
 0x41b   : > { %2136 = vmatprep.subr.mxu1 %v2222_v10 }
 0x439   : > { %v1269_v57 = vpop.xlane.xlu1 %1268 }
 0x43a   : > { %2206 = vrcp.f32 %v1269_v57 }
 0x43d   : > { %v1603_v58 = vpop.xlane.xlu1 %1602  ;;  %v1436_v59 = vpop.xlane.xlu0 %1435 }
 0x43e   : > { %2208 = vrcp.f32 %v1436_v59 }
 0x43f   : > { %2210 = vrcp.f32 %v1603_v58 }
 0x441   : > { %v1770_v60 = vpop.xlane.xlu1 %1769  ;;  %v1607_v2 = vpop.permute.xlu0 %1606 }
 0x442   : > { %2212 = vrcp.f32 %v1770_v60 }
 0x445   : > { %v1774_v5 = vpop.permute.xlu1 %1773 }
 0x447   : > { %v2207_v61 = vpop.eup %2206 }
 0x448   : > { %v1271_v62 = vmul.f32 %v2207_v61, %v2191_v34 }
 0x44a   : > { %2129 = vmatmul.mubr.msk.f32.vlgmr.msra.gmra.mxu1 %vm340_vm0, %v1271_v62 }
 0x44b   : > { %2137 = vmatpush3.msra.mxu1 %v1440_v56  ;;  %2138 = vmatprep.mubr.msk.f32.mxu1 %vm2223_vm2, %v2222_v10  ;;  %v2209_v63 = vpop.eup %2208 }
 0x44c   : > { %2146 = vmatprep.subr.mxu1 %v2222_v10  ;;  %v1438_v0 = vmul.f32 %v2209_v63, %v2397_v35  ;;  %v2211_v1 = vpop.eup %2210 }
 0x44d   : > { %v1605_v3 = vmul.f32 %v2211_v1, %v2400_v37 }
 0x44e   : > { %2139 = vmatmul.mubr.msk.f32.vlgmr.msra.gmra.mxu1 %vm340_vm0, %v1438_v0 }
 0x44f   : > { %2147 = vmatpush3.msra.mxu1 %v1607_v2  ;;  %2148 = vmatprep.mubr.msk.f32.mxu1 %vm2223_vm2, %v2222_v10  ;;  %v2213_v4 = vpop.eup %2212 }
 0x450   : > { %2156 = vmatprep.subr.mxu1 %v2222_v10  ;;  %v1772_v6 = vmul.f32 %v2213_v4, %v2406_v40 }
 0x452   : > { %2149 = vmatmul.mubr.msk.f32.vlgmr.msra.gmra.mxu1 %vm340_vm0, %v1605_v3 }
 0x453   : > { %2157 = vmatpush3.msra.mxu1 %v1774_v5  ;;  %2158 = vmatprep.mubr.msk.f32.mxu1 %vm2223_vm2, %v2222_v10 }
 0x456   : > { %2159 = vmatmul.mubr.msk.f32.vlgmr.msra.gmra.mxu1 %vm340_vm0, %v1772_v6 }
 0x4cd   : > { %v677_v7 = vpop.f32.mrf.mxu1 }
 0x4ce   : > { %681 = vst.msk [vmem:[%s329_s11] sm:$0xff] %vm518_vm3, %v677_v7 }
 0x4cf   : > { %v2090_v8 = vpop.f32.mrf.mxu1 }
 0x4d1   : > { %v844_v9 = vpop.f32.mrf.mxu1 }
 0x4d2   : > { %848 = vst.msk [vmem:[%s329_s11 + $0x8] sm:$0xff] %vm518_vm3, %v844_v9 }
 0x4d3   : > { %v2100_v11 = vpop.f32.mrf.mxu1 }
 0x4d5   : > { %v1011_v12 = vpop.f32.mrf.mxu1 }
 0x4d6   : > { %1015 = vst.msk [vmem:[%s329_s11 + $0x10] sm:$0xff] %vm518_vm3, %v1011_v12 }
 0x4d7   : > { %v2110_v10 = vpop.f32.mrf.mxu1 }
 0x4d9   : > { %v1178_v13 = vpop.f32.mrf.mxu1 }
 0x4da   : > { %1182 = vst.msk [vmem:[%s329_s11 + $0x18] sm:$0xff] %vm518_vm3, %v1178_v13 }
 0x4db   : > { %v2120_v14 = vpop.f32.mrf.mxu1 }
 0x50a   : > { %v1344_v16 = vpop.f32.mrf.mxu1 }
 0x50b   : > { %1348 = vst.msk [vmem:[%s329_s11 + $0x20] sm:$0xff] %vm518_vm3, %v1344_v16 }
 0x50c   : > { %v2130_v17 = vpop.f32.mrf.mxu1 }
 0x50e   : > { %v1511_v18 = vpop.f32.mrf.mxu1 }
 0x50f   : > { %1515 = vst.msk [vmem:[%s329_s11 + $0x28] sm:$0xff] %vm518_vm3, %v1511_v18 }
 0x510   : > { %v2140_v19 = vpop.f32.mrf.mxu1 }
 0x512   : > { %v1678_v20 = vpop.f32.mrf.mxu1 }
 0x513   : > { %1682 = vst.msk [vmem:[%s329_s11 + $0x30] sm:$0xff] %vm518_vm3, %v1678_v20 }
 0x514   : > { %v2150_v21 = vpop.f32.mrf.mxu1 }
 0x516   : > { %v1845_v22 = vpop.f32.mrf.mxu1 }
 0x517   : > { %1849 = vst.msk [vmem:[%s329_s11 + $0x38] sm:$0xff] %vm518_vm3, %v1845_v22 }
 0x518   : > { %v2160_v23 = vpop.f32.mrf.mxu1 }
 0x519 PF: > { %s17_s21 = sadd.s32 1, %s2220_s21  }
 0x51a   : > { %p14_p4 = scmp.ge.s32.totalorder %s17_s21, 4  }
 0x51c   :  { %16 = sbr.rel (!%p14_p4) target bundleno = 1 (0x1), region = 94 }

// kernel: transformer_forward_pallas.9
= control target key start
LH: loop header
LB: loop body
LE: loop exit
PB: predicated region body
PF: predicated region fallthrough
CT: control target
= control target key end

     0   :  { %vm53_vm0 = vcmask 261120   ;;  %v1956_v37 = vmov 0.0   ;;  %vm372_vm1 = vcmask 64512   ;;  %s1957_s20 = smov 112   ;;  %s1958_s21 = smov 96   ;;  %vm1960_vm2 = vmmov 0   ;;  %s2285_s3 = inlined_call_operand.vmem [shape: f32[1,32,32], index: 3, kind: input, shape index: {}]   ;;  %s2286_s0 = inlined_call_operand.vmem [shape: f32[1,16,32], index: 0, kind: input, shape index: {}]   ;;  %s2287_s4 = inlined_call_operand.vmem [shape: f32[1,1,32], index: 4, kind: input, shape index: {}]   ;;  %s2288_s1 = inlined_call_operand.vmem [shape: f32[1,16,32], index: 1, kind: input, shape index: {}]   ;;  %s2289_s9 = inlined_call_operand.vmem [shape: f32[1,32,64], index: 9, kind: input, shape index: {}]   ;;  %s2290_s2 = inlined_call_operand.vmem [shape: f32[1,16,32], index: 2, kind: input, shape index: {}]   ;;  %s2291_s7 = inlined_call_operand.vmem [shape: f32[1,32,32], index: 7, kind: input, shape index: {}]   ;;  %s2292_s5 = inlined_call_operand.vmem [shape: f32[1,1,32], index: 5, kind: input, shape index: {}]   ;;  %s2293_s6 = inlined_call_operand.vmem [shape: f32[1,1,32], index: 6, kind: input, shape index: {}]   ;;  %s2294_s11 = inlined_call_operand.vmem [shape: f32[1,16,32], index: 11, kind: output, shape index: {0}]   ;;  %s2295_s10 = inlined_call_operand.vmem [shape: f32[1,1,64], index: 10, kind: input, shape index: {}]   ;;  %s2296_s8 = inlined_call_operand.vmem [shape: f32[1,1,32], index: 8, kind: input, shape index: {}]   ;;  %s2297_s12 = inlined_call_operand.vmem [shape: f32[1,64,8], index: 12, kind: output, shape index: {1}]  }
   0x1   :  { %v45_v0 = vld [vmem:[%s2285_s3 + $0x18] sm:$0xff]  ;;  %v44_v1 = vld [vmem:[%s2285_s3 + $0x10] sm:$0xff]  ;;  %v40_v2 = vld [vmem:[%s2286_s0] sm:$0xff]  ;;  %s1961_s23 = smov 120   ;;  %s1962_s24 = smov 104  }
   0x2   :  { %1798 = vmatprep.subr.mxu0 %v45_v0  ;;  %v43_v3 = vld [vmem:[%s2285_s3 + $0x8] sm:$0xff]  ;;  %1806 = vmatprep.mubr.msk.f32.mxu0 %vm53_vm0, %v40_v2  ;;  %v42_v4 = vld [vmem:[%s2285_s3] sm:$0xff]  ;;  %v283_v17 = vld [vmem:[%s2289_s9 + $0x18] sm:$0xff]  ;;  %s1964_s25 = smov 72  }
   0x3   :  { %1799 = vmatpush3.msra.mxu0 %v45_v0  ;;  %v41_v5 = vld [vmem:[%s2286_s0 + $0x8] sm:$0xff]  ;;  %v1713_v7 = vld [vmem:[%s2287_s4] ss:$0 sm:$0xff]  ;;  %v282_v28 = vld [vmem:[%s2289_s9 + $0x10] sm:$0xff] }
   0x4   :  { %1800 = vmatprep.subr.mxu0 %v44_v1  ;;  %v135_v9 = vld [vmem:[%s2288_s1] sm:$0xff]  ;;  %v136_v12 = vld [vmem:[%s2288_s1 + $0x8] sm:$0xff]  ;;  %v189_v33 = vld [vmem:[%s2291_s7 + $0x18] sm:$0xff] }
   0x5   :  { %1801 = vmatpush3.msra.mxu0 %v44_v1  ;;  %v281_v29 = vld [vmem:[%s2289_s9 + $0x8] sm:$0xff]  ;;  %v280_v30 = vld [vmem:[%s2289_s9] sm:$0xff]  ;;  %v188_v34 = vld [vmem:[%s2291_s7 + $0x10] sm:$0xff]  ;;  %1809 = vmatprep.subr.mxu1 %v189_v33 }
   0x6   :  { %1802 = vmatprep.subr.mxu0 %v43_v3  ;;  %v278_v31 = vld [vmem:[%s2290_s2] sm:$0xff]  ;;  %v279_v32 = vld [vmem:[%s2290_s2 + $0x8] sm:$0xff]  ;;  %1810 = vmatpush3.msra.mxu1 %v189_v33 }
   0x7   :  { %1803 = vmatpush3.msra.mxu0 %v43_v3  ;;  %v187_v35 = vld [vmem:[%s2291_s7 + $0x8] sm:$0xff]  ;;  %1811 = vmatprep.subr.mxu1 %v188_v34  ;;  %v186_v36 = vld [vmem:[%s2291_s7] sm:$0xff] }
   0x8   :  { %1804 = vmatprep.subr.mxu0 %v42_v4  ;;  %1812 = vmatpush3.msra.mxu1 %v188_v34  ;;  %v1716_v45 = vld [vmem:[%s2292_s5] ss:$0 sm:$0xff] }
   0x9   :  { %1805 = vmatpush3.msra.mxu0 %v42_v4  ;;  %1813 = vmatprep.subr.mxu1 %v187_v35  ;;  %v1717_v47 = vld [vmem:[%s2293_s6] ss:$0 sm:$0xff] }
   0xa   :  { %1807 = vmatmul.mubr.msk.f32.vlgmr.msra.gmra.mxu0 %vm53_vm0, %v41_v5  ;;  %1820 = vmatprep.subr.mxu0 %v283_v17  ;;  %v1721_v55 = vld [vmem:[%s2295_s10] ss:$0 sm:$0xff] }
   0xb   :  { %1821 = vmatpush3.msra.mxu0 %v283_v17  ;;  %1828 = vmatprep.mubr.msk.f32.mxu0 %vm53_vm0, %v278_v31  ;;  %v1718_v61 = vld [vmem:[%s2296_s8] ss:$0 sm:$0xff]  ;;  %s1963_s8 = smov 88  }
   0xc   :  { %1822 = vmatprep.subr.mxu0 %v282_v28  ;;  %1814 = vmatpush3.msra.mxu1 %v187_v35 }
   0xd   :  { %1823 = vmatpush3.msra.mxu0 %v282_v28  ;;  %1815 = vmatprep.subr.mxu1 %v186_v36 }
   0xe   :  { %1824 = vmatprep.subr.mxu0 %v281_v29  ;;  %1816 = vmatpush3.msra.mxu1 %v186_v36 }
   0xf   :  { %1825 = vmatpush3.msra.mxu0 %v281_v29  ;;  %1831 = vmatprep.subr.mxu1 %v1956_v37 }
  0x10   :  { %1826 = vmatprep.subr.mxu0 %v280_v30 }
  0x11   :  { %1827 = vmatpush3.msra.mxu0 %v280_v30 }
  0x12   :  { %1829 = vmatmul.mubr.msk.f32.vlgmr.msra.gmra.mxu0 %vm53_vm0, %v279_v32  ;;  %1841 = vmatprep.subr.mxu0 %v1956_v37 }
  0x13   :  { %1843 = vmatprep.mubr.msk.f32.mxu0 %vm1960_vm2, %v1956_v37 }
  0xca   :  { %v1808_v6 = vpop.f32.mrf.mxu0 }
  0xcb   :  { %v132_v10 = vadd.f32 %v1808_v6, %v1713_v7 }
  0xcc   :  { %v126_v8 = vpop.f32.mrf.mxu0 }
  0xcd   :  { %v127_v11 = vadd.f32 %v1713_v7, %v126_v8  ;;  %v138_v15 = vadd.f32 %v136_v12, %v132_v10 }
  0xcf   :  { %v137_v13 = vadd.f32 %v135_v9, %v127_v11  ;;  %v144_v16 = vsel %vm53_vm0, %v138_v15, 0.0 }
  0xd1   :  { %v141_v14 = vsel %vm53_vm0, %v137_v13, 0.0 }
  0xd2   :  { %142 = vadd.xlane.f32.xlu0 %v141_v14  ;;  %v1830_v54 = vpop.f32.mrf.mxu0 }
  0xd3   :  { %v2124_v58 = vadd.f32 %v1830_v54, %v1721_v55 }
  0xd4   :  { %v363_v56 = vpop.f32.mrf.mxu0 }
  0xd5   :  { %v2116_v57 = vadd.f32 %v1721_v55, %v363_v56 }
  0xd6   :  { %145 = vadd.xlane.f32.xlu0 %v144_v16 }
  0xec   :  { %540 = vrot.lane.b32.xlu0 %v2116_v57, %s1957_s20 }
 0x15b   :  { %v143_v18 = vpop.xlane.xlu0 %142 }
 0x15c   :  { %v148_v19 = vmul.f32 0.03125, %v143_v18 }
 0x15e   :  { %v150_v20 = vsub.f32 %v137_v13, %v148_v19 }
 0x15f   :  { %v146_v21 = vpop.xlane.xlu0 %145 }
 0x160   :  { %v149_v22 = vmul.f32 0.03125, %v146_v21  ;;  %v152_v23 = vmul.f32 %v150_v20, %v150_v20 }
 0x162   :  { %v151_v24 = vsub.f32 %v138_v15, %v149_v22  ;;  %v154_v25 = vsel %vm53_vm0, %v152_v23, 0.0 }
 0x163   :  { %155 = vadd.xlane.f32.xlu1 %v154_v25  ;;  %v541_v59 = vpop.permute.xlu0 %540 }
 0x164   :  { %v153_v26 = vmul.f32 %v151_v24, %v151_v24  ;;  %1842 = vmatpush3.xpose.msk.msra.mxu0 %vm372_vm1, %v541_v59 }
 0x165   :  { %1851 = vmatprep.subr.mxu0 %v1956_v37 }
 0x166   :  { %v157_v27 = vsel %vm53_vm0, %v153_v26, 0.0 }
 0x167   :  { %158 = vadd.xlane.f32.xlu1 %v157_v27 }
 0x178   :  { %707 = vrot.lane.b32.xlu1 %v2116_v57, %s1958_s21 }
 0x1ec   :  { %v156_v38 = vpop.xlane.xlu1 %155 }
 0x1ed   :  { %v160_v39 = vmul.f32 0.03125, %v156_v38 }
 0x1ef   :  { %v162_v40 = vadd.f32 1e-05, %v160_v39 }
 0x1f0   :  { %v159_v41 = vpop.xlane.xlu1 %158 }
 0x1f1   :  { %1920 = vrsqrt.f32 %v162_v40  ;;  %v161_v42 = vmul.f32 0.03125, %v159_v41 }
 0x1f3   :  { %v163_v43 = vadd.f32 1e-05, %v161_v42 }
 0x1f4   :  { %v708_v1 = vpop.permute.xlu1 %707 }
 0x1f5   :  { %1922 = vrsqrt.f32 %v163_v43 }
 0x1fe   :  { %v1921_v44 = vpop.eup %1920 }
 0x1ff   :  { %v166_v46 = vmul.f32 %v1921_v44, %v150_v20 }
 0x201   :  { %v174_v48 = vmul.f32 %v1716_v45, %v166_v46 }
 0x202   :  { %v1923_v49 = vpop.eup %1922 }
 0x203   :  { %v167_v50 = vmul.f32 %v1923_v49, %v151_v24  ;;  %v182_v51 = vadd.f32 %v1717_v47, %v174_v48 }
 0x205   :  { %v175_v52 = vmul.f32 %v1716_v45, %v167_v50  ;;  %184 = vst.msk [vmem:[%s2294_s11] sm:$0xff] %vm53_vm0, %v182_v51  ;;  %1817 = vmatprep.mubr.msk.f32.mxu1 %vm53_vm0, %v182_v51 }
 0x207   :  { %v183_v53 = vadd.f32 %v1717_v47, %v175_v52 }
 0x209   :  { %185 = vst.msk [vmem:[%s2294_s11 + $0x8] sm:$0xff] %vm53_vm0, %v183_v53  ;;  %1818 = vmatmul.mubr.msk.f32.vlgmr.msra.gmra.mxu1 %vm53_vm0, %v183_v53  ;;  %s1959_s11 = smov 80  }
 0x20a   :  { %1832 = vmatpush3.xpose.msk.msra.mxu1 %vm372_vm1, %v2116_v57  ;;  %874 = vrot.lane.b32.xlu0 %v2116_v57, %s1959_s11 }
 0x20b   :  { %1836 = vmatprep.subr.mxu1 %v1956_v37  ;;  %1833 = vmatprep.mubr.msk.f32.mxu1 %vm1960_vm2, %v1956_v37 }
 0x20e   :  { %1206 = vrot.lane.b32.xlu0 %v2124_v58, %s1957_s20 }
 0x212   :  { %1373 = vrot.lane.b32.xlu0 %v2124_v58, %s1958_s21 }
 0x216   :  { %1540 = vrot.lane.b32.xlu0 %v2124_v58, %s1959_s11 }
 0x27c   :  { %v875_v3 = vpop.permute.xlu0 %874 }
 0x280   :  { %v1207_v6 = vpop.permute.xlu0 %1206 }
 0x284   :  { %v1374_v8 = vpop.permute.xlu0 %1373 }
 0x288   :  { %v1541_v10 = vpop.permute.xlu0 %1540 }
 0x2c9   :  { %v1819_v60 = vpop.f32.mrf.mxu1 }
 0x2ca   :  { %v275_v0 = vadd.f32 %v1819_v60, %v1718_v61 }
 0x2cb   :  { %v269_v62 = vpop.f32.mrf.mxu1 }
 0x2cc   :  { %v270_v63 = vadd.f32 %v1718_v61, %v269_v62 }
 0x2ce   :  { %538 = vrot.lane.b32.xlu1 %v270_v63, %s1961_s23  ;;  %1834 = vmatmul.mubr.msk.f32.vlgmr.msra.gmra.mxu1 %vm372_vm1, %v270_v63 }
 0x2cf   :  { %1838 = vmatprep.mubr.msk.f32.mxu1 %vm1960_vm2, %v1956_v37 }
 0x2d2   :  { %705 = vrot.lane.b32.xlu1 %v270_v63, %s1957_s20 }
 0x2d6   :  { %872 = vrot.lane.b32.xlu1 %v270_v63, %s1962_s24 }
 0x2da   :  { %1204 = vrot.lane.b32.xlu1 %v275_v0, %s1961_s23 }
 0x2de   :  { %1371 = vrot.lane.b32.xlu1 %v275_v0, %s1957_s20 }
 0x2e2   :  { %1538 = vrot.lane.b32.xlu1 %v275_v0, %s1962_s24 }
 0x340   :  { %v539_v2 = vpop.permute.xlu1 %538 }
 0x341   :  { %1844 = vmatmul.mubr.msk.f32.vlgmr.msra.gmra.mxu0 %vm372_vm1, %v539_v2 }
 0x342   :  { %1852 = vmatpush3.xpose.msk.msra.mxu0 %vm372_vm1, %v708_v1  ;;  %1853 = vmatprep.mubr.msk.f32.mxu0 %vm1960_vm2, %v1956_v37 }
 0x343   :  { %1861 = vmatprep.subr.mxu0 %v1956_v37 }
 0x344   :  { %v706_v4 = vpop.permute.xlu1 %705 }
 0x345   :  { %1854 = vmatmul.mubr.msk.f32.vlgmr.msra.gmra.mxu0 %vm372_vm1, %v706_v4 }
 0x346   :  { %1862 = vmatpush3.xpose.msk.msra.mxu0 %vm372_vm1, %v875_v3  ;;  %1863 = vmatprep.mubr.msk.f32.mxu0 %vm1960_vm2, %v1956_v37 }
 0x347   :  { %1871 = vmatprep.subr.mxu0 %v1956_v37 }
 0x348   :  { %v873_v5 = vpop.permute.xlu1 %872 }
 0x349   :  { %1864 = vmatmul.mubr.msk.f32.vlgmr.msra.gmra.mxu0 %vm372_vm1, %v873_v5 }
 0x34a   :  { %1872 = vmatpush3.xpose.msk.msra.mxu0 %vm372_vm1, %v2124_v58  ;;  %1873 = vmatprep.mubr.msk.f32.mxu0 %vm1960_vm2, %v1956_v37 }
 0x34b   :  { %1881 = vmatprep.subr.mxu0 %v1956_v37 }
 0x34c   :  { %v1205_v7 = vpop.permute.xlu1 %1204 }
 0x34d   :  { %1874 = vmatmul.mubr.msk.f32.vlgmr.msra.gmra.mxu0 %vm372_vm1, %v275_v0 }
 0x34e   :  { %1882 = vmatpush3.xpose.msk.msra.mxu0 %vm372_vm1, %v1207_v6  ;;  %1883 = vmatprep.mubr.msk.f32.mxu0 %vm1960_vm2, %v1956_v37 }
 0x34f   :  { %1891 = vmatprep.subr.mxu0 %v1956_v37 }
 0x350   :  { %v1372_v9 = vpop.permute.xlu1 %1371 }
 0x351   :  { %1884 = vmatmul.mubr.msk.f32.vlgmr.msra.gmra.mxu0 %vm372_vm1, %v1205_v7 }
 0x352   :  { %1892 = vmatpush3.xpose.msk.msra.mxu0 %vm372_vm1, %v1374_v8  ;;  %1893 = vmatprep.mubr.msk.f32.mxu0 %vm1960_vm2, %v1956_v37 }
 0x353   :  { %1901 = vmatprep.subr.mxu0 %v1956_v37 }
 0x354   :  { %v1539_v11 = vpop.permute.xlu1 %1538 }
 0x355   :  { %1894 = vmatmul.mubr.msk.f32.vlgmr.msra.gmra.mxu0 %vm372_vm1, %v1372_v9 }
 0x356   :  { %1902 = vmatpush3.xpose.msk.msra.mxu0 %vm372_vm1, %v1541_v10  ;;  %1903 = vmatprep.mubr.msk.f32.mxu0 %vm1960_vm2, %v1956_v37 }
 0x359   :  { %1904 = vmatmul.mubr.msk.f32.vlgmr.msra.gmra.mxu0 %vm372_vm1, %v1539_v11 }
 0x38e   :  { %v445_v12 = vpop.f32.mrf.mxu1 }
 0x38f   :  { %v449_v13 = vmul.f32 0.35355338, %v445_v12 }
 0x390   :  { %v1835_v14 = vpop.f32.mrf.mxu1 }
 0x391   :  { %v450_v15 = vsel %vm372_vm1, %v449_v13, -inf }
 0x392   :  { %451 = vmax.xlane.f32.xlu0 %v450_v15 }
 0x401   :  { %v612_v16 = vpop.f32.mrf.mxu0 }
 0x402   :  { %v616_v17 = vmul.f32 0.35355338, %v612_v16 }
 0x403   :  { %v1845_v18 = vpop.f32.mrf.mxu0 }
 0x404   :  { %v617_v19 = vsel %vm372_vm1, %v616_v17, -inf }
 0x405   :  { %618 = vmax.xlane.f32.xlu1 %v617_v19  ;;  %v779_v20 = vpop.f32.mrf.mxu0 }
 0x406   :  { %v783_v21 = vmul.f32 0.35355338, %v779_v20 }
 0x407   :  { %v1855_v22 = vpop.f32.mrf.mxu0 }
 0x408   :  { %v784_v23 = vsel %vm372_vm1, %v783_v21, -inf }
 0x409   :  { %785 = vmax.xlane.f32.xlu0 %v784_v23  ;;  %v946_v24 = vpop.f32.mrf.mxu0 }
 0x40a   :  { %v950_v25 = vmul.f32 0.35355338, %v946_v24 }
 0x40b   :  { %v1865_v26 = vpop.f32.mrf.mxu0 }
 0x40c   :  { %v951_v27 = vsel %vm372_vm1, %v950_v25, -inf }
 0x40d   :  { %952 = vmax.xlane.f32.xlu0 %v951_v27  ;;  %v1111_v28 = vpop.f32.mrf.mxu0 }
 0x40e   :  { %v1115_v29 = vmul.f32 0.35355338, %v1111_v28 }
 0x40f   :  { %v1875_v30 = vpop.f32.mrf.mxu0 }
 0x410   :  { %v1116_v31 = vsel %vm372_vm1, %v1115_v29, -inf }
 0x411   :  { %1117 = vmax.xlane.f32.xlu0 %v1116_v31  ;;  %v1278_v32 = vpop.f32.mrf.mxu0 }
 0x412   :  { %v2185_v33 = vmul.f32 0.35355338, %v1278_v32 }
 0x413   :  { %v1885_v34 = vpop.f32.mrf.mxu0 }
 0x414   :  { %v1283_v35 = vsel %vm372_vm1, %v2185_v33, -inf }
 0x415   :  { %1284 = vmax.xlane.f32.xlu1 %v1283_v35  ;;  %v1445_v36 = vpop.f32.mrf.mxu0 }
 0x416   :  { %v1449_v38 = vmul.f32 0.35355338, %v1445_v36 }
 0x417   :  { %v1895_v39 = vpop.f32.mrf.mxu0 }
 0x418   :  { %v1450_v40 = vsel %vm372_vm1, %v1449_v38, -inf }
 0x419   :  { %1451 = vmax.xlane.f32.xlu0 %v1450_v40  ;;  %v1612_v41 = vpop.f32.mrf.mxu0 }
 0x41a   :  { %v2193_v48 = vmul.f32 0.35355338, %v1612_v41 }
 0x41b   :  { %v1905_v42 = vpop.f32.mrf.mxu0  ;;  %v452_v43 = vpop.xlane.xlu0 %451 }
 0x41c   :  { %v453_v44 = vsub.f32 %v449_v13, %v452_v43  ;;  %v1617_v49 = vsel %vm372_vm1, %v2193_v48, -inf }
 0x41e   :  { %v454_v45 = vmul.f32 1.442695, %v453_v44 }
 0x420   :  { %1924 = vpow2.f32 %v454_v45 }
 0x426   :  { %461 = vrot.lane.b32.xlu1 %v2116_v57, %s1961_s23 }
 0x42d   :  { %v1925_v46 = vpop.eup %1924 }
 0x42e   :  { %v456_v47 = vsel %vm372_vm1, %v1925_v46, 0.0 }
 0x42f   :  { %457 = vadd.xlane.f32.xlu0 %v456_v47 }
 0x445   :  { %628 = vrot.lane.b32.xlu0 %v2116_v57, %s1962_s24 }
 0x44a   :  { %1618 = vmax.xlane.f32.xlu1 %v1617_v49 }
 0x45b   :  { %795 = vrot.lane.b32.xlu1 %v2116_v57, %s1963_s8 }
 0x45f   :  { %962 = vrot.lane.b32.xlu1 %v2116_v57, %s1964_s25 }
 0x463   :  { %1127 = vrot.lane.b32.xlu1 %v2124_v58, %s1961_s23 }
 0x48e   :  { %v619_v50 = vpop.xlane.xlu1 %618 }
 0x48f   :  { %v620_v51 = vsub.f32 %v616_v17, %v619_v50 }
 0x491   :  { %v621_v52 = vmul.f32 1.442695, %v620_v51 }
 0x492   :  { %v786_v53 = vpop.xlane.xlu0 %785 }
 0x493   :  { %1926 = vpow2.f32 %v621_v52  ;;  %v787_v54 = vsub.f32 %v783_v21, %v786_v53 }
 0x495   :  { %v788_v55 = vmul.f32 1.442695, %v787_v54 }
 0x496   :  { %v953_v56 = vpop.xlane.xlu0 %952 }
 0x497   :  { %1928 = vpow2.f32 %v788_v55  ;;  %v954_v59 = vsub.f32 %v950_v25, %v953_v56 }
 0x499   :  { %v955_v60 = vmul.f32 1.442695, %v954_v59 }
 0x49a   :  { %v1118_v61 = vpop.xlane.xlu0 %1117 }
 0x49b   :  { %1930 = vpow2.f32 %v955_v60  ;;  %v1119_v62 = vsub.f32 %v1115_v29, %v1118_v61 }
 0x49d   :  { %v1120_v63 = vmul.f32 1.442695, %v1119_v62 }
 0x49e   :  { %v1285_v0 = vpop.xlane.xlu1 %1284 }
 0x49f   :  { %1932 = vpow2.f32 %v1120_v63  ;;  %v1286_v16 = vsub.f32 %v2185_v33, %v1285_v0 }
 0x4a0   :  { %v1927_v57 = vpop.eup %1926 }
 0x4a1   :  { %v623_v1 = vsel %vm372_vm1, %v1927_v57, 0.0  ;;  %v1287_v19 = vmul.f32 1.442695, %v1286_v16 }
 0x4a2   :  { %v462_v2 = vpop.permute.xlu1 %461  ;;  %624 = vadd.xlane.f32.xlu1 %v623_v1  ;;  %v1452_v3 = vpop.xlane.xlu0 %1451 }
 0x4a3   :  { %v1453_v4 = vsub.f32 %v1449_v38, %v1452_v3  ;;  %1837 = vmatpush3.msra.mxu1 %v462_v2 }
 0x4a4   :  { %v1929_v5 = vpop.eup %1928  ;;  %1846 = vmatprep.subr.mxu1 %v1956_v37 }
 0x4a5   :  { %v1454_v6 = vmul.f32 1.442695, %v1453_v4  ;;  %v790_v7 = vsel %vm372_vm1, %v1929_v5, 0.0 }
 0x4a6   :  { %791 = vadd.xlane.f32.xlu0 %v790_v7 }
 0x4a7   :  { %1934 = vpow2.f32 %v1454_v6 }
 0x4a8   :  { %v1931_v8 = vpop.eup %1930 }
 0x4a9   :  { %v957_v9 = vsel %vm372_vm1, %v1931_v8, 0.0 }
 0x4aa   :  { %958 = vadd.xlane.f32.xlu1 %v957_v9 }
 0x4ac   :  { %v1933_v10 = vpop.eup %1932 }
 0x4ad   :  { %v1122_v11 = vsel %vm372_vm1, %v1933_v10, 0.0 }
 0x4ae   :  { %1123 = vadd.xlane.f32.xlu0 %v1122_v11 }
 0x4b4   :  { %v2210_v12 = vpop.eup %1934 }
 0x4b5   :  { %v1456_v13 = vsel %vm372_vm1, %v2210_v12, 0.0 }
 0x4b6   :  { %1457 = vadd.xlane.f32.xlu0 %v1456_v13 }
 0x4b8   :  { %v458_v14 = vpop.xlane.xlu0 %457 }
 0x4b9   :  { %1936 = vrcp.f32 %v458_v14 }
 0x4ba   :  { %1938 = vpow2.f32 %v1287_v19 }
 0x4bb   :  { %1294 = vrot.lane.b32.xlu1 %v2124_v58, %s1962_s24 }
 0x4bc   :  { %v629_v18 = vpop.permute.xlu0 %628 }
 0x4c6   :  { %v1937_v15 = vpop.eup %1936 }
 0x4c7   :  { %v460_v17 = vmul.f32 %v1937_v15, %v1925_v46  ;;  %v1939_v23 = vpop.eup %1938 }
 0x4c8   :  { %v1289_v24 = vsel %vm372_vm1, %v1939_v23, 0.0 }
 0x4c9   :  { %1839 = vmatmul.mubr.msk.f32.vlgmr.msra.gmra.mxu1 %vm372_vm1, %v460_v17 }
 0x4ca   :  { %1847 = vmatpush3.msra.mxu1 %v629_v18  ;;  %1848 = vmatprep.mubr.msk.f32.mxu1 %vm1960_vm2, %v1956_v37 }
 0x4cb   :  { %1856 = vmatprep.subr.mxu1 %v1956_v37 }
 0x4d3   :  { %v1619_v20 = vpop.xlane.xlu1 %1618 }
 0x4d4   :  { %v1620_v21 = vsub.f32 %v2193_v48, %v1619_v20 }
 0x4d6   :  { %v1621_v22 = vmul.f32 1.442695, %v1620_v21 }
 0x4d7   :  { %v796_v27 = vpop.permute.xlu1 %795 }
 0x4d8   :  { %1940 = vpow2.f32 %v1621_v22 }
 0x4db   :  { %v963_v28 = vpop.permute.xlu1 %962 }
 0x4df   :  { %1290 = vadd.xlane.f32.xlu1 %v1289_v24  ;;  %v1128_v29 = vpop.permute.xlu1 %1127 }
 0x4e5   :  { %v1941_v25 = vpop.eup %1940 }
 0x4e6   :  { %v1623_v26 = vsel %vm372_vm1, %v1941_v25, 0.0 }
 0x4e7   :  { %1624 = vadd.xlane.f32.xlu0 %v1623_v26 }
 0x4f0   :  { %1628 = vrot.lane.b32.xlu1 %v2124_v58, %s1964_s25 }
 0x4fd   :  { %1461 = vrot.lane.b32.xlu0 %v2124_v58, %s1963_s8 }
 0x52b   :  { %v625_v30 = vpop.xlane.xlu1 %624 }
 0x52c   :  { %1942 = vrcp.f32 %v625_v30 }
 0x52f   :  { %v792_v31 = vpop.xlane.xlu0 %791 }
 0x530   :  { %1944 = vrcp.f32 %v792_v31 }
 0x533   :  { %v959_v32 = vpop.xlane.xlu1 %958 }
 0x534   :  { %1946 = vrcp.f32 %v959_v32 }
 0x537   :  { %v1124_v33 = vpop.xlane.xlu0 %1123  ;;  %v1295_v42 = vpop.permute.xlu1 %1294 }
 0x538   :  { %1948 = vrcp.f32 %v1124_v33 }
 0x539   :  { %v1943_v34 = vpop.eup %1942 }
 0x53a   :  { %v627_v35 = vmul.f32 %v1943_v34, %v1927_v57 }
 0x53c   :  { %1849 = vmatmul.mubr.msk.f32.vlgmr.msra.gmra.mxu1 %vm372_vm1, %v627_v35 }
 0x53d   :  { %v1945_v36 = vpop.eup %1944  ;;  %1857 = vmatpush3.msra.mxu1 %v796_v27  ;;  %1858 = vmatprep.mubr.msk.f32.mxu1 %vm1960_vm2, %v1956_v37 }
 0x53e   :  { %1866 = vmatprep.subr.mxu1 %v1956_v37  ;;  %v794_v58 = vmul.f32 %v1945_v36, %v1929_v5 }
 0x53f   :  { %v1458_v43 = vpop.xlane.xlu0 %1457 }
 0x540   :  { %1859 = vmatmul.mubr.msk.f32.vlgmr.msra.gmra.mxu1 %vm372_vm1, %v794_v58 }
 0x541   :  { %v1947_v38 = vpop.eup %1946  ;;  %1867 = vmatpush3.msra.mxu1 %v963_v28  ;;  %1868 = vmatprep.mubr.msk.f32.mxu1 %vm1960_vm2, %v1956_v37 }
 0x542   :  { %1876 = vmatprep.subr.mxu1 %v1956_v37  ;;  %v961_v39 = vmul.f32 %v1947_v38, %v1931_v8 }
 0x544   :  { %1869 = vmatmul.mubr.msk.f32.vlgmr.msra.gmra.mxu1 %vm372_vm1, %v961_v39 }
 0x545   :  { %v1949_v40 = vpop.eup %1948  ;;  %1877 = vmatpush3.msra.mxu1 %v1128_v29  ;;  %1878 = vmatprep.mubr.msk.f32.mxu1 %vm1960_vm2, %v1956_v37 }
 0x546   :  { %1886 = vmatprep.subr.mxu1 %v1956_v37  ;;  %v1126_v41 = vmul.f32 %v1949_v40, %v1933_v10 }
 0x548   :  { %1879 = vmatmul.mubr.msk.f32.vlgmr.msra.gmra.mxu1 %vm372_vm1, %v1126_v41 }
 0x549   :  { %1887 = vmatpush3.msra.mxu1 %v1295_v42  ;;  %1888 = vmatprep.mubr.msk.f32.mxu1 %vm1960_vm2, %v1956_v37 }
 0x54a   :  { %1896 = vmatprep.subr.mxu1 %v1956_v37 }
 0x568   :  { %v1291_v44 = vpop.xlane.xlu1 %1290 }
 0x569   :  { %1950 = vrcp.f32 %v1291_v44 }
 0x56a   :  { %1952 = vrcp.f32 %v1458_v43 }
 0x56c   :  { %v1629_v51 = vpop.permute.xlu1 %1628 }
 0x570   :  { %v1625_v45 = vpop.xlane.xlu0 %1624 }
 0x571   :  { %1954 = vrcp.f32 %v1625_v45 }
 0x574   :  { %v1462_v49 = vpop.permute.xlu0 %1461 }
 0x576   :  { %v1951_v46 = vpop.eup %1950 }
 0x577   :  { %v1293_v47 = vmul.f32 %v1951_v46, %v1939_v23  ;;  %v1953_v48 = vpop.eup %1952 }
 0x578   :  { %v1460_v50 = vmul.f32 %v1953_v48, %v2210_v12 }
 0x579   :  { %1889 = vmatmul.mubr.msk.f32.vlgmr.msra.gmra.mxu1 %vm372_vm1, %v1293_v47 }
 0x57a   :  { %1897 = vmatpush3.msra.mxu1 %v1462_v49  ;;  %1898 = vmatprep.mubr.msk.f32.mxu1 %vm1960_vm2, %v1956_v37 }
 0x57b   :  { %1906 = vmatprep.subr.mxu1 %v1956_v37 }
 0x57d   :  { %1899 = vmatmul.mubr.msk.f32.vlgmr.msra.gmra.mxu1 %vm372_vm1, %v1460_v50 }
 0x57e   :  { %v1955_v52 = vpop.eup %1954  ;;  %1907 = vmatpush3.msra.mxu1 %v1629_v51  ;;  %1908 = vmatprep.mubr.msk.f32.mxu1 %vm1960_vm2, %v1956_v37 }
 0x57f   :  { %v1627_v53 = vmul.f32 %v1955_v52, %v1941_v25 }
 0x581   :  { %1909 = vmatmul.mubr.msk.f32.vlgmr.msra.gmra.mxu1 %vm372_vm1, %v1627_v53 }
 0x589   :  { %v533_v54 = vpop.f32.mrf.mxu1 }
 0x58a   :  { %537 = vst.msk [vmem:[%s2297_s12] sm:$0xff] %vm372_vm1, %v533_v54 }
 0x58b   :  { %v1840_v55 = vpop.f32.mrf.mxu1 }
 0x5fc   :  { %v700_v56 = vpop.f32.mrf.mxu1 }
 0x5fd   :  { %704 = vst.msk [vmem:[%s2297_s12 + $0x8] sm:$0xff] %vm372_vm1, %v700_v56 }
 0x5fe   :  { %v1850_v59 = vpop.f32.mrf.mxu1 }
 0x600   :  { %v867_v60 = vpop.f32.mrf.mxu1 }
 0x601   :  { %871 = vst.msk [vmem:[%s2297_s12 + $0x10] sm:$0xff] %vm372_vm1, %v867_v60 }
 0x602   :  { %v1860_v37 = vpop.f32.mrf.mxu1 }
 0x604   :  { %v1034_v61 = vpop.f32.mrf.mxu1 }
 0x605   :  { %1038 = vst.msk [vmem:[%s2297_s12 + $0x18] sm:$0xff] %vm372_vm1, %v1034_v61 }
 0x606   :  { %v1870_v62 = vpop.f32.mrf.mxu1 }
 0x608   :  { %v1199_v63 = vpop.f32.mrf.mxu1 }
 0x609   :  { %1203 = vst.msk [vmem:[%s2297_s12 + $0x20] sm:$0xff] %vm372_vm1, %v1199_v63 }
 0x60a   :  { %v1880_v0 = vpop.f32.mrf.mxu1 }
 0x639   :  { %v1366_v57 = vpop.f32.mrf.mxu1 }
 0x63a   :  { %1370 = vst.msk [vmem:[%s2297_s12 + $0x28] sm:$0xff] %vm372_vm1, %v1366_v57 }
 0x63b   :  { %v1890_v1 = vpop.f32.mrf.mxu1 }
 0x63d   :  { %v1533_v2 = vpop.f32.mrf.mxu1 }
 0x63e   :  { %1537 = vst.msk [vmem:[%s2297_s12 + $0x30] sm:$0xff] %vm372_vm1, %v1533_v2 }
 0x63f   :  { %v1900_v3 = vpop.f32.mrf.mxu1 }
 0x641   :  { %v1700_v4 = vpop.f32.mrf.mxu1 }
 0x642   :  { %1704 = vst.msk [vmem:[%s2297_s12 + $0x38] sm:$0xff] %vm372_vm1, %v1700_v4 }
 0x643   :  { %v1910_v5 = vpop.f32.mrf.mxu1 }

// kernel: transformer_forward_pallas.11
= control target key start
LH: loop header
LB: loop body
LE: loop exit
PB: predicated region body
PF: predicated region fallthrough
CT: control target
= control target key end

     0   :  { %vm28_vm0 = vcmask 261120   ;;  %s221_s0 = inlined_call_operand.vmem [shape: f32[16,32], index: 0, kind: input, shape index: {}]   ;;  %s222_s1 = inlined_call_operand.vmem [shape: f32[32,8], index: 1, kind: input, shape index: {}]   ;;  %s223_s2 = inlined_call_operand.vmem [shape: f32[1,8], index: 2, kind: input, shape index: {}]   ;;  %s224_s3 = inlined_call_operand.hbm [shape: f32[16,8], index: 3, kind: output, shape index: {}]  }
   0x1   :  { %v20_v0 = vld [vmem:[%s222_s1 + $0x18] sm:$0xff]  ;;  %v19_v1 = vld [vmem:[%s222_s1 + $0x10] sm:$0xff]  ;;  %v15_v2 = vld [vmem:[%s221_s0] sm:$0xff] }
   0x2   :  { %138 = vmatprep.subr.mxu0 %v20_v0  ;;  %v18_v3 = vld [vmem:[%s222_s1 + $0x8] sm:$0xff]  ;;  %146 = vmatprep.mubr.msk.f32.mxu0 %vm28_vm0, %v15_v2 }
   0x3   :  { %139 = vmatpush3.msra.mxu0 %v20_v0 }
   0x4   :  { %8 = vsyncpa [#allocation3], 0  ;;  %140 = vmatprep.subr.mxu0 %v19_v1  ;;  %v17_v4 = vld [vmem:[%s222_s1] sm:$0xff]  ;;  %v16_v5 = vld [vmem:[%s221_s0 + $0x8] sm:$0xff]  ;;  %s174_s26 = smov [#allocation2]   ;;  %vm110_vm1 = vcmask 64512  }
   0x5   :  { %141 = vmatpush3.msra.mxu0 %v19_v1  ;;  %v129_v6 = vld [vmem:[%s223_s2] ss:$0 sm:$0xff]  ;;  %s118_s27 = sshll.u32 %s174_s26, 4  ;;  %s119_s27 = int_to_ptr.vmem [resolvable:$true] %s118_s27 }
   0x6   :  { %142 = vmatprep.subr.mxu0 %v18_v3  ;;  %s152_s1 = scalar_lea.vmem %s119_s27, 256  ;;  %p157_p1 = scmp.lt.s32.totalorder %s119_s27, %s119_s27 }
   0x7   :  { %143 = vmatpush3.msra.mxu0 %v18_v3  ;;  %p153_p0 = scmp.ne.s32.totalorder %s119_s27, %s152_s1  ;;  %p158_p2 = scmp.lt.s32.totalorder %s152_s1, %s152_s1 }
   0x8   :  { %144 = vmatprep.subr.mxu0 %v17_v4 }
   0x9   :  { %145 = vmatpush3.msra.mxu0 %v17_v4  ;;  %p159_p3 = por %p158_p2, %p157_p1 }
   0xa   :  { %147 = vmatmul.mubr.msk.f32.vlgmr.msra.gmra.mxu0 %vm28_vm0, %v16_v5 }
   0xb   :  { %p160_p4 = pnand %p159_p3, %p153_p0 }
  0xca   :  { %v148_v7 = vpop.f32.mrf.mxu0 }
  0xcb   :  { %v107_v8 = vadd.f32 %v148_v7, %v129_v6 }
  0xcc   :  { %v101_v9 = vpop.f32.mrf.mxu0 }
  0xcd   :  { %112 = vst.msk [vmem:[#allocation2 + $0x8] sm:$0xff] %vm110_vm1, %v107_v8  ;;  %v102_v10 = vadd.f32 %v129_v6, %v101_v9 }
  0xcf   :  { %111 = vst.msk [vmem:[#allocation2] sm:$0xff] %vm110_vm1, %v102_v10 }
  0xd0   :  { %163 = shalt.err (!%p160_p4)
}
  0xd1   :  { %s175_s0 = smov 128   ;;  %s176_s28 = smov 8  }
  0xd2   :  { %124 = dma.vmem_to_hbm [thread:$0]  %s119_s27, 256, %s224_s3, [#allocation3], %s175_s0, %s175_s0, %s176_s28  }
  0xd3   :  { %172 = dma.done.wait [#allocation3], 256  }
  0xd4   :  { %173 = vsyncadd [#allocation3], 4294967040 }
  0xd5   :  { %128 = vsyncpa [#allocation3], 1 }

// kernel: transformer_forward_pallas.10
= control target key start
LH: loop header
LB: loop body
LE: loop exit
PB: predicated region body
PF: predicated region fallthrough
CT: control target
= control target key end

     0   :  { %vm54_vm0 = vcmask 261120   ;;  %s651_s2 = inlined_call_operand.vmem [shape: f32[1,32,32], index: 2, kind: input, shape index: {}]   ;;  %s652_s0 = inlined_call_operand.vmem [shape: f32[1,16,32], index: 0, kind: input, shape index: {}]   ;;  %s653_s3 = inlined_call_operand.vmem [shape: f32[1,1,32], index: 3, kind: input, shape index: {}]   ;;  %s654_s1 = inlined_call_operand.vmem [shape: f32[1,16,32], index: 1, kind: input, shape index: {}]   ;;  %s655_s6 = inlined_call_operand.vmem [shape: f32[1,32,32], index: 6, kind: input, shape index: {}]   ;;  %s656_s4 = inlined_call_operand.vmem [shape: f32[1,1,32], index: 4, kind: input, shape index: {}]   ;;  %s657_s5 = inlined_call_operand.vmem [shape: f32[1,1,32], index: 5, kind: input, shape index: {}]   ;;  %s658_s8 = inlined_call_operand.vmem [shape: f32[1,32,32], index: 8, kind: input, shape index: {}]   ;;  %s659_s7 = inlined_call_operand.vmem [shape: f32[1,1,32], index: 7, kind: input, shape index: {}]   ;;  %s660_s9 = inlined_call_operand.vmem [shape: f32[1,1,32], index: 9, kind: input, shape index: {}]   ;;  %s661_s10 = inlined_call_operand.vmem [shape: f32[1,1,32], index: 10, kind: input, shape index: {}]   ;;  %s662_s11 = inlined_call_operand.vmem [shape: f32[1,1,32], index: 11, kind: input, shape index: {}]   ;;  %s663_s12 = inlined_call_operand.vmem [shape: f32[1,16,32], index: 12, kind: output, shape index: {}]  }
   0x1   :  { %v46_v0 = vld [vmem:[%s651_s2 + $0x18] sm:$0xff]  ;;  %v45_v1 = vld [vmem:[%s651_s2 + $0x10] sm:$0xff]  ;;  %v41_v2 = vld [vmem:[%s652_s0] sm:$0xff] }
   0x2   :  { %454 = vmatprep.subr.mxu0 %v46_v0  ;;  %v44_v3 = vld [vmem:[%s651_s2 + $0x8] sm:$0xff]  ;;  %462 = vmatprep.mubr.msk.f32.mxu0 %vm54_vm0, %v41_v2  ;;  %v43_v4 = vld [vmem:[%s651_s2] sm:$0xff]  ;;  %v188_v27 = vld [vmem:[%s655_s6 + $0x18] sm:$0xff] }
   0x3   :  { %455 = vmatpush3.msra.mxu0 %v46_v0  ;;  %v42_v5 = vld [vmem:[%s652_s0 + $0x8] sm:$0xff]  ;;  %v423_v7 = vld [vmem:[%s653_s3] ss:$0 sm:$0xff]  ;;  %v187_v28 = vld [vmem:[%s655_s6 + $0x10] sm:$0xff]  ;;  %465 = vmatprep.subr.mxu1 %v188_v27 }
   0x4   :  { %456 = vmatprep.subr.mxu0 %v45_v1  ;;  %v136_v9 = vld [vmem:[%s654_s1] sm:$0xff]  ;;  %v137_v12 = vld [vmem:[%s654_s1 + $0x8] sm:$0xff]  ;;  %466 = vmatpush3.msra.mxu1 %v188_v27  ;;  %v282_v47 = vld [vmem:[%s658_s8 + $0x18] sm:$0xff] }
   0x5   :  { %457 = vmatpush3.msra.mxu0 %v45_v1  ;;  %v186_v29 = vld [vmem:[%s655_s6 + $0x8] sm:$0xff]  ;;  %467 = vmatprep.subr.mxu1 %v187_v28  ;;  %v185_v30 = vld [vmem:[%s655_s6] sm:$0xff]  ;;  %v281_v48 = vld [vmem:[%s658_s8 + $0x10] sm:$0xff] }
   0x6   :  { %458 = vmatprep.subr.mxu0 %v44_v3  ;;  %468 = vmatpush3.msra.mxu1 %v187_v28  ;;  %v426_v38 = vld [vmem:[%s656_s4] ss:$0 sm:$0xff]  ;;  %v280_v49 = vld [vmem:[%s658_s8 + $0x8] sm:$0xff] }
   0x7   :  { %459 = vmatpush3.msra.mxu0 %v44_v3  ;;  %469 = vmatprep.subr.mxu1 %v186_v29  ;;  %v427_v40 = vld [vmem:[%s657_s5] ss:$0 sm:$0xff] }
   0x8   :  { %460 = vmatprep.subr.mxu0 %v43_v4  ;;  %470 = vmatpush3.msra.mxu1 %v186_v29  ;;  %v279_v50 = vld [vmem:[%s658_s8] sm:$0xff] }
   0x9   :  { %461 = vmatpush3.msra.mxu0 %v43_v4  ;;  %471 = vmatprep.subr.mxu1 %v185_v30  ;;  %v428_v51 = vld [vmem:[%s659_s7] ss:$0 sm:$0xff] }
   0xa   :  { %463 = vmatmul.mubr.msk.f32.vlgmr.msra.gmra.mxu0 %vm54_vm0, %v42_v5  ;;  %472 = vmatpush3.msra.mxu1 %v185_v30  ;;  %v431_v58 = vld [vmem:[%s660_s9] ss:$0 sm:$0xff] }
   0xb   :  { %476 = vmatprep.subr.mxu0 %v282_v47 }
   0xc   :  { %477 = vmatpush3.msra.mxu0 %v282_v47 }
   0xd   :  { %478 = vmatprep.subr.mxu0 %v281_v48 }
   0xe   :  { %479 = vmatpush3.msra.mxu0 %v281_v48 }
   0xf   :  { %480 = vmatprep.subr.mxu0 %v280_v49 }
  0x10   :  { %481 = vmatpush3.msra.mxu0 %v280_v49 }
  0x11   :  { %482 = vmatprep.subr.mxu0 %v279_v50 }
  0x12   :  { %483 = vmatpush3.msra.mxu0 %v279_v50 }
  0xca   :  { %v464_v6 = vpop.f32.mrf.mxu0 }
  0xcb   :  { %v133_v10 = vadd.f32 %v464_v6, %v423_v7 }
  0xcc   :  { %v127_v8 = vpop.f32.mrf.mxu0 }
  0xcd   :  { %v128_v11 = vadd.f32 %v423_v7, %v127_v8  ;;  %v139_v15 = vadd.f32 %v137_v12, %v133_v10 }
  0xcf   :  { %v138_v13 = vadd.f32 %v136_v9, %v128_v11  ;;  %v145_v16 = vsel %vm54_vm0, %v139_v15, 0.0 }
  0xd1   :  { %v142_v14 = vsel %vm54_vm0, %v138_v13, 0.0 }
  0xd2   :  { %143 = vadd.xlane.f32.xlu0 %v142_v14 }
  0xd6   :  { %146 = vadd.xlane.f32.xlu0 %v145_v16 }
 0x15b   :  { %v144_v17 = vpop.xlane.xlu0 %143 }
 0x15c   :  { %v149_v18 = vmul.f32 0.03125, %v144_v17 }
 0x15e   :  { %v151_v19 = vsub.f32 %v138_v13, %v149_v18 }
 0x15f   :  { %v147_v20 = vpop.xlane.xlu0 %146 }
 0x160   :  { %v150_v21 = vmul.f32 0.03125, %v147_v20  ;;  %v153_v22 = vmul.f32 %v151_v19, %v151_v19  ;;  %v434_v20 = vld [vmem:[%s661_s10] ss:$0 sm:$0xff] }
 0x162   :  { %v152_v23 = vsub.f32 %v139_v15, %v150_v21  ;;  %v155_v24 = vsel %vm54_vm0, %v153_v22, 0.0 }
 0x163   :  { %156 = vadd.xlane.f32.xlu1 %v155_v24 }
 0x164   :  { %v154_v25 = vmul.f32 %v152_v23, %v152_v23 }
 0x166   :  { %v158_v26 = vsel %vm54_vm0, %v154_v25, 0.0 }
 0x167   :  { %159 = vadd.xlane.f32.xlu1 %v158_v26 }
 0x1ec   :  { %v157_v31 = vpop.xlane.xlu1 %156 }
 0x1ed   :  { %v161_v32 = vmul.f32 0.03125, %v157_v31 }
 0x1ef   :  { %v163_v33 = vadd.f32 1e-05, %v161_v32 }
 0x1f0   :  { %v160_v34 = vpop.xlane.xlu1 %159 }
 0x1f1   :  { %487 = vrsqrt.f32 %v163_v33  ;;  %v162_v35 = vmul.f32 0.03125, %v160_v34 }
 0x1f3   :  { %v164_v36 = vadd.f32 1e-05, %v162_v35 }
 0x1f5   :  { %489 = vrsqrt.f32 %v164_v36 }
 0x1fe   :  { %v488_v37 = vpop.eup %487 }
 0x1ff   :  { %v167_v39 = vmul.f32 %v488_v37, %v151_v19 }
 0x201   :  { %v175_v41 = vmul.f32 %v426_v38, %v167_v39 }
 0x202   :  { %v490_v42 = vpop.eup %489 }
 0x203   :  { %v168_v43 = vmul.f32 %v490_v42, %v152_v23  ;;  %v183_v44 = vadd.f32 %v427_v40, %v175_v41  ;;  %v435_v23 = vld [vmem:[%s662_s11] ss:$0 sm:$0xff] }
 0x205   :  { %v176_v45 = vmul.f32 %v426_v38, %v168_v43  ;;  %473 = vmatprep.mubr.msk.f32.mxu1 %vm54_vm0, %v183_v44 }
 0x207   :  { %v184_v46 = vadd.f32 %v427_v40, %v176_v45 }
 0x209   :  { %474 = vmatmul.mubr.msk.f32.vlgmr.msra.gmra.mxu1 %vm54_vm0, %v184_v46 }
 0x2c9   :  { %v475_v52 = vpop.f32.mrf.mxu1 }
 0x2ca   :  { %v274_v53 = vadd.f32 %v475_v52, %v428_v51 }
 0x2cb   :  { %v268_v54 = vpop.f32.mrf.mxu1 }
 0x2cc   :  { %v269_v55 = vadd.f32 %v428_v51, %v268_v54  ;;  %v278_v57 = vmax.f32 %v274_v53, 0.0 }
 0x2ce   :  { %v277_v56 = vmax.f32 %v269_v55, 0.0 }
 0x2d0   :  { %484 = vmatprep.mubr.msk.f32.mxu0 %vm54_vm0, %v277_v56 }
 0x2d1   :  { %485 = vmatmul.mubr.msk.f32.vlgmr.msra.gmra.mxu0 %vm54_vm0, %v278_v57 }
 0x391   :  { %v486_v59 = vpop.f32.mrf.mxu0 }
 0x392   :  { %v368_v60 = vadd.f32 %v486_v59, %v431_v58 }
 0x393   :  { %v362_v61 = vpop.f32.mrf.mxu0 }
 0x394   :  { %v363_v62 = vadd.f32 %v431_v58, %v362_v61  ;;  %v372_v63 = vadd.f32 %v368_v60, %v184_v46 }
 0x396   :  { %v378_v0 = vsel %vm54_vm0, %v372_v63, 0.0  ;;  %v371_v1 = vadd.f32 %v363_v62, %v183_v44 }
 0x397   :  { %379 = vadd.xlane.f32.xlu1 %v378_v0 }
 0x398   :  { %v375_v2 = vsel %vm54_vm0, %v371_v1, 0.0 }
 0x399   :  { %376 = vadd.xlane.f32.xlu0 %v375_v2 }
 0x420   :  { %v380_v3 = vpop.xlane.xlu1 %379 }
 0x421   :  { %v382_v4 = vmul.f32 0.03125, %v380_v3 }
 0x422   :  { %v377_v5 = vpop.xlane.xlu0 %376 }
 0x423   :  { %v384_v6 = vsub.f32 %v372_v63, %v382_v4  ;;  %v381_v7 = vmul.f32 0.03125, %v377_v5 }
 0x425   :  { %v383_v8 = vsub.f32 %v371_v1, %v381_v7  ;;  %v386_v9 = vmul.f32 %v384_v6, %v384_v6 }
 0x427   :  { %v390_v10 = vsel %vm54_vm0, %v386_v9, 0.0  ;;  %v385_v11 = vmul.f32 %v383_v8, %v383_v8 }
 0x428   :  { %391 = vadd.xlane.f32.xlu1 %v390_v10 }
 0x429   :  { %v387_v12 = vsel %vm54_vm0, %v385_v11, 0.0 }
 0x42a   :  { %388 = vadd.xlane.f32.xlu0 %v387_v12 }
 0x4b1   :  { %v392_v13 = vpop.xlane.xlu1 %391 }
 0x4b2   :  { %v394_v14 = vmul.f32 0.03125, %v392_v13 }
 0x4b3   :  { %v389_v15 = vpop.xlane.xlu0 %388 }
 0x4b4   :  { %v396_v16 = vadd.f32 1e-05, %v394_v14  ;;  %v393_v17 = vmul.f32 0.03125, %v389_v15 }
 0x4b6   :  { %491 = vrsqrt.f32 %v396_v16  ;;  %v395_v18 = vadd.f32 1e-05, %v393_v17 }
 0x4b8   :  { %493 = vrsqrt.f32 %v395_v18 }
 0x4c3   :  { %v492_v19 = vpop.eup %491 }
 0x4c4   :  { %v400_v21 = vmul.f32 %v492_v19, %v384_v6 }
 0x4c5   :  { %v494_v22 = vpop.eup %493 }
 0x4c6   :  { %v408_v24 = vmul.f32 %v434_v20, %v400_v21  ;;  %v399_v25 = vmul.f32 %v494_v22, %v383_v8 }
 0x4c8   :  { %v416_v26 = vadd.f32 %v435_v23, %v408_v24  ;;  %v407_v27 = vmul.f32 %v434_v20, %v399_v25 }
 0x4ca   :  { %418 = vst.msk [vmem:[%s663_s12 + $0x8] sm:$0xff] %vm54_vm0, %v416_v26  ;;  %v415_v28 = vadd.f32 %v435_v23, %v407_v27 }
 0x4cc   :  { %417 = vst.msk [vmem:[%s663_s12] sm:$0xff] %vm54_vm0, %v415_v28 }

</bundles_post_ra>
